<compile_context>
chip_gen: v6e
topology: v6e:2x2x1
jax: 0.10.0
libtpu: 0.0.40
codegen_flags: <defaults>
</compile_context>

<pallas_src>
import jax
import jax.numpy as jnp
from jax import lax
from jax.experimental import pallas as pl
from jax.experimental.pallas import tpu as pltpu

LN_EPS = 1e-5
_SUBLANE = 8  # f32 sublane tile; batch is padded up to a multiple of this


def lstm_decoder_kernel(x_ref, lens_ref, gamma_ref, beta_ref,
                        wih_ref, whh_ref, b_ref, h0_ref, c0_ref,
                        wfc_ref, bfc_ref,
                        out_ref,
                        gx_scr, hout_scr, h_scr, c_scr):
    """One T-chunk of the packed-LSTM decoder.

    x_ref    : (Tt*Bp, E)  bf16  embedded tokens, time-major rows (row = t*Bp + b)
    lens_ref : (Bp, 1)     i32   valid sequence length per (padded) batch row, resident
    wih_ref  : (E, 4H)     bf16  gate columns pre-permuted to (i, f, o, g)
    whh_ref  : (H, 4H)     bf16  same permutation
    b_ref    : (1, 4H)     f32   (= b_ih + b_hh), same permutation
    h0/c0    : (Bp, H)     f32   initial state (pad rows zero)
    wfc_ref  : (H, V)      bf16
    bfc_ref  : (1, V)      f32
    out_ref  : (Tt*Bp, V)  f32   logits block (lane-dense slab)
    scratch  : gx (Tt*Bp,4H) f32, hout (Tt*Bp,H) bf16, h/c (Bp,H) f32 (persist across chunks).
    """
    Bp, H = h0_ref.shape
    Tt = x_ref.shape[0] // Bp
    chunk_t0 = pl.program_id(0) * Tt

    # Initialize the carried recurrent state on the first chunk only.
    @pl.when(pl.program_id(0) == 0)
    def _():
        h_scr[...] = h0_ref[...]
        c_scr[...] = c0_ref[...]

    # ---- LayerNorm over the embedding dim for the whole chunk (f32 statistics) ----
    x = x_ref[...].astype(jnp.float32)                          # (Tt*Bp, E)
    mean = jnp.mean(x, axis=-1, keepdims=True)
    xc = x - mean
    var = jnp.mean(xc * xc, axis=-1, keepdims=True)
    xn = xc * lax.rsqrt(var + LN_EPS) * gamma_ref[...] + beta_ref[...]

    # ---- hoisted input projection: one (Tt*Bp, E) x (E, 4H) MXU matmul for the chunk ----
    gx_scr[...] = jnp.dot(xn.astype(jnp.bfloat16), wih_ref[...],
                          preferred_element_type=jnp.float32) + b_ref[...]

    whh = whh_ref[...]                                          # (H, 4H) bf16
    lens = lens_ref[...]                                        # (Bp, 1)  i32

    def step(t, carry):
        h, c = carry                                            # (Bp, H) f32, live in vregs
        row = pl.multiple_of(t * Bp, Bp)                        # Bp % 8 == 0 -> aligned slices
        # recurrent projection only: (Bp, H) x (H, 4H)
        gates = gx_scr[pl.ds(row, Bp), :] + jnp.dot(
            h.astype(jnp.bfloat16), whh, preferred_element_type=jnp.float32)
        # gate columns are (i, f, o, g): one wide sigmoid, one tanh (fatter EUP ops)
        sig = jax.nn.sigmoid(gates[:, :3 * H])
        g_g = jnp.tanh(gates[:, 3 * H:])
        i_g, f_g, o_g = sig[:, 0 * H:1 * H], sig[:, 1 * H:2 * H], sig[:, 2 * H:3 * H]
        c_new = f_g * c + i_g * g_g
        h_new = o_g * jnp.tanh(c_new)
        # packed-sequence validity for this (global) timestep
        m = lens > (chunk_t0 + t)                               # (Bp, 1) bool
        # fold the output mask into the per-step bf16 store (no chunk-wide mask pass later)
        hout_scr[pl.ds(row, Bp), :] = jnp.where(m, h_new, 0.0).astype(jnp.bfloat16)
        # freeze state past the sequence length (single vselect each)
        return jnp.where(m, h_new, h), jnp.where(m, c_new, c)

    # Fully unroll short chunks so loads/stores of step t+1 hide the serial latency of step t.
    h_fin, c_fin = lax.fori_loop(0, Tt, step, (h_scr[...], c_scr[...]),
                                 unroll=Tt if Tt <= 16 else 8)
    h_scr[...] = h_fin
    c_scr[...] = c_fin

    # ---- hoisted fc head: one (Tt*Bp, H) x (H, V) matmul into a lane-dense output block ----
    out_ref[...] = jnp.dot(hout_scr[...], wfc_ref[...],
                           preferred_element_type=jnp.float32) + bfc_ref[...]


def _permute_gates(w, H):
    """Permute gate columns (last dim) from PyTorch order (i, f, g, o) to (i, f, o, g)."""
    i, f, g, o = (w[..., k * H:(k + 1) * H] for k in range(4))
    return jnp.concatenate([i, f, o, g], axis=-1)


def _vmem_bytes_estimate(rows, Bp, E, H, V):
    """Rough VMEM footprint (bytes) for a chunk with `rows = Tt*Bp` (default double buffering)."""
    bf, f32 = 2, 4
    stream = 2 * rows * E * bf + 2 * rows * V * f32             # pipelined x in + logits out
    resident = 2 * (Bp * 128 * f32                              # lens (lane-padded)
                    + 2 * 8 * E * f32                           # ln gamma / beta (sublane-padded)
                    + (E + H) * 4 * H * bf                      # w_ih + w_hh
                    + 8 * 4 * H * f32                           # b
                    + 2 * Bp * H * f32                          # h0, c0
                    + H * V * bf + 8 * V * f32)                 # w_fc, b_fc
    scratch = rows * 4 * H * f32 + rows * H * bf + 2 * Bp * H * f32
    return stream + resident + scratch


def _pick_time_chunk(T, Bp, E, H, V, budget_bytes):
    """Largest Tt dividing T whose chunk fits the VMEM budget (often Tt == T)."""
    best = 1
    for cand in range(1, T + 1):
        if T % cand == 0 and _vmem_bytes_estimate(cand * Bp, Bp, E, H, V) <= budget_bytes:
            best = cand
    return best


def lstm_decoder_packed(token_ids, memory, params, *, vmem_budget_bytes=36 * 1024 * 1024):
    """token_ids: (B, T) int32 with trailing 0-padding; memory = (h0, c0), each (1, B, H)."""
    h0, c0 = memory
    h0 = h0[0].astype(jnp.float32)
    c0 = c0[0].astype(jnp.float32)
    B, T = token_ids.shape
    E = params["embedding"].shape[1]
    H = h0.shape[-1]
    V = params["w_fc"].shape[-1]

    # ---- pad the batch to a sublane multiple; pad rows get len == 0 and are masked out ----
    Bp = -(-B // _SUBLANE) * _SUBLANE
    pad = Bp - B
    ids_p = jnp.pad(token_ids, ((0, pad), (0, 0)))
    h0p = jnp.pad(h0, ((0, pad), (0, 0)))
    c0p = jnp.pad(c0, ((0, pad), (0, 0)))

    # glue: gather the embedding directly time-major; stream as bf16 (LN stats stay f32 in-kernel)
    # TODO(synk): at large T*B*E, move this gather into the kernel (scalar-prefetched token ids /
    # pl.Element row BlockSpec) to avoid materializing the activation slab in HBM.
    x2d = jnp.take(params["embedding"], ids_p.T, axis=0).reshape(T * Bp, E).astype(jnp.bfloat16)
    # TODO(synk): like get_non_pad_lens, this assumes id 0 only appears as trailing padding.
    lens2d = (T - jnp.sum(ids_p == 0, axis=-1)).astype(jnp.int32).reshape(Bp, 1)

    # bf16 MXU operands; gate columns permuted (i,f,g,o) -> (i,f,o,g) once at trace time.
    wih = _permute_gates(params["w_ih"], H).astype(jnp.bfloat16)
    whh = _permute_gates(params["w_hh"], H).astype(jnp.bfloat16)
    b = _permute_gates(params["b"], H).astype(jnp.float32)
    wfc = params["w_fc"].astype(jnp.bfloat16)
    bfc = params["b_fc"].astype(jnp.float32)
    gamma = params["ln_gamma"].astype(jnp.float32)
    beta = params["ln_beta"].astype(jnp.float32)

    Tt = _pick_time_chunk(T, Bp, E, H, V, vmem_budget_bytes)
    n_chunks = T // Tt
    rows = Tt * Bp
    est = _vmem_bytes_estimate(rows, Bp, E, H, V)
    vmem_limit = int(min(max(est * 5 // 4 + (2 << 20), 8 << 20), 48 << 20))

    const = lambda t: (0, 0)
    # TODO(synk): v7x at realistic vocab sizes: single-buffer the resident weights
    # (pipeline_mode=pl.Buffered(1)) and tile the fc head over V with a second grid axis;
    # unnecessary at these sizes.
    grid_spec = pltpu.PrefetchScalarGridSpec(
        num_scalar_prefetch=0,
        grid=(n_chunks,),
        in_specs=[
            pl.BlockSpec((rows, E), lambda t: (t, 0)),     # x (bf16, pipelined per chunk)
            pl.BlockSpec((Bp, 1), const),                  # lens       (resident, tiny)
            pl.BlockSpec((1, E), const),                   # ln gamma   (resident)
            pl.BlockSpec((1, E), const),                   # ln beta    (resident)
            pl.BlockSpec((E, 4 * H), const),               # w_ih       (resident)
            pl.BlockSpec((H, 4 * H), const),               # w_hh       (resident)
            pl.BlockSpec((1, 4 * H), const),               # b          (resident)
            pl.BlockSpec((Bp, H), const),                  # h0         (resident)
            pl.BlockSpec((Bp, H), const),                  # c0         (resident)
            pl.BlockSpec((H, V), const),                   # w_fc       (resident)
            pl.BlockSpec((1, V), const),                   # b_fc       (resident)
        ],
        out_specs=pl.BlockSpec((rows, V), lambda t: (t, 0)),
        scratch_shapes=[
            pltpu.VMEM((rows, 4 * H), jnp.float32),        # hoisted input-projection gates
            pltpu.VMEM((rows, H), jnp.bfloat16),           # per-step (masked) hidden outputs
            pltpu.VMEM((Bp, H), jnp.float32),              # h state (persists across chunks)
            pltpu.VMEM((Bp, H), jnp.float32),              # c state (persists across chunks)
        ],
    )
    out2d = pl.pallas_call(
        lstm_decoder_kernel,
        out_shape=jax.ShapeDtypeStruct((T * Bp, V), jnp.float32),
        grid_spec=grid_spec,
        compiler_params=pltpu.CompilerParams(
            # serial recurrence over time chunks; h/c carried in scratch requires this axis
            # to stay "arbitrary" (never "parallel" / core-split without per-core state).
            dimension_semantics=("arbitrary",),
            vmem_limit_bytes=vmem_limit,
        ),
    )(x2d, lens2d, gamma, beta, wih, whh, b, h0p, c0p, wfc, bfc)

    # TODO(synk): v7x with B >= 16: add a leading batch-parallel grid axis (2 TensorCores) with
    # per-core h/c/gx/hout scratch; at B=4 the per-core work would be sub-vreg.
    out = out2d.reshape(T, Bp, V)[:, :B, :]
    # TODO(synk): v5e — if the consumer accepts time-major (T, B, V) or bf16 logits, return the
    # kernel layout directly and skip this HBM round trip on the largest array.
    return jnp.transpose(out, (1, 0, 2))                       # (B, T, V), batch_first


def reference_jax(token_ids, memory, params, matmul_dtype=jnp.float32, x_dtype=jnp.float32):
    """Pure-JAX reference. matmul_dtype/x_dtype=bf16 mirrors the kernel's operand precision."""
    h0, c0 = memory
    h, c = h0[0], c0[0]
    B, T = token_ids.shape
    H = h.shape[-1]
    wih = params["w_ih"].astype(matmul_dtype)
    whh = params["w_hh"].astype(matmul_dtype)
    wfc = params["w_fc"].astype(matmul_dtype)

    emb = params["embedding"][token_ids].astype(x_dtype).astype(jnp.float32)   # (B, T, E)
    mean = emb.mean(-1, keepdims=True)
    var = ((emb - mean) ** 2).mean(-1, keepdims=True)
    xn = (emb - mean) * lax.rsqrt(var + LN_EPS) * params["ln_gamma"][0] + params["ln_beta"][0]
    lens = T - jnp.sum(token_ids == 0, axis=-1)
    mask = (jnp.arange(T)[:, None] < lens[None, :]).astype(jnp.float32)[:, :, None]  # (T,B,1)
    x_t = jnp.transpose(xn, (1, 0, 2))                         # (T, B, E)

    def step(carry, inp):
        h, c = carry
        xt, m = inp
        gates = (jnp.dot(xt.astype(matmul_dtype), wih, preferred_element_type=jnp.float32)
                 + jnp.dot(h.astype(matmul_dtype), whh, preferred_element_type=jnp.float32)
                 + params["b"])
        i_g = jax.nn.sigmoid(gates[:, 0 * H:1 * H])
        f_g = jax.nn.sigmoid(gates[:, 1 * H:2 * H])
        g_g = jnp.tanh(gates[:, 2 * H:3 * H])
        o_g = jax.nn.sigmoid(gates[:, 3 * H:4 * H])
        c_new = f_g * c + i_g * g_g
        h_new = o_g * jnp.tanh(c_new)
        h2 = jnp.where(m > 0, h_new, h)
        c2 = jnp.where(m > 0, c_new, c)
        return (h2, c2), (m * h_new).astype(matmul_dtype)

    _, outs = lax.scan(step, (h, c), (x_t, mask))              # (T, B, H)
    logits = (jnp.dot(outs.reshape(T * B, H), wfc,
                      preferred_element_type=jnp.float32).reshape(T, B, -1)
              + params["b_fc"])                                # (T, B, V)
    return jnp.transpose(logits, (1, 0, 2))


def make_params(key, vocab_size, emb_dim, hidden_size):
    ks = jax.random.split(key, 8)
    emb = jax.random.normal(ks[0], (vocab_size, emb_dim), jnp.float32) * 0.1
    emb = emb.at[0].set(0.0)                                   # padding_idx = 0
    return {
        "embedding": emb,
        "ln_gamma": 1.0 + 0.1 * jax.random.normal(ks[1], (1, emb_dim), jnp.float32),
        "ln_beta": 0.1 * jax.random.normal(ks[2], (1, emb_dim), jnp.float32),
        "w_ih": 0.1 * jax.random.normal(ks[3], (emb_dim, 4 * hidden_size), jnp.float32),
        "w_hh": 0.1 * jax.random.normal(ks[4], (hidden_size, 4 * hidden_size), jnp.float32),
        "b": 0.1 * jax.random.normal(ks[5], (1, 4 * hidden_size), jnp.float32),
        "w_fc": 0.1 * jax.random.normal(ks[6], (hidden_size, vocab_size), jnp.float32),
        "b_fc": 0.1 * jax.random.normal(ks[7], (1, vocab_size), jnp.float32),
    }


if __name__ == "__main__":
    # TODO(synk): only num_layers=1 LSTM is implemented (module default); multi-layer would
    # stack the same recurrence.
    B, T = 4, 16
    vocab_size, emb_dim, hidden_size = 256, 128, 128   # E, H, V multiples of 128 -> lane-aligned

    key = jax.random.PRNGKey(0)
    k_param, k_ids, k_h, k_c = jax.random.split(key, 4)
    params = make_params(k_param, vocab_size, emb_dim, hidden_size)

    # token ids with trailing padding (id 0), as required by pack_padded_sequence
    lens = jnp.array([16, 11, 8, 3], dtype=jnp.int32)
    ids = jax.random.randint(k_ids, (B, T), 1, vocab_size, dtype=jnp.int32)
    ids = jnp.where(jnp.arange(T)[None, :] < lens[:, None], ids, 0)

    h0 = 0.1 * jax.random.normal(k_h, (1, B, hidden_size), jnp.float32)
    c0 = 0.1 * jax.random.normal(k_c, (1, B, hidden_size), jnp.float32)

    out = lstm_decoder_packed(ids, (h0, c0), params)
    out = jax.block_until_ready(out)
    assert out.shape == (B, T, vocab_size), out.shape

    # tight check vs. a reference that mirrors the kernel's bf16 operand precision
    ref_bf16 = reference_jax(ids, (h0, c0), params,
                             matmul_dtype=jnp.bfloat16, x_dtype=jnp.bfloat16)
    err_bf16 = float(jnp.max(jnp.abs(out - ref_bf16)))
    assert jnp.allclose(out, ref_bf16, atol=5e-3, rtol=5e-3), err_bf16

    # loose sanity check vs. the full-f32 module semantics
    ref_f32 = reference_jax(ids, (h0, c0), params)
    err_f32 = float(jnp.max(jnp.abs(out - ref_f32)))
    assert jnp.allclose(out, ref_f32, atol=5e-2, rtol=5e-2), err_f32

    print("KERNEL_OK")
</pallas_src>

<mosaic_0001>
module attributes {stable_mosaic.version = 11 : i64} {
  func.func @lstm_decoder_kernel(%arg0: i32, %arg1: memref<128x128xbf16, #tpu.memory_space<vmem>>, %arg2: memref<8x1xi32, #tpu.memory_space<vmem>>, %arg3: memref<1x128xf32, #tpu.memory_space<vmem>>, %arg4: memref<1x128xf32, #tpu.memory_space<vmem>>, %arg5: memref<128x512xbf16, #tpu.memory_space<vmem>>, %arg6: memref<128x512xbf16, #tpu.memory_space<vmem>>, %arg7: memref<1x512xf32, #tpu.memory_space<vmem>>, %arg8: memref<8x128xf32, #tpu.memory_space<vmem>>, %arg9: memref<8x128xf32, #tpu.memory_space<vmem>>, %arg10: memref<128x256xbf16, #tpu.memory_space<vmem>>, %arg11: memref<1x256xf32, #tpu.memory_space<vmem>>, %arg12: memref<128x256xf32, #tpu.memory_space<vmem>>, %arg13: memref<128x512xf32, #tpu.memory_space<vmem>>, %arg14: memref<128x128xbf16, #tpu.memory_space<vmem>>, %arg15: memref<8x128xf32, #tpu.memory_space<vmem>>, %arg16: memref<8x128xf32, #tpu.memory_space<vmem>>) attributes {dimension_semantics = [#tpu.dimension_semantics<arbitrary>], iteration_bounds = array<i64: 1>, scalar_prefetch = 0 : i64, scratch_operands = 4 : i64, tpu.core_type = #tpu.core_type<tc>, window_params = [{transform_indices = @transform_0, window_bounds = array<i64: 128, 128>}, {pipeline_mode = #tpu.pipeline_mode<synchronous>, transform_indices = @transform_1, window_bounds = array<i64: 8, 1>}, {pipeline_mode = #tpu.pipeline_mode<synchronous>, transform_indices = @transform_2, window_bounds = array<i64: 1, 128>}, {pipeline_mode = #tpu.pipeline_mode<synchronous>, transform_indices = @transform_3, window_bounds = array<i64: 1, 128>}, {pipeline_mode = #tpu.pipeline_mode<synchronous>, transform_indices = @transform_4, window_bounds = array<i64: 128, 512>}, {pipeline_mode = #tpu.pipeline_mode<synchronous>, transform_indices = @transform_5, window_bounds = array<i64: 128, 512>}, {pipeline_mode = #tpu.pipeline_mode<synchronous>, transform_indices = @transform_6, window_bounds = array<i64: 1, 512>}, {pipeline_mode = #tpu.pipeline_mode<synchronous>, transform_indices = @transform_7, window_bounds = array<i64: 8, 128>}, {pipeline_mode = #tpu.pipeline_mode<synchronous>, transform_indices = @transform_8, window_bounds = array<i64: 8, 128>}, {pipeline_mode = #tpu.pipeline_mode<synchronous>, transform_indices = @transform_9, window_bounds = array<i64: 128, 256>}, {pipeline_mode = #tpu.pipeline_mode<synchronous>, transform_indices = @transform_10, window_bounds = array<i64: 1, 256>}, {transform_indices = @transform_11, window_bounds = array<i64: 128, 256>}]} {
    %c16_i32 = arith.constant 16 : i32
    %0 = arith.muli %arg0, %c16_i32 : i32
    %c0_i32 = arith.constant 0 : i32
    %1 = arith.cmpi eq, %arg0, %c0_i32 : i32
    %2 = arith.extui %1 : i1 to i32
    %c0_i32_0 = arith.constant 0 : i32
    %3 = arith.cmpi ne, %2, %c0_i32_0 : i32
    scf.if %3 {
      %c0_136 = arith.constant 0 : index
      %c0_137 = arith.constant 0 : index
      %672 = vector.load %arg8[%c0_136, %c0_137] : memref<8x128xf32, #tpu.memory_space<vmem>>, vector<8x128xf32>
      %c0_138 = arith.constant 0 : index
      %c0_139 = arith.constant 0 : index
      %673 = vector.load %arg15[%c0_138, %c0_139] : memref<8x128xf32, #tpu.memory_space<vmem>>, vector<8x128xf32>
      tpu.vector_store %arg15[%c0_138, %c0_139], %672 {strides = array<i32>} : memref<8x128xf32, #tpu.memory_space<vmem>>, vector<8x128xf32>,
      %c0_140 = arith.constant 0 : index
      %c0_141 = arith.constant 0 : index
      %674 = vector.load %arg9[%c0_140, %c0_141] : memref<8x128xf32, #tpu.memory_space<vmem>>, vector<8x128xf32>
      %c0_142 = arith.constant 0 : index
      %c0_143 = arith.constant 0 : index
      %675 = vector.load %arg16[%c0_142, %c0_143] : memref<8x128xf32, #tpu.memory_space<vmem>>, vector<8x128xf32>
      tpu.vector_store %arg16[%c0_142, %c0_143], %674 {strides = array<i32>} : memref<8x128xf32, #tpu.memory_space<vmem>>, vector<8x128xf32>,
    } else {
    }
    %c0 = arith.constant 0 : index
    %c0_1 = arith.constant 0 : index
    %4 = vector.load %arg1[%c0, %c0_1] : memref<128x128xbf16, #tpu.memory_space<vmem>>, vector<128x128xbf16>
    %5 = arith.extf %4 : vector<128x128xbf16> to vector<128x128xf32>
    %cst = arith.constant dense<0.000000e+00> : vector<128xf32>
    %6 = vector.multi_reduction <add>, %5, %cst [1] : vector<128x128xf32> to vector<128xf32>
    %7 = vector.shape_cast %6 : vector<128xf32> to vector<128x1xf32>
    %cst_2 = arith.constant 1.280000e+02 : f32
    %8 = vector.broadcast %cst_2 : f32 to vector<128x1xf32>
    %9 = arith.divf %7, %8 : vector<128x1xf32>
    %10 = vector.broadcast %9 : vector<128x1xf32> to vector<128x128xf32>
    %11 = arith.subf %5, %10 : vector<128x128xf32>
    %12 = arith.mulf %11, %11 : vector<128x128xf32>
    %cst_3 = arith.constant dense<0.000000e+00> : vector<128xf32>
    %13 = vector.multi_reduction <add>, %12, %cst_3 [1] : vector<128x128xf32> to vector<128xf32>
    %14 = vector.shape_cast %13 : vector<128xf32> to vector<128x1xf32>
    %cst_4 = arith.constant 1.280000e+02 : f32
    %15 = vector.broadcast %cst_4 : f32 to vector<128x1xf32>
    %16 = arith.divf %14, %15 : vector<128x1xf32>
    %cst_5 = arith.constant 9.99999974E-6 : f32
    %17 = vector.broadcast %cst_5 : f32 to vector<128x1xf32>
    %18 = arith.addf %16, %17 : vector<128x1xf32>
    %19 = math.rsqrt %18 : vector<128x1xf32>
    %20 = vector.broadcast %19 : vector<128x1xf32> to vector<128x128xf32>
    %21 = arith.mulf %11, %20 : vector<128x128xf32>
    %c0_6 = arith.constant 0 : index
    %c0_7 = arith.constant 0 : index
    %22 = vector.load %arg3[%c0_6, %c0_7] : memref<1x128xf32, #tpu.memory_space<vmem>>, vector<1x128xf32>
    %23 = vector.broadcast %22 : vector<1x128xf32> to vector<128x128xf32>
    %24 = arith.mulf %21, %23 : vector<128x128xf32>
    %c0_8 = arith.constant 0 : index
    %c0_9 = arith.constant 0 : index
    %25 = vector.load %arg4[%c0_8, %c0_9] : memref<1x128xf32, #tpu.memory_space<vmem>>, vector<1x128xf32>
    %26 = vector.broadcast %25 : vector<1x128xf32> to vector<128x128xf32>
    %27 = arith.addf %24, %26 : vector<128x128xf32>
    %28 = arith.truncf %27 : vector<128x128xf32> to vector<128x128xbf16>
    %c0_10 = arith.constant 0 : index
    %c0_11 = arith.constant 0 : index
    %29 = vector.load %arg5[%c0_10, %c0_11] : memref<128x512xbf16, #tpu.memory_space<vmem>>, vector<128x512xbf16>
    %cst_12 = arith.constant dense<0.000000e+00> : vector<128x512xf32>
    %30 = tpu.matmul %28, %29, %cst_12 {dimension_numbers = #tpu.dot_dimension_numbers<[1], [0], [0], [1], [0, 0, 1, 1], [], []>} : vector<128x128xbf16>, vector<128x512xbf16>, vector<128x512xf32> -> vector<128x512xf32>
    %c0_13 = arith.constant 0 : index
    %c0_14 = arith.constant 0 : index
    %31 = vector.load %arg7[%c0_13, %c0_14] : memref<1x512xf32, #tpu.memory_space<vmem>>, vector<1x512xf32>
    %32 = vector.broadcast %31 : vector<1x512xf32> to vector<128x512xf32>
    %33 = arith.addf %30, %32 : vector<128x512xf32>
    %c0_15 = arith.constant 0 : index
    %c0_16 = arith.constant 0 : index
    %34 = vector.load %arg13[%c0_15, %c0_16] : memref<128x512xf32, #tpu.memory_space<vmem>>, vector<128x512xf32>
    tpu.vector_store %arg13[%c0_15, %c0_16], %33 {strides = array<i32>} : memref<128x512xf32, #tpu.memory_space<vmem>>, vector<128x512xf32>,
    %c0_17 = arith.constant 0 : index
    %c0_18 = arith.constant 0 : index
    %35 = vector.load %arg6[%c0_17, %c0_18] : memref<128x512xbf16, #tpu.memory_space<vmem>>, vector<128x512xbf16>
    %c0_19 = arith.constant 0 : index
    %c0_20 = arith.constant 0 : index
    %36 = vector.load %arg2[%c0_19, %c0_20] : memref<8x1xi32, #tpu.memory_space<vmem>>, vector<8x1xi32>
    %c0_21 = arith.constant 0 : index
    %c0_22 = arith.constant 0 : index
    %37 = vector.load %arg15[%c0_21, %c0_22] : memref<8x128xf32, #tpu.memory_space<vmem>>, vector<8x128xf32>
    %c0_23 = arith.constant 0 : index
    %c0_24 = arith.constant 0 : index
    %38 = vector.load %arg16[%c0_23, %c0_24] : memref<8x128xf32, #tpu.memory_space<vmem>>, vector<8x128xf32>
    %c0_i32_25 = arith.constant 0 : i32
    %c8_i32 = arith.constant 8 : i32
    %39 = arith.muli %c0_i32_25, %c8_i32 : i32
    %40 = tpu.assume_multiple %39, 8 : i32
    %41 = arith.index_cast %40 : i32 to index
    %c0_26 = arith.constant 0 : index
    %42 = vector.load %arg13[%41, %c0_26] : memref<128x512xf32, #tpu.memory_space<vmem>>, vector<8x512xf32>
    %43 = arith.truncf %37 : vector<8x128xf32> to vector<8x128xbf16>
    %cst_27 = arith.constant dense<0.000000e+00> : vector<8x512xf32>
    %44 = tpu.matmul %43, %35, %cst_27 {dimension_numbers = #tpu.dot_dimension_numbers<[1], [0], [0], [1], [0, 0, 1, 1], [], []>} : vector<8x128xbf16>, vector<128x512xbf16>, vector<8x512xf32> -> vector<8x512xf32>
    %45 = arith.addf %42, %44 : vector<8x512xf32>
    %46 = vector.extract_strided_slice %45 {offsets = [0, 0], sizes = [8, 384], strides = [1, 1]} : vector<8x512xf32> to vector<8x384xf32>
    %47 = arith.negf %46 : vector<8x384xf32>
    %48 = math.exp %47 : vector<8x384xf32>
    %cst_28 = arith.constant 1.000000e+00 : f32
    %49 = vector.broadcast %cst_28 : f32 to vector<8x384xf32>
    %50 = arith.addf %49, %48 : vector<8x384xf32>
    %51 = arith.divf %49, %50 : vector<8x384xf32>
    %52 = vector.extract_strided_slice %45 {offsets = [0, 384], sizes = [8, 128], strides = [1, 1]} : vector<8x512xf32> to vector<8x128xf32>
    %53 = math.tanh %52 : vector<8x128xf32>
    %54 = vector.extract_strided_slice %51 {offsets = [0, 0], sizes = [8, 128], strides = [1, 1]} : vector<8x384xf32> to vector<8x128xf32>
    %55 = vector.extract_strided_slice %51 {offsets = [0, 128], sizes = [8, 128], strides = [1, 1]} : vector<8x384xf32> to vector<8x128xf32>
    %56 = vector.extract_strided_slice %51 {offsets = [0, 256], sizes = [8, 128], strides = [1, 1]} : vector<8x384xf32> to vector<8x128xf32>
    %57 = arith.mulf %55, %38 : vector<8x128xf32>
    %58 = arith.mulf %54, %53 : vector<8x128xf32>
    %59 = arith.addf %57, %58 : vector<8x128xf32>
    %60 = math.tanh %59 : vector<8x128xf32>
    %61 = arith.mulf %56, %60 : vector<8x128xf32>
    %62 = arith.addi %0, %c0_i32_25 : i32
    %63 = vector.broadcast %62 : i32 to vector<8x1xi32>
    %64 = arith.cmpi sgt, %36, %63 : vector<8x1xi32>
    %cst_29 = arith.constant 0.000000e+00 : f32
    %65 = vector.shape_cast %64 : vector<8x1xi1> to vector<8x1xi1>
    %66 = vector.broadcast %65 : vector<8x1xi1> to vector<8x128xi1>
    %67 = vector.broadcast %cst_29 : f32 to vector<8x128xf32>
    %68 = arith.select %66, %61, %67 : vector<8x128xi1>, vector<8x128xf32>
    %69 = arith.truncf %68 : vector<8x128xf32> to vector<8x128xbf16>
    %70 = arith.index_cast %40 : i32 to index
    %c0_30 = arith.constant 0 : index
    %71 = vector.load %arg14[%70, %c0_30] : memref<128x128xbf16, #tpu.memory_space<vmem>>, vector<8x128xbf16>
    tpu.vector_store %arg14[%70, %c0_30], %69 {strides = array<i32>} : memref<128x128xbf16, #tpu.memory_space<vmem>>, vector<8x128xbf16>,
    %72 = vector.shape_cast %64 : vector<8x1xi1> to vector<8x1xi1>
    %73 = vector.broadcast %72 : vector<8x1xi1> to vector<8x128xi1>
    %74 = arith.select %73, %61, %37 : vector<8x128xi1>, vector<8x128xf32>
    %75 = vector.shape_cast %64 : vector<8x1xi1> to vector<8x1xi1>
    %76 = vector.broadcast %75 : vector<8x1xi1> to vector<8x128xi1>
    %77 = arith.select %76, %59, %38 : vector<8x128xi1>, vector<8x128xf32>
    %c1_i32 = arith.constant 1 : i32
    %c8_i32_31 = arith.constant 8 : i32
    %78 = arith.muli %c1_i32, %c8_i32_31 : i32
    %79 = tpu.assume_multiple %78, 8 : i32
    %80 = arith.index_cast %79 : i32 to index
    %c0_32 = arith.constant 0 : index
    %81 = vector.load %arg13[%80, %c0_32] : memref<128x512xf32, #tpu.memory_space<vmem>>, vector<8x512xf32>
    %82 = arith.truncf %74 : vector<8x128xf32> to vector<8x128xbf16>
    %cst_33 = arith.constant dense<0.000000e+00> : vector<8x512xf32>
    %83 = tpu.matmul %82, %35, %cst_33 {dimension_numbers = #tpu.dot_dimension_numbers<[1], [0], [0], [1], [0, 0, 1, 1], [], []>} : vector<8x128xbf16>, vector<128x512xbf16>, vector<8x512xf32> -> vector<8x512xf32>
    %84 = arith.addf %81, %83 : vector<8x512xf32>
    %85 = vector.extract_strided_slice %84 {offsets = [0, 0], sizes = [8, 384], strides = [1, 1]} : vector<8x512xf32> to vector<8x384xf32>
    %86 = arith.negf %85 : vector<8x384xf32>
    %87 = math.exp %86 : vector<8x384xf32>
    %cst_34 = arith.constant 1.000000e+00 : f32
    %88 = vector.broadcast %cst_34 : f32 to vector<8x384xf32>
    %89 = arith.addf %88, %87 : vector<8x384xf32>
    %90 = arith.divf %88, %89 : vector<8x384xf32>
    %91 = vector.extract_strided_slice %84 {offsets = [0, 384], sizes = [8, 128], strides = [1, 1]} : vector<8x512xf32> to vector<8x128xf32>
    %92 = math.tanh %91 : vector<8x128xf32>
    %93 = vector.extract_strided_slice %90 {offsets = [0, 0], sizes = [8, 128], strides = [1, 1]} : vector<8x384xf32> to vector<8x128xf32>
    %94 = vector.extract_strided_slice %90 {offsets = [0, 128], sizes = [8, 128], strides = [1, 1]} : vector<8x384xf32> to vector<8x128xf32>
    %95 = vector.extract_strided_slice %90 {offsets = [0, 256], sizes = [8, 128], strides = [1, 1]} : vector<8x384xf32> to vector<8x128xf32>
    %96 = arith.mulf %94, %77 : vector<8x128xf32>
    %97 = arith.mulf %93, %92 : vector<8x128xf32>
    %98 = arith.addf %96, %97 : vector<8x128xf32>
    %99 = math.tanh %98 : vector<8x128xf32>
    %100 = arith.mulf %95, %99 : vector<8x128xf32>
    %101 = arith.addi %0, %c1_i32 : i32
    %102 = vector.broadcast %101 : i32 to vector<8x1xi32>
    %103 = arith.cmpi sgt, %36, %102 : vector<8x1xi32>
    %cst_35 = arith.constant 0.000000e+00 : f32
    %104 = vector.shape_cast %103 : vector<8x1xi1> to vector<8x1xi1>
    %105 = vector.broadcast %104 : vector<8x1xi1> to vector<8x128xi1>
    %106 = vector.broadcast %cst_35 : f32 to vector<8x128xf32>
    %107 = arith.select %105, %100, %106 : vector<8x128xi1>, vector<8x128xf32>
    %108 = arith.truncf %107 : vector<8x128xf32> to vector<8x128xbf16>
    %109 = arith.index_cast %79 : i32 to index
    %c0_36 = arith.constant 0 : index
    %110 = vector.load %arg14[%109, %c0_36] : memref<128x128xbf16, #tpu.memory_space<vmem>>, vector<8x128xbf16>
    tpu.vector_store %arg14[%109, %c0_36], %108 {strides = array<i32>} : memref<128x128xbf16, #tpu.memory_space<vmem>>, vector<8x128xbf16>,
    %111 = vector.shape_cast %103 : vector<8x1xi1> to vector<8x1xi1>
    %112 = vector.broadcast %111 : vector<8x1xi1> to vector<8x128xi1>
    %113 = arith.select %112, %100, %74 : vector<8x128xi1>, vector<8x128xf32>
    %114 = vector.shape_cast %103 : vector<8x1xi1> to vector<8x1xi1>
    %115 = vector.broadcast %114 : vector<8x1xi1> to vector<8x128xi1>
    %116 = arith.select %115, %98, %77 : vector<8x128xi1>, vector<8x128xf32>
    %c2_i32 = arith.constant 2 : i32
    %c8_i32_37 = arith.constant 8 : i32
    %117 = arith.muli %c2_i32, %c8_i32_37 : i32
    %118 = tpu.assume_multiple %117, 8 : i32
    %119 = arith.index_cast %118 : i32 to index
    %c0_38 = arith.constant 0 : index
    %120 = vector.load %arg13[%119, %c0_38] : memref<128x512xf32, #tpu.memory_space<vmem>>, vector<8x512xf32>
    %121 = arith.truncf %113 : vector<8x128xf32> to vector<8x128xbf16>
    %cst_39 = arith.constant dense<0.000000e+00> : vector<8x512xf32>
    %122 = tpu.matmul %121, %35, %cst_39 {dimension_numbers = #tpu.dot_dimension_numbers<[1], [0], [0], [1], [0, 0, 1, 1], [], []>} : vector<8x128xbf16>, vector<128x512xbf16>, vector<8x512xf32> -> vector<8x512xf32>
    %123 = arith.addf %120, %122 : vector<8x512xf32>
    %124 = vector.extract_strided_slice %123 {offsets = [0, 0], sizes = [8, 384], strides = [1, 1]} : vector<8x512xf32> to vector<8x384xf32>
    %125 = arith.negf %124 : vector<8x384xf32>
    %126 = math.exp %125 : vector<8x384xf32>
    %cst_40 = arith.constant 1.000000e+00 : f32
    %127 = vector.broadcast %cst_40 : f32 to vector<8x384xf32>
    %128 = arith.addf %127, %126 : vector<8x384xf32>
    %129 = arith.divf %127, %128 : vector<8x384xf32>
    %130 = vector.extract_strided_slice %123 {offsets = [0, 384], sizes = [8, 128], strides = [1, 1]} : vector<8x512xf32> to vector<8x128xf32>
    %131 = math.tanh %130 : vector<8x128xf32>
    %132 = vector.extract_strided_slice %129 {offsets = [0, 0], sizes = [8, 128], strides = [1, 1]} : vector<8x384xf32> to vector<8x128xf32>
    %133 = vector.extract_strided_slice %129 {offsets = [0, 128], sizes = [8, 128], strides = [1, 1]} : vector<8x384xf32> to vector<8x128xf32>
    %134 = vector.extract_strided_slice %129 {offsets = [0, 256], sizes = [8, 128], strides = [1, 1]} : vector<8x384xf32> to vector<8x128xf32>
    %135 = arith.mulf %133, %116 : vector<8x128xf32>
    %136 = arith.mulf %132, %131 : vector<8x128xf32>
    %137 = arith.addf %135, %136 : vector<8x128xf32>
    %138 = math.tanh %137 : vector<8x128xf32>
    %139 = arith.mulf %134, %138 : vector<8x128xf32>
    %140 = arith.addi %0, %c2_i32 : i32
    %141 = vector.broadcast %140 : i32 to vector<8x1xi32>
    %142 = arith.cmpi sgt, %36, %141 : vector<8x1xi32>
    %cst_41 = arith.constant 0.000000e+00 : f32
    %143 = vector.shape_cast %142 : vector<8x1xi1> to vector<8x1xi1>
    %144 = vector.broadcast %143 : vector<8x1xi1> to vector<8x128xi1>
    %145 = vector.broadcast %cst_41 : f32 to vector<8x128xf32>
    %146 = arith.select %144, %139, %145 : vector<8x128xi1>, vector<8x128xf32>
    %147 = arith.truncf %146 : vector<8x128xf32> to vector<8x128xbf16>
    %148 = arith.index_cast %118 : i32 to index
    %c0_42 = arith.constant 0 : index
    %149 = vector.load %arg14[%148, %c0_42] : memref<128x128xbf16, #tpu.memory_space<vmem>>, vector<8x128xbf16>
    tpu.vector_store %arg14[%148, %c0_42], %147 {strides = array<i32>} : memref<128x128xbf16, #tpu.memory_space<vmem>>, vector<8x128xbf16>,
    %150 = vector.shape_cast %142 : vector<8x1xi1> to vector<8x1xi1>
    %151 = vector.broadcast %150 : vector<8x1xi1> to vector<8x128xi1>
    %152 = arith.select %151, %139, %113 : vector<8x128xi1>, vector<8x128xf32>
    %153 = vector.shape_cast %142 : vector<8x1xi1> to vector<8x1xi1>
    %154 = vector.broadcast %153 : vector<8x1xi1> to vector<8x128xi1>
    %155 = arith.select %154, %137, %116 : vector<8x128xi1>, vector<8x128xf32>
    %c3_i32 = arith.constant 3 : i32
    %c8_i32_43 = arith.constant 8 : i32
    %156 = arith.muli %c3_i32, %c8_i32_43 : i32
    %157 = tpu.assume_multiple %156, 8 : i32
    %158 = arith.index_cast %157 : i32 to index
    %c0_44 = arith.constant 0 : index
    %159 = vector.load %arg13[%158, %c0_44] : memref<128x512xf32, #tpu.memory_space<vmem>>, vector<8x512xf32>
    %160 = arith.truncf %152 : vector<8x128xf32> to vector<8x128xbf16>
    %cst_45 = arith.constant dense<0.000000e+00> : vector<8x512xf32>
    %161 = tpu.matmul %160, %35, %cst_45 {dimension_numbers = #tpu.dot_dimension_numbers<[1], [0], [0], [1], [0, 0, 1, 1], [], []>} : vector<8x128xbf16>, vector<128x512xbf16>, vector<8x512xf32> -> vector<8x512xf32>
    %162 = arith.addf %159, %161 : vector<8x512xf32>
    %163 = vector.extract_strided_slice %162 {offsets = [0, 0], sizes = [8, 384], strides = [1, 1]} : vector<8x512xf32> to vector<8x384xf32>
    %164 = arith.negf %163 : vector<8x384xf32>
    %165 = math.exp %164 : vector<8x384xf32>
    %cst_46 = arith.constant 1.000000e+00 : f32
    %166 = vector.broadcast %cst_46 : f32 to vector<8x384xf32>
    %167 = arith.addf %166, %165 : vector<8x384xf32>
    %168 = arith.divf %166, %167 : vector<8x384xf32>
    %169 = vector.extract_strided_slice %162 {offsets = [0, 384], sizes = [8, 128], strides = [1, 1]} : vector<8x512xf32> to vector<8x128xf32>
    %170 = math.tanh %169 : vector<8x128xf32>
    %171 = vector.extract_strided_slice %168 {offsets = [0, 0], sizes = [8, 128], strides = [1, 1]} : vector<8x384xf32> to vector<8x128xf32>
    %172 = vector.extract_strided_slice %168 {offsets = [0, 128], sizes = [8, 128], strides = [1, 1]} : vector<8x384xf32> to vector<8x128xf32>
    %173 = vector.extract_strided_slice %168 {offsets = [0, 256], sizes = [8, 128], strides = [1, 1]} : vector<8x384xf32> to vector<8x128xf32>
    %174 = arith.mulf %172, %155 : vector<8x128xf32>
    %175 = arith.mulf %171, %170 : vector<8x128xf32>
    %176 = arith.addf %174, %175 : vector<8x128xf32>
    %177 = math.tanh %176 : vector<8x128xf32>
    %178 = arith.mulf %173, %177 : vector<8x128xf32>
    %179 = arith.addi %0, %c3_i32 : i32
    %180 = vector.broadcast %179 : i32 to vector<8x1xi32>
    %181 = arith.cmpi sgt, %36, %180 : vector<8x1xi32>
    %cst_47 = arith.constant 0.000000e+00 : f32
    %182 = vector.shape_cast %181 : vector<8x1xi1> to vector<8x1xi1>
    %183 = vector.broadcast %182 : vector<8x1xi1> to vector<8x128xi1>
    %184 = vector.broadcast %cst_47 : f32 to vector<8x128xf32>
    %185 = arith.select %183, %178, %184 : vector<8x128xi1>, vector<8x128xf32>
    %186 = arith.truncf %185 : vector<8x128xf32> to vector<8x128xbf16>
    %187 = arith.index_cast %157 : i32 to index
    %c0_48 = arith.constant 0 : index
    %188 = vector.load %arg14[%187, %c0_48] : memref<128x128xbf16, #tpu.memory_space<vmem>>, vector<8x128xbf16>
    tpu.vector_store %arg14[%187, %c0_48], %186 {strides = array<i32>} : memref<128x128xbf16, #tpu.memory_space<vmem>>, vector<8x128xbf16>,
    %189 = vector.shape_cast %181 : vector<8x1xi1> to vector<8x1xi1>
    %190 = vector.broadcast %189 : vector<8x1xi1> to vector<8x128xi1>
    %191 = arith.select %190, %178, %152 : vector<8x128xi1>, vector<8x128xf32>
    %192 = vector.shape_cast %181 : vector<8x1xi1> to vector<8x1xi1>
    %193 = vector.broadcast %192 : vector<8x1xi1> to vector<8x128xi1>
    %194 = arith.select %193, %176, %155 : vector<8x128xi1>, vector<8x128xf32>
    %c4_i32 = arith.constant 4 : i32
    %c8_i32_49 = arith.constant 8 : i32
    %195 = arith.muli %c4_i32, %c8_i32_49 : i32
    %196 = tpu.assume_multiple %195, 8 : i32
    %197 = arith.index_cast %196 : i32 to index
    %c0_50 = arith.constant 0 : index
    %198 = vector.load %arg13[%197, %c0_50] : memref<128x512xf32, #tpu.memory_space<vmem>>, vector<8x512xf32>
    %199 = arith.truncf %191 : vector<8x128xf32> to vector<8x128xbf16>
    %cst_51 = arith.constant dense<0.000000e+00> : vector<8x512xf32>
    %200 = tpu.matmul %199, %35, %cst_51 {dimension_numbers = #tpu.dot_dimension_numbers<[1], [0], [0], [1], [0, 0, 1, 1], [], []>} : vector<8x128xbf16>, vector<128x512xbf16>, vector<8x512xf32> -> vector<8x512xf32>
    %201 = arith.addf %198, %200 : vector<8x512xf32>
    %202 = vector.extract_strided_slice %201 {offsets = [0, 0], sizes = [8, 384], strides = [1, 1]} : vector<8x512xf32> to vector<8x384xf32>
    %203 = arith.negf %202 : vector<8x384xf32>
    %204 = math.exp %203 : vector<8x384xf32>
    %cst_52 = arith.constant 1.000000e+00 : f32
    %205 = vector.broadcast %cst_52 : f32 to vector<8x384xf32>
    %206 = arith.addf %205, %204 : vector<8x384xf32>
    %207 = arith.divf %205, %206 : vector<8x384xf32>
    %208 = vector.extract_strided_slice %201 {offsets = [0, 384], sizes = [8, 128], strides = [1, 1]} : vector<8x512xf32> to vector<8x128xf32>
    %209 = math.tanh %208 : vector<8x128xf32>
    %210 = vector.extract_strided_slice %207 {offsets = [0, 0], sizes = [8, 128], strides = [1, 1]} : vector<8x384xf32> to vector<8x128xf32>
    %211 = vector.extract_strided_slice %207 {offsets = [0, 128], sizes = [8, 128], strides = [1, 1]} : vector<8x384xf32> to vector<8x128xf32>
    %212 = vector.extract_strided_slice %207 {offsets = [0, 256], sizes = [8, 128], strides = [1, 1]} : vector<8x384xf32> to vector<8x128xf32>
    %213 = arith.mulf %211, %194 : vector<8x128xf32>
    %214 = arith.mulf %210, %209 : vector<8x128xf32>
    %215 = arith.addf %213, %214 : vector<8x128xf32>
    %216 = math.tanh %215 : vector<8x128xf32>
    %217 = arith.mulf %212, %216 : vector<8x128xf32>
    %218 = arith.addi %0, %c4_i32 : i32
    %219 = vector.broadcast %218 : i32 to vector<8x1xi32>
    %220 = arith.cmpi sgt, %36, %219 : vector<8x1xi32>
    %cst_53 = arith.constant 0.000000e+00 : f32
    %221 = vector.shape_cast %220 : vector<8x1xi1> to vector<8x1xi1>
    %222 = vector.broadcast %221 : vector<8x1xi1> to vector<8x128xi1>
    %223 = vector.broadcast %cst_53 : f32 to vector<8x128xf32>
    %224 = arith.select %222, %217, %223 : vector<8x128xi1>, vector<8x128xf32>
    %225 = arith.truncf %224 : vector<8x128xf32> to vector<8x128xbf16>
    %226 = arith.index_cast %196 : i32 to index
    %c0_54 = arith.constant 0 : index
    %227 = vector.load %arg14[%226, %c0_54] : memref<128x128xbf16, #tpu.memory_space<vmem>>, vector<8x128xbf16>
    tpu.vector_store %arg14[%226, %c0_54], %225 {strides = array<i32>} : memref<128x128xbf16, #tpu.memory_space<vmem>>, vector<8x128xbf16>,
    %228 = vector.shape_cast %220 : vector<8x1xi1> to vector<8x1xi1>
    %229 = vector.broadcast %228 : vector<8x1xi1> to vector<8x128xi1>
    %230 = arith.select %229, %217, %191 : vector<8x128xi1>, vector<8x128xf32>
    %231 = vector.shape_cast %220 : vector<8x1xi1> to vector<8x1xi1>
    %232 = vector.broadcast %231 : vector<8x1xi1> to vector<8x128xi1>
    %233 = arith.select %232, %215, %194 : vector<8x128xi1>, vector<8x128xf32>
    %c5_i32 = arith.constant 5 : i32
    %c8_i32_55 = arith.constant 8 : i32
    %234 = arith.muli %c5_i32, %c8_i32_55 : i32
    %235 = tpu.assume_multiple %234, 8 : i32
    %236 = arith.index_cast %235 : i32 to index
    %c0_56 = arith.constant 0 : index
    %237 = vector.load %arg13[%236, %c0_56] : memref<128x512xf32, #tpu.memory_space<vmem>>, vector<8x512xf32>
    %238 = arith.truncf %230 : vector<8x128xf32> to vector<8x128xbf16>
    %cst_57 = arith.constant dense<0.000000e+00> : vector<8x512xf32>
    %239 = tpu.matmul %238, %35, %cst_57 {dimension_numbers = #tpu.dot_dimension_numbers<[1], [0], [0], [1], [0, 0, 1, 1], [], []>} : vector<8x128xbf16>, vector<128x512xbf16>, vector<8x512xf32> -> vector<8x512xf32>
    %240 = arith.addf %237, %239 : vector<8x512xf32>
    %241 = vector.extract_strided_slice %240 {offsets = [0, 0], sizes = [8, 384], strides = [1, 1]} : vector<8x512xf32> to vector<8x384xf32>
    %242 = arith.negf %241 : vector<8x384xf32>
    %243 = math.exp %242 : vector<8x384xf32>
    %cst_58 = arith.constant 1.000000e+00 : f32
    %244 = vector.broadcast %cst_58 : f32 to vector<8x384xf32>
    %245 = arith.addf %244, %243 : vector<8x384xf32>
    %246 = arith.divf %244, %245 : vector<8x384xf32>
    %247 = vector.extract_strided_slice %240 {offsets = [0, 384], sizes = [8, 128], strides = [1, 1]} : vector<8x512xf32> to vector<8x128xf32>
    %248 = math.tanh %247 : vector<8x128xf32>
    %249 = vector.extract_strided_slice %246 {offsets = [0, 0], sizes = [8, 128], strides = [1, 1]} : vector<8x384xf32> to vector<8x128xf32>
    %250 = vector.extract_strided_slice %246 {offsets = [0, 128], sizes = [8, 128], strides = [1, 1]} : vector<8x384xf32> to vector<8x128xf32>
    %251 = vector.extract_strided_slice %246 {offsets = [0, 256], sizes = [8, 128], strides = [1, 1]} : vector<8x384xf32> to vector<8x128xf32>
    %252 = arith.mulf %250, %233 : vector<8x128xf32>
    %253 = arith.mulf %249, %248 : vector<8x128xf32>
    %254 = arith.addf %252, %253 : vector<8x128xf32>
    %255 = math.tanh %254 : vector<8x128xf32>
    %256 = arith.mulf %251, %255 : vector<8x128xf32>
    %257 = arith.addi %0, %c5_i32 : i32
    %258 = vector.broadcast %257 : i32 to vector<8x1xi32>
    %259 = arith.cmpi sgt, %36, %258 : vector<8x1xi32>
    %cst_59 = arith.constant 0.000000e+00 : f32
    %260 = vector.shape_cast %259 : vector<8x1xi1> to vector<8x1xi1>
    %261 = vector.broadcast %260 : vector<8x1xi1> to vector<8x128xi1>
    %262 = vector.broadcast %cst_59 : f32 to vector<8x128xf32>
    %263 = arith.select %261, %256, %262 : vector<8x128xi1>, vector<8x128xf32>
    %264 = arith.truncf %263 : vector<8x128xf32> to vector<8x128xbf16>
    %265 = arith.index_cast %235 : i32 to index
    %c0_60 = arith.constant 0 : index
    %266 = vector.load %arg14[%265, %c0_60] : memref<128x128xbf16, #tpu.memory_space<vmem>>, vector<8x128xbf16>
    tpu.vector_store %arg14[%265, %c0_60], %264 {strides = array<i32>} : memref<128x128xbf16, #tpu.memory_space<vmem>>, vector<8x128xbf16>,
    %267 = vector.shape_cast %259 : vector<8x1xi1> to vector<8x1xi1>
    %268 = vector.broadcast %267 : vector<8x1xi1> to vector<8x128xi1>
    %269 = arith.select %268, %256, %230 : vector<8x128xi1>, vector<8x128xf32>
    %270 = vector.shape_cast %259 : vector<8x1xi1> to vector<8x1xi1>
    %271 = vector.broadcast %270 : vector<8x1xi1> to vector<8x128xi1>
    %272 = arith.select %271, %254, %233 : vector<8x128xi1>, vector<8x128xf32>
    %c6_i32 = arith.constant 6 : i32
    %c8_i32_61 = arith.constant 8 : i32
    %273 = arith.muli %c6_i32, %c8_i32_61 : i32
    %274 = tpu.assume_multiple %273, 8 : i32
    %275 = arith.index_cast %274 : i32 to index
    %c0_62 = arith.constant 0 : index
    %276 = vector.load %arg13[%275, %c0_62] : memref<128x512xf32, #tpu.memory_space<vmem>>, vector<8x512xf32>
    %277 = arith.truncf %269 : vector<8x128xf32> to vector<8x128xbf16>
    %cst_63 = arith.constant dense<0.000000e+00> : vector<8x512xf32>
    %278 = tpu.matmul %277, %35, %cst_63 {dimension_numbers = #tpu.dot_dimension_numbers<[1], [0], [0], [1], [0, 0, 1, 1], [], []>} : vector<8x128xbf16>, vector<128x512xbf16>, vector<8x512xf32> -> vector<8x512xf32>
    %279 = arith.addf %276, %278 : vector<8x512xf32>
    %280 = vector.extract_strided_slice %279 {offsets = [0, 0], sizes = [8, 384], strides = [1, 1]} : vector<8x512xf32> to vector<8x384xf32>
    %281 = arith.negf %280 : vector<8x384xf32>
    %282 = math.exp %281 : vector<8x384xf32>
    %cst_64 = arith.constant 1.000000e+00 : f32
    %283 = vector.broadcast %cst_64 : f32 to vector<8x384xf32>
    %284 = arith.addf %283, %282 : vector<8x384xf32>
    %285 = arith.divf %283, %284 : vector<8x384xf32>
    %286 = vector.extract_strided_slice %279 {offsets = [0, 384], sizes = [8, 128], strides = [1, 1]} : vector<8x512xf32> to vector<8x128xf32>
    %287 = math.tanh %286 : vector<8x128xf32>
    %288 = vector.extract_strided_slice %285 {offsets = [0, 0], sizes = [8, 128], strides = [1, 1]} : vector<8x384xf32> to vector<8x128xf32>
    %289 = vector.extract_strided_slice %285 {offsets = [0, 128], sizes = [8, 128], strides = [1, 1]} : vector<8x384xf32> to vector<8x128xf32>
    %290 = vector.extract_strided_slice %285 {offsets = [0, 256], sizes = [8, 128], strides = [1, 1]} : vector<8x384xf32> to vector<8x128xf32>
    %291 = arith.mulf %289, %272 : vector<8x128xf32>
    %292 = arith.mulf %288, %287 : vector<8x128xf32>
    %293 = arith.addf %291, %292 : vector<8x128xf32>
    %294 = math.tanh %293 : vector<8x128xf32>
    %295 = arith.mulf %290, %294 : vector<8x128xf32>
    %296 = arith.addi %0, %c6_i32 : i32
    %297 = vector.broadcast %296 : i32 to vector<8x1xi32>
    %298 = arith.cmpi sgt, %36, %297 : vector<8x1xi32>
    %cst_65 = arith.constant 0.000000e+00 : f32
    %299 = vector.shape_cast %298 : vector<8x1xi1> to vector<8x1xi1>
    %300 = vector.broadcast %299 : vector<8x1xi1> to vector<8x128xi1>
    %301 = vector.broadcast %cst_65 : f32 to vector<8x128xf32>
    %302 = arith.select %300, %295, %301 : vector<8x128xi1>, vector<8x128xf32>
    %303 = arith.truncf %302 : vector<8x128xf32> to vector<8x128xbf16>
    %304 = arith.index_cast %274 : i32 to index
    %c0_66 = arith.constant 0 : index
    %305 = vector.load %arg14[%304, %c0_66] : memref<128x128xbf16, #tpu.memory_space<vmem>>, vector<8x128xbf16>
    tpu.vector_store %arg14[%304, %c0_66], %303 {strides = array<i32>} : memref<128x128xbf16, #tpu.memory_space<vmem>>, vector<8x128xbf16>,
    %306 = vector.shape_cast %298 : vector<8x1xi1> to vector<8x1xi1>
    %307 = vector.broadcast %306 : vector<8x1xi1> to vector<8x128xi1>
    %308 = arith.select %307, %295, %269 : vector<8x128xi1>, vector<8x128xf32>
    %309 = vector.shape_cast %298 : vector<8x1xi1> to vector<8x1xi1>
    %310 = vector.broadcast %309 : vector<8x1xi1> to vector<8x128xi1>
    %311 = arith.select %310, %293, %272 : vector<8x128xi1>, vector<8x128xf32>
    %c7_i32 = arith.constant 7 : i32
    %c8_i32_67 = arith.constant 8 : i32
    %312 = arith.muli %c7_i32, %c8_i32_67 : i32
    %313 = tpu.assume_multiple %312, 8 : i32
    %314 = arith.index_cast %313 : i32 to index
    %c0_68 = arith.constant 0 : index
    %315 = vector.load %arg13[%314, %c0_68] : memref<128x512xf32, #tpu.memory_space<vmem>>, vector<8x512xf32>
    %316 = arith.truncf %308 : vector<8x128xf32> to vector<8x128xbf16>
    %cst_69 = arith.constant dense<0.000000e+00> : vector<8x512xf32>
    %317 = tpu.matmul %316, %35, %cst_69 {dimension_numbers = #tpu.dot_dimension_numbers<[1], [0], [0], [1], [0, 0, 1, 1], [], []>} : vector<8x128xbf16>, vector<128x512xbf16>, vector<8x512xf32> -> vector<8x512xf32>
    %318 = arith.addf %315, %317 : vector<8x512xf32>
    %319 = vector.extract_strided_slice %318 {offsets = [0, 0], sizes = [8, 384], strides = [1, 1]} : vector<8x512xf32> to vector<8x384xf32>
    %320 = arith.negf %319 : vector<8x384xf32>
    %321 = math.exp %320 : vector<8x384xf32>
    %cst_70 = arith.constant 1.000000e+00 : f32
    %322 = vector.broadcast %cst_70 : f32 to vector<8x384xf32>
    %323 = arith.addf %322, %321 : vector<8x384xf32>
    %324 = arith.divf %322, %323 : vector<8x384xf32>
    %325 = vector.extract_strided_slice %318 {offsets = [0, 384], sizes = [8, 128], strides = [1, 1]} : vector<8x512xf32> to vector<8x128xf32>
    %326 = math.tanh %325 : vector<8x128xf32>
    %327 = vector.extract_strided_slice %324 {offsets = [0, 0], sizes = [8, 128], strides = [1, 1]} : vector<8x384xf32> to vector<8x128xf32>
    %328 = vector.extract_strided_slice %324 {offsets = [0, 128], sizes = [8, 128], strides = [1, 1]} : vector<8x384xf32> to vector<8x128xf32>
    %329 = vector.extract_strided_slice %324 {offsets = [0, 256], sizes = [8, 128], strides = [1, 1]} : vector<8x384xf32> to vector<8x128xf32>
    %330 = arith.mulf %328, %311 : vector<8x128xf32>
    %331 = arith.mulf %327, %326 : vector<8x128xf32>
    %332 = arith.addf %330, %331 : vector<8x128xf32>
    %333 = math.tanh %332 : vector<8x128xf32>
    %334 = arith.mulf %329, %333 : vector<8x128xf32>
    %335 = arith.addi %0, %c7_i32 : i32
    %336 = vector.broadcast %335 : i32 to vector<8x1xi32>
    %337 = arith.cmpi sgt, %36, %336 : vector<8x1xi32>
    %cst_71 = arith.constant 0.000000e+00 : f32
    %338 = vector.shape_cast %337 : vector<8x1xi1> to vector<8x1xi1>
    %339 = vector.broadcast %338 : vector<8x1xi1> to vector<8x128xi1>
    %340 = vector.broadcast %cst_71 : f32 to vector<8x128xf32>
    %341 = arith.select %339, %334, %340 : vector<8x128xi1>, vector<8x128xf32>
    %342 = arith.truncf %341 : vector<8x128xf32> to vector<8x128xbf16>
    %343 = arith.index_cast %313 : i32 to index
    %c0_72 = arith.constant 0 : index
    %344 = vector.load %arg14[%343, %c0_72] : memref<128x128xbf16, #tpu.memory_space<vmem>>, vector<8x128xbf16>
    tpu.vector_store %arg14[%343, %c0_72], %342 {strides = array<i32>} : memref<128x128xbf16, #tpu.memory_space<vmem>>, vector<8x128xbf16>,
    %345 = vector.shape_cast %337 : vector<8x1xi1> to vector<8x1xi1>
    %346 = vector.broadcast %345 : vector<8x1xi1> to vector<8x128xi1>
    %347 = arith.select %346, %334, %308 : vector<8x128xi1>, vector<8x128xf32>
    %348 = vector.shape_cast %337 : vector<8x1xi1> to vector<8x1xi1>
    %349 = vector.broadcast %348 : vector<8x1xi1> to vector<8x128xi1>
    %350 = arith.select %349, %332, %311 : vector<8x128xi1>, vector<8x128xf32>
    %c8_i32_73 = arith.constant 8 : i32
    %c8_i32_74 = arith.constant 8 : i32
    %351 = arith.muli %c8_i32_73, %c8_i32_74 : i32
    %352 = tpu.assume_multiple %351, 8 : i32
    %353 = arith.index_cast %352 : i32 to index
    %c0_75 = arith.constant 0 : index
    %354 = vector.load %arg13[%353, %c0_75] : memref<128x512xf32, #tpu.memory_space<vmem>>, vector<8x512xf32>
    %355 = arith.truncf %347 : vector<8x128xf32> to vector<8x128xbf16>
    %cst_76 = arith.constant dense<0.000000e+00> : vector<8x512xf32>
    %356 = tpu.matmul %355, %35, %cst_76 {dimension_numbers = #tpu.dot_dimension_numbers<[1], [0], [0], [1], [0, 0, 1, 1], [], []>} : vector<8x128xbf16>, vector<128x512xbf16>, vector<8x512xf32> -> vector<8x512xf32>
    %357 = arith.addf %354, %356 : vector<8x512xf32>
    %358 = vector.extract_strided_slice %357 {offsets = [0, 0], sizes = [8, 384], strides = [1, 1]} : vector<8x512xf32> to vector<8x384xf32>
    %359 = arith.negf %358 : vector<8x384xf32>
    %360 = math.exp %359 : vector<8x384xf32>
    %cst_77 = arith.constant 1.000000e+00 : f32
    %361 = vector.broadcast %cst_77 : f32 to vector<8x384xf32>
    %362 = arith.addf %361, %360 : vector<8x384xf32>
    %363 = arith.divf %361, %362 : vector<8x384xf32>
    %364 = vector.extract_strided_slice %357 {offsets = [0, 384], sizes = [8, 128], strides = [1, 1]} : vector<8x512xf32> to vector<8x128xf32>
    %365 = math.tanh %364 : vector<8x128xf32>
    %366 = vector.extract_strided_slice %363 {offsets = [0, 0], sizes = [8, 128], strides = [1, 1]} : vector<8x384xf32> to vector<8x128xf32>
    %367 = vector.extract_strided_slice %363 {offsets = [0, 128], sizes = [8, 128], strides = [1, 1]} : vector<8x384xf32> to vector<8x128xf32>
    %368 = vector.extract_strided_slice %363 {offsets = [0, 256], sizes = [8, 128], strides = [1, 1]} : vector<8x384xf32> to vector<8x128xf32>
    %369 = arith.mulf %367, %350 : vector<8x128xf32>
    %370 = arith.mulf %366, %365 : vector<8x128xf32>
    %371 = arith.addf %369, %370 : vector<8x128xf32>
    %372 = math.tanh %371 : vector<8x128xf32>
    %373 = arith.mulf %368, %372 : vector<8x128xf32>
    %374 = arith.addi %0, %c8_i32_73 : i32
    %375 = vector.broadcast %374 : i32 to vector<8x1xi32>
    %376 = arith.cmpi sgt, %36, %375 : vector<8x1xi32>
    %cst_78 = arith.constant 0.000000e+00 : f32
    %377 = vector.shape_cast %376 : vector<8x1xi1> to vector<8x1xi1>
    %378 = vector.broadcast %377 : vector<8x1xi1> to vector<8x128xi1>
    %379 = vector.broadcast %cst_78 : f32 to vector<8x128xf32>
    %380 = arith.select %378, %373, %379 : vector<8x128xi1>, vector<8x128xf32>
    %381 = arith.truncf %380 : vector<8x128xf32> to vector<8x128xbf16>
    %382 = arith.index_cast %352 : i32 to index
    %c0_79 = arith.constant 0 : index
    %383 = vector.load %arg14[%382, %c0_79] : memref<128x128xbf16, #tpu.memory_space<vmem>>, vector<8x128xbf16>
    tpu.vector_store %arg14[%382, %c0_79], %381 {strides = array<i32>} : memref<128x128xbf16, #tpu.memory_space<vmem>>, vector<8x128xbf16>,
    %384 = vector.shape_cast %376 : vector<8x1xi1> to vector<8x1xi1>
    %385 = vector.broadcast %384 : vector<8x1xi1> to vector<8x128xi1>
    %386 = arith.select %385, %373, %347 : vector<8x128xi1>, vector<8x128xf32>
    %387 = vector.shape_cast %376 : vector<8x1xi1> to vector<8x1xi1>
    %388 = vector.broadcast %387 : vector<8x1xi1> to vector<8x128xi1>
    %389 = arith.select %388, %371, %350 : vector<8x128xi1>, vector<8x128xf32>
    %c9_i32 = arith.constant 9 : i32
    %c8_i32_80 = arith.constant 8 : i32
    %390 = arith.muli %c9_i32, %c8_i32_80 : i32
    %391 = tpu.assume_multiple %390, 8 : i32
    %392 = arith.index_cast %391 : i32 to index
    %c0_81 = arith.constant 0 : index
    %393 = vector.load %arg13[%392, %c0_81] : memref<128x512xf32, #tpu.memory_space<vmem>>, vector<8x512xf32>
    %394 = arith.truncf %386 : vector<8x128xf32> to vector<8x128xbf16>
    %cst_82 = arith.constant dense<0.000000e+00> : vector<8x512xf32>
    %395 = tpu.matmul %394, %35, %cst_82 {dimension_numbers = #tpu.dot_dimension_numbers<[1], [0], [0], [1], [0, 0, 1, 1], [], []>} : vector<8x128xbf16>, vector<128x512xbf16>, vector<8x512xf32> -> vector<8x512xf32>
    %396 = arith.addf %393, %395 : vector<8x512xf32>
    %397 = vector.extract_strided_slice %396 {offsets = [0, 0], sizes = [8, 384], strides = [1, 1]} : vector<8x512xf32> to vector<8x384xf32>
    %398 = arith.negf %397 : vector<8x384xf32>
    %399 = math.exp %398 : vector<8x384xf32>
    %cst_83 = arith.constant 1.000000e+00 : f32
    %400 = vector.broadcast %cst_83 : f32 to vector<8x384xf32>
    %401 = arith.addf %400, %399 : vector<8x384xf32>
    %402 = arith.divf %400, %401 : vector<8x384xf32>
    %403 = vector.extract_strided_slice %396 {offsets = [0, 384], sizes = [8, 128], strides = [1, 1]} : vector<8x512xf32> to vector<8x128xf32>
    %404 = math.tanh %403 : vector<8x128xf32>
    %405 = vector.extract_strided_slice %402 {offsets = [0, 0], sizes = [8, 128], strides = [1, 1]} : vector<8x384xf32> to vector<8x128xf32>
    %406 = vector.extract_strided_slice %402 {offsets = [0, 128], sizes = [8, 128], strides = [1, 1]} : vector<8x384xf32> to vector<8x128xf32>
    %407 = vector.extract_strided_slice %402 {offsets = [0, 256], sizes = [8, 128], strides = [1, 1]} : vector<8x384xf32> to vector<8x128xf32>
    %408 = arith.mulf %406, %389 : vector<8x128xf32>
    %409 = arith.mulf %405, %404 : vector<8x128xf32>
    %410 = arith.addf %408, %409 : vector<8x128xf32>
    %411 = math.tanh %410 : vector<8x128xf32>
    %412 = arith.mulf %407, %411 : vector<8x128xf32>
    %413 = arith.addi %0, %c9_i32 : i32
    %414 = vector.broadcast %413 : i32 to vector<8x1xi32>
    %415 = arith.cmpi sgt, %36, %414 : vector<8x1xi32>
    %cst_84 = arith.constant 0.000000e+00 : f32
    %416 = vector.shape_cast %415 : vector<8x1xi1> to vector<8x1xi1>
    %417 = vector.broadcast %416 : vector<8x1xi1> to vector<8x128xi1>
    %418 = vector.broadcast %cst_84 : f32 to vector<8x128xf32>
    %419 = arith.select %417, %412, %418 : vector<8x128xi1>, vector<8x128xf32>
    %420 = arith.truncf %419 : vector<8x128xf32> to vector<8x128xbf16>
    %421 = arith.index_cast %391 : i32 to index
    %c0_85 = arith.constant 0 : index
    %422 = vector.load %arg14[%421, %c0_85] : memref<128x128xbf16, #tpu.memory_space<vmem>>, vector<8x128xbf16>
    tpu.vector_store %arg14[%421, %c0_85], %420 {strides = array<i32>} : memref<128x128xbf16, #tpu.memory_space<vmem>>, vector<8x128xbf16>,
    %423 = vector.shape_cast %415 : vector<8x1xi1> to vector<8x1xi1>
    %424 = vector.broadcast %423 : vector<8x1xi1> to vector<8x128xi1>
    %425 = arith.select %424, %412, %386 : vector<8x128xi1>, vector<8x128xf32>
    %426 = vector.shape_cast %415 : vector<8x1xi1> to vector<8x1xi1>
    %427 = vector.broadcast %426 : vector<8x1xi1> to vector<8x128xi1>
    %428 = arith.select %427, %410, %389 : vector<8x128xi1>, vector<8x128xf32>
    %c10_i32 = arith.constant 10 : i32
    %c8_i32_86 = arith.constant 8 : i32
    %429 = arith.muli %c10_i32, %c8_i32_86 : i32
    %430 = tpu.assume_multiple %429, 8 : i32
    %431 = arith.index_cast %430 : i32 to index
    %c0_87 = arith.constant 0 : index
    %432 = vector.load %arg13[%431, %c0_87] : memref<128x512xf32, #tpu.memory_space<vmem>>, vector<8x512xf32>
    %433 = arith.truncf %425 : vector<8x128xf32> to vector<8x128xbf16>
    %cst_88 = arith.constant dense<0.000000e+00> : vector<8x512xf32>
    %434 = tpu.matmul %433, %35, %cst_88 {dimension_numbers = #tpu.dot_dimension_numbers<[1], [0], [0], [1], [0, 0, 1, 1], [], []>} : vector<8x128xbf16>, vector<128x512xbf16>, vector<8x512xf32> -> vector<8x512xf32>
    %435 = arith.addf %432, %434 : vector<8x512xf32>
    %436 = vector.extract_strided_slice %435 {offsets = [0, 0], sizes = [8, 384], strides = [1, 1]} : vector<8x512xf32> to vector<8x384xf32>
    %437 = arith.negf %436 : vector<8x384xf32>
    %438 = math.exp %437 : vector<8x384xf32>
    %cst_89 = arith.constant 1.000000e+00 : f32
    %439 = vector.broadcast %cst_89 : f32 to vector<8x384xf32>
    %440 = arith.addf %439, %438 : vector<8x384xf32>
    %441 = arith.divf %439, %440 : vector<8x384xf32>
    %442 = vector.extract_strided_slice %435 {offsets = [0, 384], sizes = [8, 128], strides = [1, 1]} : vector<8x512xf32> to vector<8x128xf32>
    %443 = math.tanh %442 : vector<8x128xf32>
    %444 = vector.extract_strided_slice %441 {offsets = [0, 0], sizes = [8, 128], strides = [1, 1]} : vector<8x384xf32> to vector<8x128xf32>
    %445 = vector.extract_strided_slice %441 {offsets = [0, 128], sizes = [8, 128], strides = [1, 1]} : vector<8x384xf32> to vector<8x128xf32>
    %446 = vector.extract_strided_slice %441 {offsets = [0, 256], sizes = [8, 128], strides = [1, 1]} : vector<8x384xf32> to vector<8x128xf32>
    %447 = arith.mulf %445, %428 : vector<8x128xf32>
    %448 = arith.mulf %444, %443 : vector<8x128xf32>
    %449 = arith.addf %447, %448 : vector<8x128xf32>
    %450 = math.tanh %449 : vector<8x128xf32>
    %451 = arith.mulf %446, %450 : vector<8x128xf32>
    %452 = arith.addi %0, %c10_i32 : i32
    %453 = vector.broadcast %452 : i32 to vector<8x1xi32>
    %454 = arith.cmpi sgt, %36, %453 : vector<8x1xi32>
    %cst_90 = arith.constant 0.000000e+00 : f32
    %455 = vector.shape_cast %454 : vector<8x1xi1> to vector<8x1xi1>
    %456 = vector.broadcast %455 : vector<8x1xi1> to vector<8x128xi1>
    %457 = vector.broadcast %cst_90 : f32 to vector<8x128xf32>
    %458 = arith.select %456, %451, %457 : vector<8x128xi1>, vector<8x128xf32>
    %459 = arith.truncf %458 : vector<8x128xf32> to vector<8x128xbf16>
    %460 = arith.index_cast %430 : i32 to index
    %c0_91 = arith.constant 0 : index
    %461 = vector.load %arg14[%460, %c0_91] : memref<128x128xbf16, #tpu.memory_space<vmem>>, vector<8x128xbf16>
    tpu.vector_store %arg14[%460, %c0_91], %459 {strides = array<i32>} : memref<128x128xbf16, #tpu.memory_space<vmem>>, vector<8x128xbf16>,
    %462 = vector.shape_cast %454 : vector<8x1xi1> to vector<8x1xi1>
    %463 = vector.broadcast %462 : vector<8x1xi1> to vector<8x128xi1>
    %464 = arith.select %463, %451, %425 : vector<8x128xi1>, vector<8x128xf32>
    %465 = vector.shape_cast %454 : vector<8x1xi1> to vector<8x1xi1>
    %466 = vector.broadcast %465 : vector<8x1xi1> to vector<8x128xi1>
    %467 = arith.select %466, %449, %428 : vector<8x128xi1>, vector<8x128xf32>
    %c11_i32 = arith.constant 11 : i32
    %c8_i32_92 = arith.constant 8 : i32
    %468 = arith.muli %c11_i32, %c8_i32_92 : i32
    %469 = tpu.assume_multiple %468, 8 : i32
    %470 = arith.index_cast %469 : i32 to index
    %c0_93 = arith.constant 0 : index
    %471 = vector.load %arg13[%470, %c0_93] : memref<128x512xf32, #tpu.memory_space<vmem>>, vector<8x512xf32>
    %472 = arith.truncf %464 : vector<8x128xf32> to vector<8x128xbf16>
    %cst_94 = arith.constant dense<0.000000e+00> : vector<8x512xf32>
    %473 = tpu.matmul %472, %35, %cst_94 {dimension_numbers = #tpu.dot_dimension_numbers<[1], [0], [0], [1], [0, 0, 1, 1], [], []>} : vector<8x128xbf16>, vector<128x512xbf16>, vector<8x512xf32> -> vector<8x512xf32>
    %474 = arith.addf %471, %473 : vector<8x512xf32>
    %475 = vector.extract_strided_slice %474 {offsets = [0, 0], sizes = [8, 384], strides = [1, 1]} : vector<8x512xf32> to vector<8x384xf32>
    %476 = arith.negf %475 : vector<8x384xf32>
    %477 = math.exp %476 : vector<8x384xf32>
    %cst_95 = arith.constant 1.000000e+00 : f32
    %478 = vector.broadcast %cst_95 : f32 to vector<8x384xf32>
    %479 = arith.addf %478, %477 : vector<8x384xf32>
    %480 = arith.divf %478, %479 : vector<8x384xf32>
    %481 = vector.extract_strided_slice %474 {offsets = [0, 384], sizes = [8, 128], strides = [1, 1]} : vector<8x512xf32> to vector<8x128xf32>
    %482 = math.tanh %481 : vector<8x128xf32>
    %483 = vector.extract_strided_slice %480 {offsets = [0, 0], sizes = [8, 128], strides = [1, 1]} : vector<8x384xf32> to vector<8x128xf32>
    %484 = vector.extract_strided_slice %480 {offsets = [0, 128], sizes = [8, 128], strides = [1, 1]} : vector<8x384xf32> to vector<8x128xf32>
    %485 = vector.extract_strided_slice %480 {offsets = [0, 256], sizes = [8, 128], strides = [1, 1]} : vector<8x384xf32> to vector<8x128xf32>
    %486 = arith.mulf %484, %467 : vector<8x128xf32>
    %487 = arith.mulf %483, %482 : vector<8x128xf32>
    %488 = arith.addf %486, %487 : vector<8x128xf32>
    %489 = math.tanh %488 : vector<8x128xf32>
    %490 = arith.mulf %485, %489 : vector<8x128xf32>
    %491 = arith.addi %0, %c11_i32 : i32
    %492 = vector.broadcast %491 : i32 to vector<8x1xi32>
    %493 = arith.cmpi sgt, %36, %492 : vector<8x1xi32>
    %cst_96 = arith.constant 0.000000e+00 : f32
    %494 = vector.shape_cast %493 : vector<8x1xi1> to vector<8x1xi1>
    %495 = vector.broadcast %494 : vector<8x1xi1> to vector<8x128xi1>
    %496 = vector.broadcast %cst_96 : f32 to vector<8x128xf32>
    %497 = arith.select %495, %490, %496 : vector<8x128xi1>, vector<8x128xf32>
    %498 = arith.truncf %497 : vector<8x128xf32> to vector<8x128xbf16>
    %499 = arith.index_cast %469 : i32 to index
    %c0_97 = arith.constant 0 : index
    %500 = vector.load %arg14[%499, %c0_97] : memref<128x128xbf16, #tpu.memory_space<vmem>>, vector<8x128xbf16>
    tpu.vector_store %arg14[%499, %c0_97], %498 {strides = array<i32>} : memref<128x128xbf16, #tpu.memory_space<vmem>>, vector<8x128xbf16>,
    %501 = vector.shape_cast %493 : vector<8x1xi1> to vector<8x1xi1>
    %502 = vector.broadcast %501 : vector<8x1xi1> to vector<8x128xi1>
    %503 = arith.select %502, %490, %464 : vector<8x128xi1>, vector<8x128xf32>
    %504 = vector.shape_cast %493 : vector<8x1xi1> to vector<8x1xi1>
    %505 = vector.broadcast %504 : vector<8x1xi1> to vector<8x128xi1>
    %506 = arith.select %505, %488, %467 : vector<8x128xi1>, vector<8x128xf32>
    %c12_i32 = arith.constant 12 : i32
    %c8_i32_98 = arith.constant 8 : i32
    %507 = arith.muli %c12_i32, %c8_i32_98 : i32
    %508 = tpu.assume_multiple %507, 8 : i32
    %509 = arith.index_cast %508 : i32 to index
    %c0_99 = arith.constant 0 : index
    %510 = vector.load %arg13[%509, %c0_99] : memref<128x512xf32, #tpu.memory_space<vmem>>, vector<8x512xf32>
    %511 = arith.truncf %503 : vector<8x128xf32> to vector<8x128xbf16>
    %cst_100 = arith.constant dense<0.000000e+00> : vector<8x512xf32>
    %512 = tpu.matmul %511, %35, %cst_100 {dimension_numbers = #tpu.dot_dimension_numbers<[1], [0], [0], [1], [0, 0, 1, 1], [], []>} : vector<8x128xbf16>, vector<128x512xbf16>, vector<8x512xf32> -> vector<8x512xf32>
    %513 = arith.addf %510, %512 : vector<8x512xf32>
    %514 = vector.extract_strided_slice %513 {offsets = [0, 0], sizes = [8, 384], strides = [1, 1]} : vector<8x512xf32> to vector<8x384xf32>
    %515 = arith.negf %514 : vector<8x384xf32>
    %516 = math.exp %515 : vector<8x384xf32>
    %cst_101 = arith.constant 1.000000e+00 : f32
    %517 = vector.broadcast %cst_101 : f32 to vector<8x384xf32>
    %518 = arith.addf %517, %516 : vector<8x384xf32>
    %519 = arith.divf %517, %518 : vector<8x384xf32>
    %520 = vector.extract_strided_slice %513 {offsets = [0, 384], sizes = [8, 128], strides = [1, 1]} : vector<8x512xf32> to vector<8x128xf32>
    %521 = math.tanh %520 : vector<8x128xf32>
    %522 = vector.extract_strided_slice %519 {offsets = [0, 0], sizes = [8, 128], strides = [1, 1]} : vector<8x384xf32> to vector<8x128xf32>
    %523 = vector.extract_strided_slice %519 {offsets = [0, 128], sizes = [8, 128], strides = [1, 1]} : vector<8x384xf32> to vector<8x128xf32>
    %524 = vector.extract_strided_slice %519 {offsets = [0, 256], sizes = [8, 128], strides = [1, 1]} : vector<8x384xf32> to vector<8x128xf32>
    %525 = arith.mulf %523, %506 : vector<8x128xf32>
    %526 = arith.mulf %522, %521 : vector<8x128xf32>
    %527 = arith.addf %525, %526 : vector<8x128xf32>
    %528 = math.tanh %527 : vector<8x128xf32>
    %529 = arith.mulf %524, %528 : vector<8x128xf32>
    %530 = arith.addi %0, %c12_i32 : i32
    %531 = vector.broadcast %530 : i32 to vector<8x1xi32>
    %532 = arith.cmpi sgt, %36, %531 : vector<8x1xi32>
    %cst_102 = arith.constant 0.000000e+00 : f32
    %533 = vector.shape_cast %532 : vector<8x1xi1> to vector<8x1xi1>
    %534 = vector.broadcast %533 : vector<8x1xi1> to vector<8x128xi1>
    %535 = vector.broadcast %cst_102 : f32 to vector<8x128xf32>
    %536 = arith.select %534, %529, %535 : vector<8x128xi1>, vector<8x128xf32>
    %537 = arith.truncf %536 : vector<8x128xf32> to vector<8x128xbf16>
    %538 = arith.index_cast %508 : i32 to index
    %c0_103 = arith.constant 0 : index
    %539 = vector.load %arg14[%538, %c0_103] : memref<128x128xbf16, #tpu.memory_space<vmem>>, vector<8x128xbf16>
    tpu.vector_store %arg14[%538, %c0_103], %537 {strides = array<i32>} : memref<128x128xbf16, #tpu.memory_space<vmem>>, vector<8x128xbf16>,
    %540 = vector.shape_cast %532 : vector<8x1xi1> to vector<8x1xi1>
    %541 = vector.broadcast %540 : vector<8x1xi1> to vector<8x128xi1>
    %542 = arith.select %541, %529, %503 : vector<8x128xi1>, vector<8x128xf32>
    %543 = vector.shape_cast %532 : vector<8x1xi1> to vector<8x1xi1>
    %544 = vector.broadcast %543 : vector<8x1xi1> to vector<8x128xi1>
    %545 = arith.select %544, %527, %506 : vector<8x128xi1>, vector<8x128xf32>
    %c13_i32 = arith.constant 13 : i32
    %c8_i32_104 = arith.constant 8 : i32
    %546 = arith.muli %c13_i32, %c8_i32_104 : i32
    %547 = tpu.assume_multiple %546, 8 : i32
    %548 = arith.index_cast %547 : i32 to index
    %c0_105 = arith.constant 0 : index
    %549 = vector.load %arg13[%548, %c0_105] : memref<128x512xf32, #tpu.memory_space<vmem>>, vector<8x512xf32>
    %550 = arith.truncf %542 : vector<8x128xf32> to vector<8x128xbf16>
    %cst_106 = arith.constant dense<0.000000e+00> : vector<8x512xf32>
    %551 = tpu.matmul %550, %35, %cst_106 {dimension_numbers = #tpu.dot_dimension_numbers<[1], [0], [0], [1], [0, 0, 1, 1], [], []>} : vector<8x128xbf16>, vector<128x512xbf16>, vector<8x512xf32> -> vector<8x512xf32>
    %552 = arith.addf %549, %551 : vector<8x512xf32>
    %553 = vector.extract_strided_slice %552 {offsets = [0, 0], sizes = [8, 384], strides = [1, 1]} : vector<8x512xf32> to vector<8x384xf32>
    %554 = arith.negf %553 : vector<8x384xf32>
    %555 = math.exp %554 : vector<8x384xf32>
    %cst_107 = arith.constant 1.000000e+00 : f32
    %556 = vector.broadcast %cst_107 : f32 to vector<8x384xf32>
    %557 = arith.addf %556, %555 : vector<8x384xf32>
    %558 = arith.divf %556, %557 : vector<8x384xf32>
    %559 = vector.extract_strided_slice %552 {offsets = [0, 384], sizes = [8, 128], strides = [1, 1]} : vector<8x512xf32> to vector<8x128xf32>
    %560 = math.tanh %559 : vector<8x128xf32>
    %561 = vector.extract_strided_slice %558 {offsets = [0, 0], sizes = [8, 128], strides = [1, 1]} : vector<8x384xf32> to vector<8x128xf32>
    %562 = vector.extract_strided_slice %558 {offsets = [0, 128], sizes = [8, 128], strides = [1, 1]} : vector<8x384xf32> to vector<8x128xf32>
    %563 = vector.extract_strided_slice %558 {offsets = [0, 256], sizes = [8, 128], strides = [1, 1]} : vector<8x384xf32> to vector<8x128xf32>
    %564 = arith.mulf %562, %545 : vector<8x128xf32>
    %565 = arith.mulf %561, %560 : vector<8x128xf32>
    %566 = arith.addf %564, %565 : vector<8x128xf32>
    %567 = math.tanh %566 : vector<8x128xf32>
    %568 = arith.mulf %563, %567 : vector<8x128xf32>
    %569 = arith.addi %0, %c13_i32 : i32
    %570 = vector.broadcast %569 : i32 to vector<8x1xi32>
    %571 = arith.cmpi sgt, %36, %570 : vector<8x1xi32>
    %cst_108 = arith.constant 0.000000e+00 : f32
    %572 = vector.shape_cast %571 : vector<8x1xi1> to vector<8x1xi1>
    %573 = vector.broadcast %572 : vector<8x1xi1> to vector<8x128xi1>
    %574 = vector.broadcast %cst_108 : f32 to vector<8x128xf32>
    %575 = arith.select %573, %568, %574 : vector<8x128xi1>, vector<8x128xf32>
    %576 = arith.truncf %575 : vector<8x128xf32> to vector<8x128xbf16>
    %577 = arith.index_cast %547 : i32 to index
    %c0_109 = arith.constant 0 : index
    %578 = vector.load %arg14[%577, %c0_109] : memref<128x128xbf16, #tpu.memory_space<vmem>>, vector<8x128xbf16>
    tpu.vector_store %arg14[%577, %c0_109], %576 {strides = array<i32>} : memref<128x128xbf16, #tpu.memory_space<vmem>>, vector<8x128xbf16>,
    %579 = vector.shape_cast %571 : vector<8x1xi1> to vector<8x1xi1>
    %580 = vector.broadcast %579 : vector<8x1xi1> to vector<8x128xi1>
    %581 = arith.select %580, %568, %542 : vector<8x128xi1>, vector<8x128xf32>
    %582 = vector.shape_cast %571 : vector<8x1xi1> to vector<8x1xi1>
    %583 = vector.broadcast %582 : vector<8x1xi1> to vector<8x128xi1>
    %584 = arith.select %583, %566, %545 : vector<8x128xi1>, vector<8x128xf32>
    %c14_i32 = arith.constant 14 : i32
    %c8_i32_110 = arith.constant 8 : i32
    %585 = arith.muli %c14_i32, %c8_i32_110 : i32
    %586 = tpu.assume_multiple %585, 8 : i32
    %587 = arith.index_cast %586 : i32 to index
    %c0_111 = arith.constant 0 : index
    %588 = vector.load %arg13[%587, %c0_111] : memref<128x512xf32, #tpu.memory_space<vmem>>, vector<8x512xf32>
    %589 = arith.truncf %581 : vector<8x128xf32> to vector<8x128xbf16>
    %cst_112 = arith.constant dense<0.000000e+00> : vector<8x512xf32>
    %590 = tpu.matmul %589, %35, %cst_112 {dimension_numbers = #tpu.dot_dimension_numbers<[1], [0], [0], [1], [0, 0, 1, 1], [], []>} : vector<8x128xbf16>, vector<128x512xbf16>, vector<8x512xf32> -> vector<8x512xf32>
    %591 = arith.addf %588, %590 : vector<8x512xf32>
    %592 = vector.extract_strided_slice %591 {offsets = [0, 0], sizes = [8, 384], strides = [1, 1]} : vector<8x512xf32> to vector<8x384xf32>
    %593 = arith.negf %592 : vector<8x384xf32>
    %594 = math.exp %593 : vector<8x384xf32>
    %cst_113 = arith.constant 1.000000e+00 : f32
    %595 = vector.broadcast %cst_113 : f32 to vector<8x384xf32>
    %596 = arith.addf %595, %594 : vector<8x384xf32>
    %597 = arith.divf %595, %596 : vector<8x384xf32>
    %598 = vector.extract_strided_slice %591 {offsets = [0, 384], sizes = [8, 128], strides = [1, 1]} : vector<8x512xf32> to vector<8x128xf32>
    %599 = math.tanh %598 : vector<8x128xf32>
    %600 = vector.extract_strided_slice %597 {offsets = [0, 0], sizes = [8, 128], strides = [1, 1]} : vector<8x384xf32> to vector<8x128xf32>
    %601 = vector.extract_strided_slice %597 {offsets = [0, 128], sizes = [8, 128], strides = [1, 1]} : vector<8x384xf32> to vector<8x128xf32>
    %602 = vector.extract_strided_slice %597 {offsets = [0, 256], sizes = [8, 128], strides = [1, 1]} : vector<8x384xf32> to vector<8x128xf32>
    %603 = arith.mulf %601, %584 : vector<8x128xf32>
    %604 = arith.mulf %600, %599 : vector<8x128xf32>
    %605 = arith.addf %603, %604 : vector<8x128xf32>
    %606 = math.tanh %605 : vector<8x128xf32>
    %607 = arith.mulf %602, %606 : vector<8x128xf32>
    %608 = arith.addi %0, %c14_i32 : i32
    %609 = vector.broadcast %608 : i32 to vector<8x1xi32>
    %610 = arith.cmpi sgt, %36, %609 : vector<8x1xi32>
    %cst_114 = arith.constant 0.000000e+00 : f32
    %611 = vector.shape_cast %610 : vector<8x1xi1> to vector<8x1xi1>
    %612 = vector.broadcast %611 : vector<8x1xi1> to vector<8x128xi1>
    %613 = vector.broadcast %cst_114 : f32 to vector<8x128xf32>
    %614 = arith.select %612, %607, %613 : vector<8x128xi1>, vector<8x128xf32>
    %615 = arith.truncf %614 : vector<8x128xf32> to vector<8x128xbf16>
    %616 = arith.index_cast %586 : i32 to index
    %c0_115 = arith.constant 0 : index
    %617 = vector.load %arg14[%616, %c0_115] : memref<128x128xbf16, #tpu.memory_space<vmem>>, vector<8x128xbf16>
    tpu.vector_store %arg14[%616, %c0_115], %615 {strides = array<i32>} : memref<128x128xbf16, #tpu.memory_space<vmem>>, vector<8x128xbf16>,
    %618 = vector.shape_cast %610 : vector<8x1xi1> to vector<8x1xi1>
    %619 = vector.broadcast %618 : vector<8x1xi1> to vector<8x128xi1>
    %620 = arith.select %619, %607, %581 : vector<8x128xi1>, vector<8x128xf32>
    %621 = vector.shape_cast %610 : vector<8x1xi1> to vector<8x1xi1>
    %622 = vector.broadcast %621 : vector<8x1xi1> to vector<8x128xi1>
    %623 = arith.select %622, %605, %584 : vector<8x128xi1>, vector<8x128xf32>
    %c15_i32 = arith.constant 15 : i32
    %c8_i32_116 = arith.constant 8 : i32
    %624 = arith.muli %c15_i32, %c8_i32_116 : i32
    %625 = tpu.assume_multiple %624, 8 : i32
    %626 = arith.index_cast %625 : i32 to index
    %c0_117 = arith.constant 0 : index
    %627 = vector.load %arg13[%626, %c0_117] : memref<128x512xf32, #tpu.memory_space<vmem>>, vector<8x512xf32>
    %628 = arith.truncf %620 : vector<8x128xf32> to vector<8x128xbf16>
    %cst_118 = arith.constant dense<0.000000e+00> : vector<8x512xf32>
    %629 = tpu.matmul %628, %35, %cst_118 {dimension_numbers = #tpu.dot_dimension_numbers<[1], [0], [0], [1], [0, 0, 1, 1], [], []>} : vector<8x128xbf16>, vector<128x512xbf16>, vector<8x512xf32> -> vector<8x512xf32>
    %630 = arith.addf %627, %629 : vector<8x512xf32>
    %631 = vector.extract_strided_slice %630 {offsets = [0, 0], sizes = [8, 384], strides = [1, 1]} : vector<8x512xf32> to vector<8x384xf32>
    %632 = arith.negf %631 : vector<8x384xf32>
    %633 = math.exp %632 : vector<8x384xf32>
    %cst_119 = arith.constant 1.000000e+00 : f32
    %634 = vector.broadcast %cst_119 : f32 to vector<8x384xf32>
    %635 = arith.addf %634, %633 : vector<8x384xf32>
    %636 = arith.divf %634, %635 : vector<8x384xf32>
    %637 = vector.extract_strided_slice %630 {offsets = [0, 384], sizes = [8, 128], strides = [1, 1]} : vector<8x512xf32> to vector<8x128xf32>
    %638 = math.tanh %637 : vector<8x128xf32>
    %639 = vector.extract_strided_slice %636 {offsets = [0, 0], sizes = [8, 128], strides = [1, 1]} : vector<8x384xf32> to vector<8x128xf32>
    %640 = vector.extract_strided_slice %636 {offsets = [0, 128], sizes = [8, 128], strides = [1, 1]} : vector<8x384xf32> to vector<8x128xf32>
    %641 = vector.extract_strided_slice %636 {offsets = [0, 256], sizes = [8, 128], strides = [1, 1]} : vector<8x384xf32> to vector<8x128xf32>
    %642 = arith.mulf %640, %623 : vector<8x128xf32>
    %643 = arith.mulf %639, %638 : vector<8x128xf32>
    %644 = arith.addf %642, %643 : vector<8x128xf32>
    %645 = math.tanh %644 : vector<8x128xf32>
    %646 = arith.mulf %641, %645 : vector<8x128xf32>
    %647 = arith.addi %0, %c15_i32 : i32
    %648 = vector.broadcast %647 : i32 to vector<8x1xi32>
    %649 = arith.cmpi sgt, %36, %648 : vector<8x1xi32>
    %cst_120 = arith.constant 0.000000e+00 : f32
    %650 = vector.shape_cast %649 : vector<8x1xi1> to vector<8x1xi1>
    %651 = vector.broadcast %650 : vector<8x1xi1> to vector<8x128xi1>
    %652 = vector.broadcast %cst_120 : f32 to vector<8x128xf32>
    %653 = arith.select %651, %646, %652 : vector<8x128xi1>, vector<8x128xf32>
    %654 = arith.truncf %653 : vector<8x128xf32> to vector<8x128xbf16>
    %655 = arith.index_cast %625 : i32 to index
    %c0_121 = arith.constant 0 : index
    %656 = vector.load %arg14[%655, %c0_121] : memref<128x128xbf16, #tpu.memory_space<vmem>>, vector<8x128xbf16>
    tpu.vector_store %arg14[%655, %c0_121], %654 {strides = array<i32>} : memref<128x128xbf16, #tpu.memory_space<vmem>>, vector<8x128xbf16>,
    %657 = vector.shape_cast %649 : vector<8x1xi1> to vector<8x1xi1>
    %658 = vector.broadcast %657 : vector<8x1xi1> to vector<8x128xi1>
    %659 = arith.select %658, %646, %620 : vector<8x128xi1>, vector<8x128xf32>
    %660 = vector.shape_cast %649 : vector<8x1xi1> to vector<8x1xi1>
    %661 = vector.broadcast %660 : vector<8x1xi1> to vector<8x128xi1>
    %662 = arith.select %661, %644, %623 : vector<8x128xi1>, vector<8x128xf32>
    %c16_i32_122 = arith.constant 16 : i32
    %c0_123 = arith.constant 0 : index
    %c0_124 = arith.constant 0 : index
    %663 = vector.load %arg15[%c0_123, %c0_124] : memref<8x128xf32, #tpu.memory_space<vmem>>, vector<8x128xf32>
    tpu.vector_store %arg15[%c0_123, %c0_124], %659 {strides = array<i32>} : memref<8x128xf32, #tpu.memory_space<vmem>>, vector<8x128xf32>,
    %c0_125 = arith.constant 0 : index
    %c0_126 = arith.constant 0 : index
    %664 = vector.load %arg16[%c0_125, %c0_126] : memref<8x128xf32, #tpu.memory_space<vmem>>, vector<8x128xf32>
    tpu.vector_store %arg16[%c0_125, %c0_126], %662 {strides = array<i32>} : memref<8x128xf32, #tpu.memory_space<vmem>>, vector<8x128xf32>,
    %c0_127 = arith.constant 0 : index
    %c0_128 = arith.constant 0 : index
    %665 = vector.load %arg14[%c0_127, %c0_128] : memref<128x128xbf16, #tpu.memory_space<vmem>>, vector<128x128xbf16>
    %c0_129 = arith.constant 0 : index
    %c0_130 = arith.constant 0 : index
    %666 = vector.load %arg10[%c0_129, %c0_130] : memref<128x256xbf16, #tpu.memory_space<vmem>>, vector<128x256xbf16>
    %cst_131 = arith.constant dense<0.000000e+00> : vector<128x256xf32>
    %667 = tpu.matmul %665, %666, %cst_131 {dimension_numbers = #tpu.dot_dimension_numbers<[1], [0], [0], [1], [0, 0, 1, 1], [], []>} : vector<128x128xbf16>, vector<128x256xbf16>, vector<128x256xf32> -> vector<128x256xf32>
    %c0_132 = arith.constant 0 : index
    %c0_133 = arith.constant 0 : index
    %668 = vector.load %arg11[%c0_132, %c0_133] : memref<1x256xf32, #tpu.memory_space<vmem>>, vector<1x256xf32>
    %669 = vector.broadcast %668 : vector<1x256xf32> to vector<128x256xf32>
    %670 = arith.addf %667, %669 : vector<128x256xf32>
    %c0_134 = arith.constant 0 : index
    %c0_135 = arith.constant 0 : index
    %671 = vector.load %arg12[%c0_134, %c0_135] : memref<128x256xf32, #tpu.memory_space<vmem>>, vector<128x256xf32>
    tpu.vector_store %arg12[%c0_134, %c0_135], %670 {strides = array<i32>} : memref<128x256xf32, #tpu.memory_space<vmem>>, vector<128x256xf32>,
    return
  }
  func.func @transform_0(%arg0: i32) -> (i32, i32) {
    %c0_i32 = arith.constant 0 : i32
    %c0_i32_0 = arith.constant 0 : i32
    return %arg0, %c0_i32 : i32, i32
  }
  func.func @transform_1(%arg0: i32) -> (i32, i32) {
    %c0_i32 = arith.constant 0 : i32
    %c0_i32_0 = arith.constant 0 : i32
    %c0_i32_1 = arith.constant 0 : i32
    return %c0_i32, %c0_i32_0 : i32, i32
  }
  func.func @transform_2(%arg0: i32) -> (i32, i32) {
    %c0_i32 = arith.constant 0 : i32
    %c0_i32_0 = arith.constant 0 : i32
    %c0_i32_1 = arith.constant 0 : i32
    return %c0_i32, %c0_i32_0 : i32, i32
  }
  func.func @transform_3(%arg0: i32) -> (i32, i32) {
    %c0_i32 = arith.constant 0 : i32
    %c0_i32_0 = arith.constant 0 : i32
    %c0_i32_1 = arith.constant 0 : i32
    return %c0_i32, %c0_i32_0 : i32, i32
  }
  func.func @transform_4(%arg0: i32) -> (i32, i32) {
    %c0_i32 = arith.constant 0 : i32
    %c0_i32_0 = arith.constant 0 : i32
    %c0_i32_1 = arith.constant 0 : i32
    return %c0_i32, %c0_i32_0 : i32, i32
  }
  func.func @transform_5(%arg0: i32) -> (i32, i32) {
    %c0_i32 = arith.constant 0 : i32
    %c0_i32_0 = arith.constant 0 : i32
    %c0_i32_1 = arith.constant 0 : i32
    return %c0_i32, %c0_i32_0 : i32, i32
  }
  func.func @transform_6(%arg0: i32) -> (i32, i32) {
    %c0_i32 = arith.constant 0 : i32
    %c0_i32_0 = arith.constant 0 : i32
    %c0_i32_1 = arith.constant 0 : i32
    return %c0_i32, %c0_i32_0 : i32, i32
  }
  func.func @transform_7(%arg0: i32) -> (i32, i32) {
    %c0_i32 = arith.constant 0 : i32
    %c0_i32_0 = arith.constant 0 : i32
    %c0_i32_1 = arith.constant 0 : i32
    return %c0_i32, %c0_i32_0 : i32, i32
  }
  func.func @transform_8(%arg0: i32) -> (i32, i32) {
    %c0_i32 = arith.constant 0 : i32
    %c0_i32_0 = arith.constant 0 : i32
    %c0_i32_1 = arith.constant 0 : i32
    return %c0_i32, %c0_i32_0 : i32, i32
  }
  func.func @transform_9(%arg0: i32) -> (i32, i32) {
    %c0_i32 = arith.constant 0 : i32
    %c0_i32_0 = arith.constant 0 : i32
    %c0_i32_1 = arith.constant 0 : i32
    return %c0_i32, %c0_i32_0 : i32, i32
  }
  func.func @transform_10(%arg0: i32) -> (i32, i32) {
    %c0_i32 = arith.constant 0 : i32
    %c0_i32_0 = arith.constant 0 : i32
    %c0_i32_1 = arith.constant 0 : i32
    return %c0_i32, %c0_i32_0 : i32, i32
  }
  func.func @transform_11(%arg0: i32) -> (i32, i32) {
    %c0_i32 = arith.constant 0 : i32
    %c0_i32_0 = arith.constant 0 : i32
    return %arg0, %c0_i32 : i32, i32
  }
}

</mosaic_0001>

<bundles_post_ra>
// kernel: tpu_custom_call.1
= control target key start
LH: loop header
LB: loop body
LE: loop exit
PB: predicated region body
PF: predicated region fallthrough
CT: control target
= control target key end

     0   :  { %16 = vsyncpa [#allocation7], 0  ;;  %s5986_s0 = inlined_call_operand.hbm [shape: bf16[128,128], index: 0, kind: input, shape index: {}]   ;;  %s5987_s1 = inlined_call_operand.vmem [shape: s32[8,1], index: 1, kind: input, shape index: {}]   ;;  %s5988_s2 = inlined_call_operand.hbm [shape: f32[1,128], index: 2, kind: input, shape index: {}]   ;;  %s5989_s3 = inlined_call_operand.hbm [shape: f32[1,128], index: 3, kind: input, shape index: {}]   ;;  %s5990_s4 = inlined_call_operand.hbm [shape: bf16[128,512], index: 4, kind: input, shape index: {}]   ;;  %s5991_s5 = inlined_call_operand.hbm [shape: bf16[128,512], index: 5, kind: input, shape index: {}]   ;;  %s5992_s6 = inlined_call_operand.hbm [shape: f32[1,512], index: 6, kind: input, shape index: {}]   ;;  %s5993_s7 = inlined_call_operand.vmem [shape: f32[8,128], index: 7, kind: input, shape index: {}]   ;;  %s5994_s8 = inlined_call_operand.vmem [shape: f32[8,128], index: 8, kind: input, shape index: {}]   ;;  %s5995_s9 = inlined_call_operand.hbm [shape: bf16[128,256], index: 9, kind: input, shape index: {}]   ;;  %s5996_s10 = inlined_call_operand.vmem [shape: f32[1,256], index: 10, kind: input, shape index: {}]   ;;  %s5997_s11 = inlined_call_operand.hbm [shape: f32[128,256], index: 11, kind: output, shape index: {}]  }
   0x1   :  { %17 = vsyncpa [#allocation10], 0 }
   0x2   :  { %18 = vsyncpa [#allocation13], 0 }
   0x3   :  { %19 = vsyncpa [#allocation16], 0 }
   0x4   :  { %20 = vsyncpa [#allocation8], 0  ;;  %s4424_s17 = smov [#allocation9]   ;;  %s4425_s19 = smov [#allocation12]  }
   0x5   :  { %s41_s18 = sshll.u32 %s4424_s17, 4  ;;  %s60_s20 = sshll.u32 %s4425_s19, 4  ;;  %s42_s18 = int_to_ptr.vmem [resolvable:$true] %s41_s18  ;;  %s61_s20 = int_to_ptr.vmem [resolvable:$true] %s60_s20 }
   0x6   :  { %s4262_s21 = scalar_lea.vmem %s42_s18, 16  ;;  %s4266_s22 = scalar_lea.vmem %s42_s18, 32 }
   0x7   :  { %p4263_p0 = scmp.ne.s32.totalorder %s42_s18, %s4262_s21  ;;  %p4267_p1 = scmp.lt.s32.totalorder %s42_s18, %s42_s18 }
   0x8   :  { %p4268_p2 = scmp.lt.s32.totalorder %s4266_s22, %s4262_s21 }
   0xa   :  { %p4269_p3 = por %p4268_p2, %p4267_p1 }
   0xc   :  { %p4270_p4 = pnand %p4269_p3, %p4263_p0 }
   0xe   :  { %4273 = shalt.err (!%p4270_p4)
}
   0xf   :  { %44 = dma.hbm_to_vmem [thread:$0]  %s5988_s2, 16, %s42_s18, [#allocation10]  }
  0x10   :  { %s4282_s25 = scalar_lea.vmem %s61_s20, 4096  ;;  %p4287_p6 = scmp.lt.s32.totalorder %s61_s20, %s61_s20 }
  0x11   :  { %p4283_p5 = scmp.ne.s32.totalorder %s61_s20, %s4282_s25  ;;  %p4288_p7 = scmp.lt.s32.totalorder %s4282_s25, %s4282_s25 }
  0x13   :  { %p4289_p8 = por %p4288_p7, %p4287_p6 }
  0x15   :  { %p4290_p9 = pnand %p4289_p8, %p4283_p5 }
  0x17   :  { %4293 = shalt.err (!%p4290_p9)
}
  0x18   :  { %s4426_s26 = smov 256   ;;  %s4427_s27 = smov 16  }
  0x19   :  { %66 = dma.hbm_to_vmem [thread:$0]  %s5990_s4, 4096, %s61_s20, [#allocation13], %s4426_s26, %s4426_s26, %s4427_s27  }
  0x1a   :  { %s4428_s30 = smov [#allocation15]   ;;  %s4429_s13 = smov [#allocation6]  }
  0x1b   :  { %s85_s12 = sshll.u32 %s4428_s30, 4  ;;  %s26_s2 = sshll.u32 %s4429_s13, 4  ;;  %s86_s12 = int_to_ptr.vmem [resolvable:$true] %s85_s12  ;;  %s27_s2 = int_to_ptr.vmem [resolvable:$true] %s26_s2 }
  0x1c   :  { %s4302_s14 = scalar_lea.vmem %s86_s12, 64  ;;  %p4307_p11 = scmp.lt.s32.totalorder %s86_s12, %s86_s12 }
  0x1d   :  { %p4303_p10 = scmp.ne.s32.totalorder %s86_s12, %s4302_s14  ;;  %p4308_p12 = scmp.lt.s32.totalorder %s4302_s14, %s4302_s14 }
  0x1f   :  { %p4309_p13 = por %p4308_p12, %p4307_p11 }
  0x21   :  { %p4310_p0 = pnand %p4309_p13, %p4303_p10 }
  0x23   :  { %4313 = shalt.err (!%p4310_p0)
}
  0x24   :  { %88 = dma.hbm_to_vmem [thread:$0]  %s5992_s6, 64, %s86_s12, [#allocation16]  }
  0x25   :  { %s4322_s17 = scalar_lea.vmem %s27_s2, 1024  ;;  %p4327_p2 = scmp.lt.s32.totalorder %s27_s2, %s27_s2 }
  0x26   :  { %p4323_p1 = scmp.ne.s32.totalorder %s27_s2, %s4322_s17  ;;  %p4328_p3 = scmp.lt.s32.totalorder %s4322_s17, %s4322_s17 }
  0x28   :  { %p4329_p4 = por %p4328_p3, %p4327_p2 }
  0x2a   :  { %p4330_p5 = pnand %p4329_p4, %p4323_p1 }
  0x2c   :  { %4333 = shalt.err (!%p4330_p5)
}
  0x2d   :  { %s4430_s4 = smov 64   ;;  %s4431_s18 = smov 4  }
  0x2e   :  { %32 = dma.hbm_to_vmem [thread:$0]  %s5986_s0, 1024, %s27_s2, [#allocation7], %s4430_s4, %s4430_s4, %s4431_s18  }
  0x2f   :  { %s4432_s21 = smov [#allocation11]   ;;  %s4433_s23 = smov [#allocation14]  }
  0x30   :  { %s51_s22 = sshll.u32 %s4432_s21, 4  ;;  %s72_s24 = sshll.u32 %s4433_s23, 4  ;;  %s52_s22 = int_to_ptr.vmem [resolvable:$true] %s51_s22  ;;  %s73_s24 = int_to_ptr.vmem [resolvable:$true] %s72_s24 }
  0x31   :  { %s4342_s6 = scalar_lea.vmem %s52_s22, 16  ;;  %s4346_s25 = scalar_lea.vmem %s52_s22, 32 }
  0x32   :  { %p4343_p6 = scmp.ne.s32.totalorder %s52_s22, %s4342_s6  ;;  %p4347_p7 = scmp.lt.s32.totalorder %s52_s22, %s52_s22 }
  0x33   :  { %p4348_p8 = scmp.lt.s32.totalorder %s4346_s25, %s4342_s6 }
  0x35   :  { %p4349_p9 = por %p4348_p8, %p4347_p7 }
  0x37   :  { %p4350_p10 = pnand %p4349_p9, %p4343_p6 }
  0x39   :  { %4353 = shalt.err (!%p4350_p10)
}
  0x3a   :  { %54 = dma.hbm_to_vmem [thread:$0]  %s5989_s3, 16, %s52_s22, [#allocation10]  }
  0x3b   :  { %s4362_s30 = scalar_lea.vmem %s73_s24, 4096  ;;  %p4367_p12 = scmp.lt.s32.totalorder %s73_s24, %s73_s24 }
  0x3c   :  { %p4363_p11 = scmp.ne.s32.totalorder %s73_s24, %s4362_s30  ;;  %p4368_p13 = scmp.lt.s32.totalorder %s4362_s30, %s4362_s30 }
  0x3e   :  { %p4369_p0 = por %p4368_p13, %p4367_p12 }
  0x40   :  { %p4370_p1 = pnand %p4369_p0, %p4363_p11 }
  0x42   :  { %4373 = shalt.err (!%p4370_p1)
}
  0x43   :  { %78 = dma.hbm_to_vmem [thread:$0]  %s5991_s5, 4096, %s73_s24, [#allocation13], %s4426_s26, %s4426_s26, %s4427_s27  }
  0x44   :  { %s4434_s13 = smov [#allocation17]  }
  0x45   :  { %s98_s2 = sshll.u32 %s4434_s13, 4  ;;  %s99_s2 = int_to_ptr.vmem [resolvable:$true] %s98_s2 }
  0x46   :  { %s4382_s14 = scalar_lea.vmem %s99_s2, 2048  ;;  %p4387_p3 = scmp.lt.s32.totalorder %s99_s2, %s99_s2 }
  0x47   :  { %p4383_p2 = scmp.ne.s32.totalorder %s99_s2, %s4382_s14  ;;  %p4388_p4 = scmp.lt.s32.totalorder %s4382_s14, %s4382_s14 }
  0x49   :  { %p4389_p5 = por %p4388_p4, %p4387_p3 }
  0x4b   :  { %p4390_p6 = pnand %p4389_p5, %p4383_p2 }
  0x4d   :  { %4393 = shalt.err (!%p4390_p6)
}
  0x4e   :  { %s4435_s3 = smov 128   ;;  %s4436_s15 = smov 8  }
  0x4f   :  { %104 = dma.hbm_to_vmem [thread:$0]  %s5995_s9, 2048, %s99_s2, [#allocation16], %s4435_s3, %s4435_s3, %s4436_s15  }
  0x50   :  { %4414 = dma.done.wait [#allocation7], 1024  }
  0x51   :  { %4415 = vsyncadd [#allocation7], 4294966272 }
  0x52   :  { %4416 = dma.done.wait [#allocation10], 32  }
  0x53   :  { %4417 = vsyncadd [#allocation10], 4294967264 }
  0x54   :  { %4418 = dma.done.wait [#allocation13], 8192  }
  0x55   :  { %4419 = vsyncadd [#allocation13], 4294959104 }
  0x56   :  { %4420 = dma.done.wait [#allocation16], 2112  }
  0x57   :  { %4421 = vsyncadd [#allocation16], 4294965184  ;;  %v3737_v0 = vld [vmem:[#allocation6 + $0x20] sm:$0xff]   ;;  %v3738_v1 = vld [vmem:[#allocation6 + $0x28] sm:$0xff]  }
  0x58   :  { %v3720_v2 = vunpack.c.l.bf16 %v3737_v0  ;;  %v3724_v3 = vunpack.c.l.bf16 %v3738_v1  ;;  %v4526_v4 = vld [vmem:[#allocation6 + $0x30] sm:$0xff]   ;;  %v3721_v5 = vunpack.c.h.bf16 %v3737_v0  ;;  %v3725_v6 = vunpack.c.h.bf16 %v3738_v1  ;;  %v4528_v7 = vld [vmem:[#allocation6 + $0x38] sm:$0xff]   ;;  %v4532_v10 = vld [vmem:[#allocation6] sm:$0xff]  }
  0x59   :  { %v3728_v8 = vunpack.c.l.bf16 %v4526_v4  ;;  %v3729_v9 = vunpack.c.h.bf16 %v4526_v4  ;;  %v3732_v11 = vunpack.c.l.bf16 %v4528_v7  ;;  %v3733_v12 = vunpack.c.h.bf16 %v4528_v7  ;;  %v4536_v13 = vld [vmem:[#allocation6 + $0x8] sm:$0xff]   ;;  %v4540_v16 = vld [vmem:[#allocation6 + $0x10] sm:$0xff]   ;;  %v4548_v19 = vld [vmem:[#allocation6 + $0x18] sm:$0xff]  }
  0x5a   :  { %186 = vadd.xlane.f32.xlu0 %v3720_v2  ;;  %190 = vadd.xlane.f32.xlu1 %v3724_v3  ;;  %v3704_v14 = vunpack.c.l.bf16 %v4532_v10  ;;  %v3705_v15 = vunpack.c.h.bf16 %v4532_v10  ;;  %v3708_v17 = vunpack.c.l.bf16 %v4536_v13  ;;  %v3709_v18 = vunpack.c.h.bf16 %v4536_v13  ;;  %v3774_v24 = vld [vmem:[#allocation12 + $0xe4] ss:$16 sps:$4 sm:$0xff]   ;;  %v3776_v25 = vld [vmem:[#allocation12 + $0xe0] ss:$16 sps:$4 sm:$0xff]  }
  0x5b   :  { %v3712_v20 = vunpack.c.l.bf16 %v4540_v16  ;;  %v3713_v21 = vunpack.c.h.bf16 %v4540_v16  ;;  %v3716_v22 = vunpack.c.l.bf16 %v4548_v19  ;;  %v3717_v23 = vunpack.c.h.bf16 %v4548_v19  ;;  %3741 = vmatprep.subr.bf16.mxu1 %v3774_v24  ;;  %615 = vmatprep.subr.bf16.mxu0 %v3774_v24  ;;  %v3777_v61 = vld [vmem:[#allocation12 + $0xc4] ss:$16 sps:$4 sm:$0xff]   ;;  %v3779_v62 = vld [vmem:[#allocation12 + $0xc0] ss:$16 sps:$4 sm:$0xff]  }
  0x5c   :  { %3749 = vmatpush1.bf16.msra.mxu1 %v3776_v25  ;;  %616 = vmatpush1.bf16.msra.mxu0 %v3776_v25  ;;  %v3780_v7 = vld [vmem:[#allocation12 + $0xa4] ss:$16 sps:$4 sm:$0xff]   ;;  %v3791_v19 = vld [vmem:[#allocation12 + $0x40] ss:$16 sps:$4 sm:$0xff]  }
  0x5d   :  { %3742 = vmatprep.subr.bf16.mxu1 %v3777_v61  ;;  %617 = vmatprep.subr.bf16.mxu0 %v3777_v61  ;;  %v3783_v25 = vld [vmem:[#allocation12 + $0x84] ss:$16 sps:$4 sm:$0xff]  }
  0x5e   :  { %188 = vadd.xlane.f32.xlu0 %v3721_v5  ;;  %192 = vadd.xlane.f32.xlu1 %v3725_v6 }
  0x60   :  { %3750 = vmatpush1.bf16.msra.mxu1 %v3779_v62  ;;  %618 = vmatpush1.bf16.msra.mxu0 %v3779_v62 }
  0x61   :  { %3743 = vmatprep.subr.bf16.mxu1 %v3780_v7  ;;  %619 = vmatprep.subr.bf16.mxu0 %v3780_v7 }
  0x62   :  { %194 = vadd.xlane.f32.xlu0 %v3728_v8  ;;  %196 = vadd.xlane.f32.xlu1 %v3729_v9 }
  0x66   :  { %198 = vadd.xlane.f32.xlu0 %v3732_v11  ;;  %200 = vadd.xlane.f32.xlu1 %v3733_v12 }
  0x6a   :  { %170 = vadd.xlane.f32.xlu0 %v3704_v14  ;;  %172 = vadd.xlane.f32.xlu1 %v3705_v15 }
  0x6e   :  { %174 = vadd.xlane.f32.xlu0 %v3708_v17  ;;  %176 = vadd.xlane.f32.xlu1 %v3709_v18 }
  0x72   :  { %178 = vadd.xlane.f32.xlu0 %v3712_v20  ;;  %180 = vadd.xlane.f32.xlu1 %v3713_v21 }
  0x76   :  { %182 = vadd.xlane.f32.xlu0 %v3716_v22  ;;  %184 = vadd.xlane.f32.xlu1 %v3717_v23 }
  0xe3   :  { %v187_v26 = vpop.xlane.xlu0 %186  ;;  %v191_v27 = vpop.xlane.xlu1 %190 }
  0xe4   :  { %v211_v28 = vmul.f32 0.0078125, %v187_v26  ;;  %v213_v29 = vmul.f32 0.0078125, %v191_v27  ;;  %v3785_v27 = vld [vmem:[#allocation12 + $0x80] ss:$16 sps:$4 sm:$0xff]  }
  0xe6   :  { %v4566_v30 = vsub.f32 %v3720_v2, %v211_v28  ;;  %v4568_v31 = vsub.f32 %v3724_v3, %v213_v29 }
  0xe7   :  { %v189_v32 = vpop.xlane.xlu0 %188  ;;  %v193_v33 = vpop.xlane.xlu1 %192 }
  0xe8   :  { %v212_v34 = vmul.f32 0.0078125, %v189_v32  ;;  %v243_v35 = vmul.f32 %v4566_v30, %v4566_v30  ;;  %v214_v36 = vmul.f32 0.0078125, %v193_v33  ;;  %v245_v39 = vmul.f32 %v4568_v31, %v4568_v31 }
  0xea   :  { %v4572_v37 = vsub.f32 %v3721_v5, %v212_v34  ;;  %267 = vadd.xlane.f32.xlu0 %v243_v35  ;;  %v4574_v38 = vsub.f32 %v3725_v6, %v214_v36  ;;  %v3786_v34 = vld [vmem:[#allocation12 + $0x64] ss:$16 sps:$4 sm:$0xff]   ;;  %v3788_v36 = vld [vmem:[#allocation12 + $0x60] ss:$16 sps:$4 sm:$0xff]  }
  0xeb   :  { %v195_v40 = vpop.xlane.xlu0 %194  ;;  %v197_v41 = vpop.xlane.xlu1 %196 }
  0xec   :  { %v215_v42 = vmul.f32 0.0078125, %v195_v40  ;;  %v244_v43 = vmul.f32 %v4572_v37, %v4572_v37  ;;  %v216_v44 = vmul.f32 0.0078125, %v197_v41  ;;  %v246_v47 = vmul.f32 %v4574_v38, %v4574_v38  ;;  %v3789_v40 = vld [vmem:[#allocation12 + $0x44] ss:$16 sps:$4 sm:$0xff]   ;;  %v3794_v41 = vld [vmem:[#allocation12 + $0x20] ss:$16 sps:$4 sm:$0xff]  }
  0xee   :  { %v4580_v45 = vsub.f32 %v3728_v8, %v215_v42  ;;  %269 = vadd.xlane.f32.xlu1 %v244_v43  ;;  %271 = vadd.xlane.f32.xlu0 %v245_v39  ;;  %v4582_v46 = vsub.f32 %v3729_v9, %v216_v44  ;;  %v3795_v42 = vld [vmem:[#allocation12 + $0x4] ss:$16 sps:$4 sm:$0xff]   ;;  %v3797_v43 = vld [vmem:[#allocation12] ss:$16 sps:$4 sm:$0xff]   ;;  %v3800_v44 = vld [vmem:[#allocation12 + $0xec] ss:$16 sps:$4 sm:$0xff]  }
  0xef   :  { %v199_v48 = vpop.xlane.xlu0 %198  ;;  %v201_v49 = vpop.xlane.xlu1 %200 }
  0xf0   :  { %v217_v50 = vmul.f32 0.0078125, %v199_v48  ;;  %v247_v51 = vmul.f32 %v4580_v45, %v4580_v45  ;;  %v218_v52 = vmul.f32 0.0078125, %v201_v49  ;;  %v248_v55 = vmul.f32 %v4582_v46, %v4582_v46  ;;  %v4650_v48 = vld [vmem:[#allocation14 + $0xe4] ss:$16 sps:$4 sm:$0xff]   ;;  %v4656_v49 = vld [vmem:[%s5987_s1] sm:$0xff] }
  0xf1   :  { %vm1219_vm0 = vcmp.gt.s32.totalorder %v4656_v49, 0  ;;  %vm2406_vm1 = vcmp.gt.s32.totalorder %v4656_v49, 9  ;;  %vm2670_vm2 = vcmp.gt.s32.totalorder %v4656_v49, 11  ;;  %vm2934_vm3 = vcmp.gt.s32.totalorder %v4656_v49, 13 }
  0xf2   :  { %v4588_v53 = vsub.f32 %v3732_v11, %v217_v50  ;;  %273 = vadd.xlane.f32.xlu1 %v246_v47  ;;  %275 = vadd.xlane.f32.xlu0 %v247_v51  ;;  %v4590_v54 = vsub.f32 %v3733_v12, %v218_v52  ;;  %v3782_v11 = vld [vmem:[#allocation12 + $0xa0] ss:$16 sps:$4 sm:$0xff]   ;;  %v6000_v47 = vmov 0   ;;  %vm3198_vm4 = vcmp.gt.s32.totalorder %v4656_v49, 15 }
  0xf3   :  { %v171_v56 = vpop.xlane.xlu0 %170  ;;  %v173_v57 = vpop.xlane.xlu1 %172  ;;  %3751 = vmatpush1.bf16.msra.mxu1 %v3782_v11  ;;  %620 = vmatpush1.bf16.msra.mxu0 %v3782_v11  ;;  %v1220_v52 = vsel %vm1219_vm0, 1, %v6000_v47  ;;  %vm1350_vm5 = vcmp.gt.s32.totalorder %v4656_v49, 1  ;;  %vm1482_vm6 = vcmp.gt.s32.totalorder %v4656_v49, 2  ;;  %vm1614_vm7 = vcmp.gt.s32.totalorder %v4656_v49, 3 }
  0xf4   :  { %v203_v58 = vmul.f32 0.0078125, %v171_v56  ;;  %v249_v59 = vmul.f32 %v4588_v53, %v4588_v53  ;;  %v204_v60 = vmul.f32 0.0078125, %v173_v57  ;;  %v250_v1 = vmul.f32 %v4590_v54, %v4590_v54  ;;  %3744 = vmatprep.subr.bf16.mxu1 %v3783_v25  ;;  %621 = vmatprep.subr.bf16.mxu0 %v3783_v25 }
  0xf5   :  { %687 = vmatprep.mubr.bf16.mxu1 %v6000_v47  ;;  %647 = vmatprep.mubr.bf16.mxu0 %v6000_v47  ;;  %v2407_v56 = vsel %vm2406_vm1, 1, %v6000_v47  ;;  %vm1746_vm8 = vcmp.gt.s32.totalorder %v4656_v49, 4  ;;  %vm1878_vm9 = vcmp.gt.s32.totalorder %v4656_v49, 5  ;;  %vm2010_vm10 = vcmp.gt.s32.totalorder %v4656_v49, 6 }
  0xf6   :  { %v4598_v63 = vsub.f32 %v3704_v14, %v203_v58  ;;  %277 = vadd.xlane.f32.xlu1 %v248_v55  ;;  %279 = vadd.xlane.f32.xlu0 %v249_v59  ;;  %v4602_v0 = vsub.f32 %v3705_v15, %v204_v60  ;;  %vm2142_vm11 = vcmp.gt.s32.totalorder %v4656_v49, 7  ;;  %vm2274_vm12 = vcmp.gt.s32.totalorder %v4656_v49, 8 }
  0xf7   :  { %v175_v2 = vpop.xlane.xlu0 %174  ;;  %v177_v3 = vpop.xlane.xlu1 %176  ;;  %3752 = vmatpush1.bf16.msra.mxu1 %v3785_v27  ;;  %622 = vmatpush1.bf16.msra.mxu0 %v3785_v27  ;;  %vm2538_vm13 = vcmp.gt.s32.totalorder %v4656_v49, 10  ;;  %vm2802_vm14 = vcmp.gt.s32.totalorder %v4656_v49, 12  ;;  %vm3066_vm15 = vcmp.gt.s32.totalorder %v4656_v49, 14 }
  0xf8   :  { %v205_v4 = vmul.f32 0.0078125, %v175_v2  ;;  %v235_v5 = vmul.f32 %v4598_v63, %v4598_v63  ;;  %v206_v6 = vmul.f32 0.0078125, %v177_v3  ;;  %v236_v10 = vmul.f32 %v4602_v0, %v4602_v0  ;;  %3745 = vmatprep.subr.bf16.mxu1 %v3786_v34  ;;  %623 = vmatprep.subr.bf16.mxu0 %v3786_v34 }
  0xf9   :  { %3772 = vset.pattern.permute.xlu0 %v6000_v47  ;;  %3773 = vset.pattern.permute.xlu1 %v6000_v47 }
  0xfa   :  { %v4610_v8 = vsub.f32 %v3708_v17, %v205_v4  ;;  %281 = vadd.xlane.f32.xlu1 %v250_v1  ;;  %251 = vadd.xlane.f32.xlu0 %v235_v5  ;;  %v4614_v9 = vsub.f32 %v3709_v18, %v206_v6 }
  0xfb   :  { %v179_v12 = vpop.xlane.xlu0 %178  ;;  %v181_v14 = vpop.xlane.xlu1 %180  ;;  %3753 = vmatpush1.bf16.msra.mxu1 %v3788_v36  ;;  %624 = vmatpush1.bf16.msra.mxu0 %v3788_v36 }
  0xfc   :  { %v207_v15 = vmul.f32 0.0078125, %v179_v12  ;;  %v237_v24 = vmul.f32 %v4610_v8, %v4610_v8  ;;  %v208_v17 = vmul.f32 0.0078125, %v181_v14  ;;  %v238_v26 = vmul.f32 %v4614_v9, %v4614_v9  ;;  %3746 = vmatprep.subr.bf16.mxu1 %v3789_v40  ;;  %625 = vmatprep.subr.bf16.mxu0 %v3789_v40 }
  0xfe   :  { %v4622_v13 = vsub.f32 %v3712_v20, %v207_v15  ;;  %253 = vadd.xlane.f32.xlu1 %v236_v10  ;;  %255 = vadd.xlane.f32.xlu0 %v237_v24  ;;  %v4626_v18 = vsub.f32 %v3713_v21, %v208_v17 }
  0xff   :  { %v183_v28 = vpop.xlane.xlu0 %182  ;;  %v185_v29 = vpop.xlane.xlu1 %184  ;;  %3754 = vmatpush1.bf16.msra.mxu1 %v3791_v19  ;;  %626 = vmatpush1.bf16.msra.mxu0 %v3791_v19 }
 0x100   :  { %v209_v32 = vmul.f32 0.0078125, %v183_v28  ;;  %v239_v33 = vmul.f32 %v4622_v13, %v4622_v13  ;;  %v210_v20 = vmul.f32 0.0078125, %v185_v29  ;;  %v240_v35 = vmul.f32 %v4626_v18, %v4626_v18  ;;  %v4663_v29 = vld [vmem:[#allocation9] ss:$0 sm:$0xff] }
 0x102   :  { %v4634_v16 = vsub.f32 %v3716_v22, %v209_v32  ;;  %257 = vadd.xlane.f32.xlu1 %v238_v26  ;;  %259 = vadd.xlane.f32.xlu0 %v239_v33  ;;  %v4638_v21 = vsub.f32 %v3717_v23, %v210_v20  ;;  %v3792_v23 = vld [vmem:[#allocation12 + $0x24] ss:$16 sps:$4 sm:$0xff]  }
 0x103   :  { %3747 = vmatprep.subr.bf16.mxu1 %v3792_v23  ;;  %627 = vmatprep.subr.bf16.mxu0 %v3792_v23 }
 0x104   :  { %v241_v39 = vmul.f32 %v4634_v16, %v4634_v16  ;;  %v242_v22 = vmul.f32 %v4638_v21, %v4638_v21  ;;  %3755 = vmatpush1.bf16.msra.mxu1 %v3794_v41  ;;  %628 = vmatpush1.bf16.msra.mxu0 %v3794_v41 }
 0x105   :  { %3748 = vmatprep.subr.bf16.mxu1 %v3795_v42  ;;  %629 = vmatprep.subr.bf16.mxu0 %v3795_v42  ;;  %v4667_v42 = vld [vmem:[#allocation11] ss:$0 sm:$0xff] }
 0x106   :  { %261 = vadd.xlane.f32.xlu1 %v240_v35  ;;  %263 = vadd.xlane.f32.xlu0 %v241_v39 }
 0x108   :  { %3756 = vmatpush1.bf16.msra.mxu1 %v3797_v43  ;;  %630 = vmatpush1.bf16.msra.mxu0 %v3797_v43 }
 0x109   :  { %728 = vmatprep.subr.bf16.mxu1 %v3800_v44  ;;  %1108 = vmatprep.subr.bf16.mxu0 %v4650_v48 }
 0x10a   :  { %265 = vadd.xlane.f32.xlu1 %v242_v22 }
 0x11c   :  { %1222 = vperm.xlu0 %3772, %v1220_v52  }
 0x120   :  { %2409 = vperm.xlu0 %3772, %v2407_v56  }
 0x173   :  { %v268_v50 = vpop.xlane.xlu0 %267 }
 0x174   :  { %v291_v51 = vmul.f32 0.0078125, %v268_v50 }
 0x176   :  { %v307_v55 = vadd.f32 1e-05, %v291_v51 }
 0x177   :  { %v270_v57 = vpop.xlane.xlu1 %269  ;;  %v272_v58 = vpop.xlane.xlu0 %271 }
 0x178   :  { %3902 = vrsqrt.f32 %v307_v55  ;;  %v292_v59 = vmul.f32 0.0078125, %v270_v57  ;;  %v293_v60 = vmul.f32 0.0078125, %v272_v58 }
 0x17a   :  { %v308_v61 = vadd.f32 1e-05, %v292_v59  ;;  %v309_v62 = vadd.f32 1e-05, %v293_v60  ;;  %v3798_v60 = vld [vmem:[#allocation12 + $0xe8] ss:$16 sps:$4 sm:$0xff]  }
 0x17b   :  { %v274_v1 = vpop.xlane.xlu1 %273  ;;  %v276_v2 = vpop.xlane.xlu0 %275 }
 0x17c   :  { %3904 = vrsqrt.f32 %v308_v61  ;;  %v294_v3 = vmul.f32 0.0078125, %v274_v1  ;;  %v295_v4 = vmul.f32 0.0078125, %v276_v2  ;;  %v3803_v1 = vld [vmem:[#allocation12 + $0xcc] ss:$16 sps:$4 sm:$0xff]  }
 0x17d   :  { %3906 = vrsqrt.f32 %v309_v62 }
 0x17e   :  { %v310_v5 = vadd.f32 1e-05, %v294_v3  ;;  %v311_v11 = vadd.f32 1e-05, %v295_v4 }
 0x17f   :  { %v278_v6 = vpop.xlane.xlu1 %277  ;;  %v280_v7 = vpop.xlane.xlu0 %279 }
 0x180   :  { %3908 = vrsqrt.f32 %v310_v5  ;;  %v296_v10 = vmul.f32 0.0078125, %v278_v6  ;;  %v297_v26 = vmul.f32 0.0078125, %v280_v7 }
 0x182   :  { %v312_v12 = vadd.f32 1e-05, %v296_v10  ;;  %v313_v39 = vadd.f32 1e-05, %v297_v26  ;;  %v3801_v10 = vld [vmem:[#allocation12 + $0xc8] ss:$16 sps:$4 sm:$0xff]  }
 0x183   :  { %v282_v14 = vpop.xlane.xlu1 %281  ;;  %v252_v15 = vpop.xlane.xlu0 %251 }
 0x184   :  { %3910 = vrsqrt.f32 %v312_v12  ;;  %v298_v24 = vmul.f32 0.0078125, %v282_v14  ;;  %v283_v17 = vmul.f32 0.0078125, %v252_v15  ;;  %v3806_v12 = vld [vmem:[#allocation12 + $0xac] ss:$16 sps:$4 sm:$0xff]  }
 0x185   :  { %v3903_v25 = vpop.eup %3902  ;;  %3912 = vrsqrt.f32 %v311_v11 }
 0x186   :  { %v299_v27 = vadd.f32 1e-05, %v283_v17  ;;  %v339_v28 = vmul.f32 %v3903_v25, %v4566_v30  ;;  %v314_v32 = vadd.f32 1e-05, %v298_v24 }
 0x187   :  { %v254_v33 = vpop.xlane.xlu1 %253  ;;  %v256_v20 = vpop.xlane.xlu0 %255 }
 0x188   :  { %v284_v34 = vmul.f32 0.0078125, %v254_v33  ;;  %v285_v35 = vmul.f32 0.0078125, %v256_v20  ;;  %3914 = vrsqrt.f32 %v299_v27  ;;  %v362_v40 = vmul.f32 %v4663_v29, %v339_v28  ;;  %v3804_v27 = vld [vmem:[#allocation12 + $0xa8] ss:$16 sps:$4 sm:$0xff]  }
 0x189   :  { %v3905_v36 = vpop.eup %3904  ;;  %3916 = vrsqrt.f32 %v314_v32 }
 0x18a   :  { %v3907_v22 = vpop.eup %3906  ;;  %v300_v19 = vadd.f32 1e-05, %v284_v34  ;;  %v301_v23 = vadd.f32 1e-05, %v285_v35  ;;  %v340_v41 = vmul.f32 %v3905_v36, %v4572_v37  ;;  %v385_v55 = vadd.f32 %v4667_v42, %v362_v40  ;;  %v3809_v34 = vld [vmem:[#allocation12 + $0x8c] ss:$16 sps:$4 sm:$0xff]  }
 0x18b   :  { %v258_v30 = vpop.xlane.xlu1 %257  ;;  %v260_v43 = vpop.xlane.xlu0 %259  ;;  %v341_v56 = vmul.f32 %v3907_v22, %v4568_v31 }
 0x18c   :  { %3918 = vrsqrt.f32 %v300_v19  ;;  %v286_v44 = vmul.f32 0.0078125, %v258_v30  ;;  %v363_v50 = vmul.f32 %v4663_v29, %v340_v41  ;;  %v287_v52 = vmul.f32 0.0078125, %v260_v43  ;;  %v3807_v19 = vld [vmem:[#allocation12 + $0x88] ss:$16 sps:$4 sm:$0xff]  }
 0x18d   :  { %v3909_v51 = vpop.eup %3908  ;;  %3920 = vrsqrt.f32 %v313_v39  ;;  %v364_v7 = vmul.f32 %v4663_v29, %v341_v56 }
 0x18e   :  { %3922 = vrsqrt.f32 %v301_v23  ;;  %v302_v57 = vadd.f32 1e-05, %v286_v44  ;;  %v386_v37 = vadd.f32 %v4667_v42, %v363_v50  ;;  %v342_v58 = vmul.f32 %v3909_v51, %v4574_v38  ;;  %v3812_v23 = vld [vmem:[#allocation12 + $0x6c] ss:$16 sps:$4 sm:$0xff]  }
 0x18f   :  { %v262_v59 = vpop.xlane.xlu1 %261  ;;  %v303_v5 = vadd.f32 1e-05, %v287_v52  ;;  %v264_v31 = vpop.xlane.xlu0 %263  ;;  %v387_v26 = vadd.f32 %v4667_v42, %v364_v7  ;;  %v4722_v7 = vld [vmem:[#allocation14 + $0xa4] ss:$16 sps:$4 sm:$0xff]  }
 0x190   :  { %3924 = vrsqrt.f32 %v302_v57  ;;  %v288_v61 = vmul.f32 0.0078125, %v262_v59  ;;  %v4674_v62 = vpack.c.bf16 %v386_v37, %v385_v55  ;;  %v365_v3 = vmul.f32 %v4663_v29, %v342_v58  ;;  %v3810_v57 = vld [vmem:[#allocation12 + $0x68] ss:$16 sps:$4 sm:$0xff]   ;;  %v4702_v37 = vld [vmem:[#allocation14 + $0xe0] ss:$16 sps:$4 sm:$0xff]  }
 0x191   :  { %v3911_v2 = vpop.eup %3910  ;;  %v289_v24 = vmul.f32 0.0078125, %v264_v31  ;;  %v3818_v59 = vld [vmem:[#allocation12 + $0x4c] ss:$16 sps:$4 sm:$0xff]  }
 0x192   :  { %v3913_v4 = vpop.eup %3912  ;;  %v304_v6 = vadd.f32 1e-05, %v288_v61  ;;  %688 = vmatmul.mubr.bf16.vlgmr.msra.gmra.mxu1 %v4674_v62  ;;  %v388_v14 = vadd.f32 %v4667_v42, %v365_v3  ;;  %v344_v15 = vmul.f32 %v3911_v2, %v4582_v46  ;;  %v3816_v3 = vld [vmem:[#allocation12 + $0x48] ss:$16 sps:$4 sm:$0xff]  }
 0x193   :  { %729 = vmatpush1.bf16.msra.mxu1 %v3798_v60  ;;  %v266_v38 = vpop.xlane.xlu1 %265  ;;  %697 = vmatprep.mubr.bf16.mxu1 %v6000_v47  ;;  %v343_v17 = vmul.f32 %v3913_v4, %v4580_v45  ;;  %v305_v36 = vadd.f32 1e-05, %v289_v24  ;;  %v4708_v60 = vld [vmem:[#allocation14 + $0xc4] ss:$16 sps:$4 sm:$0xff]   ;;  %v4717_v4 = vld [vmem:[#allocation14 + $0xc0] ss:$16 sps:$4 sm:$0xff]  }
 0x194   :  { %3926 = vrsqrt.f32 %v304_v6  ;;  %v290_v11 = vmul.f32 0.0078125, %v266_v38  ;;  %730 = vmatprep.subr.bf16.mxu1 %v3803_v1  ;;  %v4685_v20 = vpack.c.bf16 %v388_v14, %v387_v26  ;;  %v367_v35 = vmul.f32 %v4663_v29, %v344_v15  ;;  %v3822_v14 = vld [vmem:[#allocation12 + $0x28] ss:$16 sps:$4 sm:$0xff]   ;;  %v4731_v15 = vld [vmem:[#allocation14 + $0xa0] ss:$16 sps:$4 sm:$0xff]  }
 0x195   :  { %v3915_v25 = vpop.eup %3914  ;;  %3928 = vrsqrt.f32 %v303_v5  ;;  %v366_v45 = vmul.f32 %v4663_v29, %v343_v17  ;;  %v3824_v5 = vld [vmem:[#allocation12 + $0x2c] ss:$16 sps:$4 sm:$0xff]  }
 0x196   :  { %v331_v28 = vmul.f32 %v3915_v25, %v4598_v63  ;;  %v3917_v32 = vpop.eup %3916  ;;  %v306_v33 = vadd.f32 1e-05, %v290_v11  ;;  %v390_v30 = vadd.f32 %v4667_v42, %v367_v35  ;;  %v4736_v25 = vld [vmem:[#allocation14 + $0x84] ss:$16 sps:$4 sm:$0xff]  }
 0x197   :  { %731 = vmatpush1.bf16.msra.mxu1 %v3801_v10  ;;  %v346_v43 = vmul.f32 %v3917_v32, %v4590_v54  ;;  %v3828_v32 = vld [vmem:[#allocation12 + $0x8] ss:$16 sps:$4 sm:$0xff]  }
 0x198   :  { %732 = vmatprep.subr.bf16.mxu1 %v3806_v12  ;;  %v354_v22 = vmul.f32 %v4663_v29, %v331_v28  ;;  %3930 = vrsqrt.f32 %v306_v33  ;;  %v4742_v33 = vld [vmem:[#allocation14 + $0x80] ss:$16 sps:$4 sm:$0xff]  }
 0x199   :  { %v3919_v46 = vpop.eup %3918  ;;  %3932 = vrsqrt.f32 %v305_v36  ;;  %v369_v61 = vmul.f32 %v4663_v29, %v346_v43 }
 0x19a   :  { %v3921_v39 = vpop.eup %3920  ;;  %698 = vmatmul.mubr.bf16.gmra.mxu1 %v4685_v20  ;;  %v332_v40 = vmul.f32 %v3919_v46, %v4602_v0  ;;  %v389_v0 = vadd.f32 %v4667_v42, %v366_v45  ;;  %v377_v51 = vadd.f32 %v4667_v42, %v354_v22  ;;  %v4748_v46 = vld [vmem:[#allocation14 + $0x64] ss:$16 sps:$4 sm:$0xff]   ;;  %v4758_v22 = vld [vmem:[#allocation14 + $0x60] ss:$16 sps:$4 sm:$0xff]  }
 0x19b   :  { %v3923_v63 = vpop.eup %3922  ;;  %733 = vmatpush1.bf16.msra.mxu1 %v3804_v27  ;;  %707 = vmatprep.mubr.bf16.mxu1 %v6000_v47  ;;  %v345_v50 = vmul.f32 %v3921_v39, %v4588_v53  ;;  %v392_v31 = vadd.f32 %v4667_v42, %v369_v61  ;;  %v4819_v61 = vld [vmem:[#allocation14 + $0x68] ss:$16 sps:$4 sm:$0xff]  }
 0x19c   :  { %734 = vmatprep.subr.bf16.mxu1 %v3809_v34  ;;  %v355_v41 = vmul.f32 %v4663_v29, %v332_v40  ;;  %v333_v55 = vmul.f32 %v3923_v63, %v4610_v8  ;;  %v4706_v58 = vpack.c.bf16 %v390_v30, %v389_v0  ;;  %v4745_v34 = vld [vmem:[#allocation14 + $0xec] ss:$16 sps:$4 sm:$0xff]   ;;  %v4756_v40 = vld [vmem:[#allocation14 + $0xe8] ss:$16 sps:$4 sm:$0xff]  }
 0x19d   :  { %v3925_v44 = vpop.eup %3924  ;;  %v4773_v30 = vld [vmem:[#allocation14 + $0xc8] ss:$16 sps:$4 sm:$0xff]   ;;  %v4780_v0 = vld [vmem:[#allocation14 + $0xac] ss:$16 sps:$4 sm:$0xff]  }
 0x19e   :  { %v378_v52 = vadd.f32 %v4667_v42, %v355_v41  ;;  %v334_v56 = vmul.f32 %v3925_v44, %v4614_v9  ;;  %v356_v8 = vmul.f32 %v4663_v29, %v333_v55  ;;  %v368_v9 = vmul.f32 %v4663_v29, %v345_v50  ;;  %v4771_v41 = vld [vmem:[#allocation14 + $0x40] ss:$16 sps:$4 sm:$0xff]   ;;  %v4778_v44 = vld [vmem:[#allocation14 + $0x24] ss:$16 sps:$4 sm:$0xff]   ;;  %v4793_v55 = vld [vmem:[#allocation14 + $0xa8] ss:$16 sps:$4 sm:$0xff]  }
 0x19f   :  { %735 = vmatpush1.bf16.msra.mxu1 %v3807_v19  ;;  %v4787_v50 = vld [vmem:[#allocation14 + $0x20] ss:$16 sps:$4 sm:$0xff]  }
 0x1a0   :  { %736 = vmatprep.subr.bf16.mxu1 %v3812_v23  ;;  %v4704_v54 = vpack.c.bf16 %v378_v52, %v377_v51  ;;  %v357_v53 = vmul.f32 %v4663_v29, %v334_v56  ;;  %v379_v10 = vadd.f32 %v4667_v42, %v356_v8  ;;  %v391_v11 = vadd.f32 %v4667_v42, %v368_v9  ;;  %v4765_v23 = vld [vmem:[#allocation14 + $0xcc] ss:$16 sps:$4 sm:$0xff]   ;;  %v4790_v52 = vld [vmem:[#allocation14 + $0x4] ss:$16 sps:$4 sm:$0xff]   ;;  %v4828_v8 = vld [vmem:[#allocation14 + $0x48] ss:$16 sps:$4 sm:$0xff]  }
 0x1a1   :  { %v3927_v1 = vpop.eup %3926  ;;  %v4795_v56 = vld [vmem:[#allocation14 + $0x8c] ss:$16 sps:$4 sm:$0xff]  }
 0x1a2   :  { %648 = vmatmul.mubr.bf16.vlgmr.msra.gmra.mxu0 %v4704_v54  ;;  %708 = vmatmul.mubr.bf16.gmra.mxu1 %v4706_v58  ;;  %v3929_v2 = vpop.eup %3928  ;;  %v380_v6 = vadd.f32 %v4667_v42, %v357_v53  ;;  %v336_v38 = vmul.f32 %v3927_v1, %v4626_v18  ;;  %v4733_v17 = vpack.c.bf16 %v392_v31, %v391_v11  ;;  %v3830_v18 = vld [vmem:[#allocation12 + $0xc] ss:$16 sps:$4 sm:$0xff]   ;;  %v2935_v31 = vsel %vm2934_vm3, 1, %v6000_v47 }
 0x1a3   :  { %737 = vmatpush1.bf16.msra.mxu1 %v3810_v57  ;;  %1109 = vmatpush1.bf16.msra.mxu0 %v4702_v37  ;;  %v335_v12 = vmul.f32 %v3929_v2, %v4622_v13  ;;  %v4804_v57 = vld [vmem:[%s5993_s7] sm:$0xff]  ;;  %v4836_v2 = vld [vmem:[#allocation14 + $0x28] ss:$16 sps:$4 sm:$0xff]  }
 0x1a4   :  { %738 = vmatprep.subr.bf16.mxu1 %v3818_v59  ;;  %1110 = vmatprep.subr.bf16.mxu0 %v4708_v60  ;;  %v394_v24 = vpack.c.bf16 %v380_v6, %v379_v10  ;;  %v359_v26 = vmul.f32 %v4663_v29, %v336_v38  ;;  %v947_v59 = vpack.c.bf16 %v4804_v57, %v4804_v57  ;;  %v4815_v53 = vld [vmem:[#allocation14 + $0x6c] ss:$16 sps:$4 sm:$0xff]   ;;  %v2671_v6 = vsel %vm2670_vm2, 1, %v6000_v47  ;;  %v4895_v38 = vld [vmem:[#allocation15] sm:$0xf] }
 0x1a5   :  { %657 = vmatprep.mubr.bf16.mxu0 %v6000_v47  ;;  %717 = vmatprep.mubr.bf16.mxu1 %v6000_v47  ;;  %v3931_v27 = vpop.eup %3930  ;;  %v358_v13 = vmul.f32 %v4663_v29, %v335_v12  ;;  %v4821_v1 = vld [vmem:[#allocation14 + $0x4c] ss:$16 sps:$4 sm:$0xff]  }
 0x1a6   :  { %v3933_v28 = vpop.eup %3932  ;;  %v382_v35 = vadd.f32 %v4667_v42, %v359_v26  ;;  %v338_v36 = vmul.f32 %v3931_v27, %v4638_v21  ;;  %v4762_v21 = vld [vmem:[#allocation14 + $0x44] ss:$16 sps:$4 sm:$0xff]   ;;  %v4832_v9 = vld [vmem:[#allocation14 + $0x2c] ss:$16 sps:$4 sm:$0xff]   ;;  %2673 = vperm.xlu0 %3772, %v2671_v6  }
 0x1a7   :  { %739 = vmatpush1.bf16.msra.mxu1 %v3816_v3  ;;  %1111 = vmatpush1.bf16.msra.mxu0 %v4717_v4  ;;  %v381_v45 = vadd.f32 %v4667_v42, %v358_v13  ;;  %v337_v39 = vmul.f32 %v3933_v28, %v4634_v16  ;;  %v4840_v3 = vld [vmem:[#allocation14 + $0xc] ss:$16 sps:$4 sm:$0xff]  }
 0x1a8   :  { %740 = vmatprep.subr.bf16.mxu1 %v3824_v5  ;;  %1112 = vmatprep.subr.bf16.mxu0 %v4722_v7  ;;  %v361_v19 = vmul.f32 %v4663_v29, %v338_v36  ;;  %v4845_v5 = vld [vmem:[#allocation14 + $0x8] ss:$16 sps:$4 sm:$0xff]  }
 0x1a9   :  { %v395_v63 = vpack.c.bf16 %v382_v35, %v381_v45  ;;  %v360_v16 = vmul.f32 %v4663_v29, %v337_v39 }
 0x1aa   :  { %658 = vmatmul.mubr.bf16.gmra.mxu0 %v394_v24  ;;  %718 = vmatmul.mubr.bf16.gmra.mxu1 %v4733_v17  ;;  %v384_v43 = vadd.f32 %v4667_v42, %v361_v19 }
 0x1ab   :  { %741 = vmatpush1.bf16.msra.mxu1 %v3822_v14  ;;  %1113 = vmatpush1.bf16.msra.mxu0 %v4731_v15  ;;  %v383_v29 = vadd.f32 %v4667_v42, %v360_v16  ;;  %v4798_v42 = vld [vmem:[#allocation14] ss:$16 sps:$4 sm:$0xff]  }
 0x1ac   :  { %742 = vmatprep.subr.bf16.mxu1 %v3830_v18  ;;  %1114 = vmatprep.subr.bf16.mxu0 %v4736_v25 }
 0x1ad   :  { %667 = vmatprep.mubr.bf16.mxu0 %v6000_v47  ;;  %760 = vmatprep.mubr.bf16.mxu1 %v6000_v47  ;;  %v396_v51 = vpack.c.bf16 %v384_v43, %v383_v29  ;;  %v1483_v43 = vsel %vm1482_vm6, 1, %v6000_v47 }
 0x1ae   :  { %2937 = vperm.xlu0 %3772, %v2935_v31  }
 0x1af   :  { %743 = vmatpush1.bf16.msra.mxu1 %v3828_v32  ;;  %1115 = vmatpush1.bf16.msra.mxu0 %v4742_v33 }
 0x1b0   :  { %1149 = vmatprep.subr.bf16.mxu1 %v4745_v34  ;;  %1116 = vmatprep.subr.bf16.mxu0 %v4748_v46 }
 0x1b2   :  { %668 = vmatmul.mubr.bf16.gmra.mxu0 %v395_v63  ;;  %761 = vmatmul.mubr.bf16.vlgmr.msra.gmra.mxu1 %v4704_v54  ;;  %v4809_v54 = vld [vmem:[#allocation14 + $0x88] ss:$16 sps:$4 sm:$0xff]  }
 0x1b3   :  { %1150 = vmatpush1.bf16.msra.mxu1 %v4756_v40  ;;  %1117 = vmatpush1.bf16.msra.mxu0 %v4758_v22 }
 0x1b4   :  { %1118 = vmatprep.subr.bf16.mxu0 %v4762_v21  ;;  %677 = vmatprep.mubr.bf16.mxu0 %v6000_v47 }
 0x1b5   :  { %770 = vmatprep.mubr.bf16.mxu1 %v6000_v47  ;;  %1151 = vmatprep.subr.bf16.mxu1 %v4765_v23 }
 0x1b7   :  { %1119 = vmatpush1.bf16.msra.mxu0 %v4771_v41  ;;  %1152 = vmatpush1.bf16.msra.mxu1 %v4773_v30 }
 0x1b8   :  { %1120 = vmatprep.subr.bf16.mxu0 %v4778_v44  ;;  %1153 = vmatprep.subr.bf16.mxu1 %v4780_v0 }
 0x1ba   :  { %678 = vmatmul.mubr.bf16.gmra.mxu0 %v396_v51  ;;  %771 = vmatmul.mubr.bf16.gmra.mxu1 %v394_v24 }
 0x1bb   :  { %1121 = vmatpush1.bf16.msra.mxu0 %v4787_v50  ;;  %780 = vmatprep.mubr.bf16.mxu1 %v6000_v47 }
 0x1bc   :  { %1122 = vmatprep.subr.bf16.mxu0 %v4790_v52  ;;  %1140 = vmatprep.mubr.bf16.mxu0 %v6000_v47 }
 0x1bd   :  { %1154 = vmatpush1.bf16.msra.mxu1 %v4793_v55 }
 0x1be   :  { %1155 = vmatprep.subr.bf16.mxu1 %v4795_v56 }
 0x1bf   :  { %1123 = vmatpush1.bf16.msra.mxu0 %v4798_v42 }
 0x1c0   :  { %1238 = vmatprep.subr.bf16.mxu0 %v4650_v48 }
 0x1c1   :  { %1156 = vmatpush1.bf16.msra.mxu1 %v4809_v54 }
 0x1c2   :  { %781 = vmatmul.mubr.bf16.gmra.mxu1 %v395_v63  ;;  %1141 = vmatmul.mubr.bf16.vlgmr.msra.gmra.mxu0 %v947_v59  ;;  %v1351_v63 = vsel %vm1350_vm5, 1, %v6000_v47 }
 0x1c3   :  { %790 = vmatprep.mubr.bf16.mxu1 %v6000_v47  ;;  %1157 = vmatprep.subr.bf16.mxu1 %v4815_v53 }
 0x1c4   :  { %1239 = vmatpush1.bf16.msra.mxu0 %v4702_v37  ;;  %1270 = vmatprep.mubr.bf16.mxu0 %v6000_v47 }
 0x1c5   :  { %1158 = vmatpush1.bf16.msra.mxu1 %v4819_v61  ;;  %1240 = vmatprep.subr.bf16.mxu0 %v4708_v60 }
 0x1c6   :  { %1159 = vmatprep.subr.bf16.mxu1 %v4821_v1  ;;  %1353 = vperm.xlu1 %3773, %v1351_v63   ;;  %v1747_v63 = vsel %vm1746_vm8, 1, %v6000_v47 }
 0x1c8   :  { %1241 = vmatpush1.bf16.msra.mxu0 %v4717_v4 }
 0x1c9   :  { %1160 = vmatpush1.bf16.msra.mxu1 %v4828_v8  ;;  %1242 = vmatprep.subr.bf16.mxu0 %v4722_v7 }
 0x1ca   :  { %791 = vmatmul.mubr.bf16.gmra.mxu1 %v396_v51  ;;  %1161 = vmatprep.subr.bf16.mxu1 %v4832_v9 }
 0x1cb   :  { %800 = vmatprep.mubr.bf16.mxu1 %v6000_v47  ;;  %1485 = vperm.xlu1 %3773, %v1483_v43  }
 0x1cc   :  { %1243 = vmatpush1.bf16.msra.mxu0 %v4731_v15 }
 0x1cd   :  { %1162 = vmatpush1.bf16.msra.mxu1 %v4836_v2  ;;  %1244 = vmatprep.subr.bf16.mxu0 %v4736_v25 }
 0x1ce   :  { %1163 = vmatprep.subr.bf16.mxu1 %v4840_v3 }
 0x1d0   :  { %1245 = vmatpush1.bf16.msra.mxu0 %v4742_v33 }
 0x1d1   :  { %1164 = vmatpush1.bf16.msra.mxu1 %v4845_v5  ;;  %1246 = vmatprep.subr.bf16.mxu0 %v4748_v46 }
 0x1d2   :  { %801 = vmatmul.mubr.bf16.gmra.mxu1 %v4674_v62  ;;  %1279 = vmatprep.subr.bf16.mxu1 %v4745_v34  ;;  %v3199_v62 = vsel %vm3198_vm4, 1, %v6000_v47 }
 0x1d3   :  { %810 = vmatprep.mubr.bf16.mxu1 %v6000_v47  ;;  %3201 = vperm.xlu0 %3772, %v3199_v62  }
 0x1d4   :  { %1247 = vmatpush1.bf16.msra.mxu0 %v4758_v22 }
 0x1d5   :  { %1248 = vmatprep.subr.bf16.mxu0 %v4762_v21 }
 0x1d8   :  { %1249 = vmatpush1.bf16.msra.mxu0 %v4771_v41 }
 0x1d9   :  { %1250 = vmatprep.subr.bf16.mxu0 %v4778_v44 }
 0x1da   :  { %811 = vmatmul.mubr.bf16.gmra.mxu1 %v4685_v20 }
 0x1db   :  { %820 = vmatprep.mubr.bf16.mxu1 %v6000_v47 }
 0x1dc   :  { %1251 = vmatpush1.bf16.msra.mxu0 %v4787_v50 }
 0x1dd   :  { %1252 = vmatprep.subr.bf16.mxu0 %v4790_v52 }
 0x1e0   :  { %1253 = vmatpush1.bf16.msra.mxu0 %v4798_v42 }
 0x1e1   :  { %1370 = vmatprep.subr.bf16.mxu0 %v4650_v48  ;;  %v435_v48 = vlaneseq }
 0x1e2   :  { %821 = vmatmul.mubr.bf16.gmra.mxu1 %v4706_v58 }
 0x1e3   :  { %830 = vmatprep.mubr.bf16.mxu1 %v6000_v47  ;;  %v4892_v20 = vshrl.u32 %v435_v48, 7  ;;  %v1615_v48 = vsel %vm1614_vm7, 1, %v6000_v47 }
 0x1e4   :  { %1617 = vperm.xlu1 %3773, %v1615_v48  }
 0x1e5   :  { %6004 = vst [vmem:[#allocation24_spill] sm:$0xff] %v4892_v20  ;;  %v5999_v58 = vsub.s32 0, %v4892_v20  ;;  %v5998_v10 = vsub.s32 1, %v4892_v20 }
 0x1e7   :  { %v4901_v11 = vrot.slane %v4895_v38, %v5999_v58  ;;  %v4906_v12 = vrot.slane %v4895_v38, %v5998_v10  ;;  %v1879_v58 = vsel %vm1878_vm9, 1, %v6000_v47 }
 0x1e8   :  { %1749 = vperm.xlu1 %3773, %v1747_v63  }
 0x1ea   :  { %831 = vmatmul.mubr.bf16.gmra.mxu1 %v4733_v17 }
 0x1eb   :  { %1181 = vmatprep.mubr.bf16.mxu1 %v6000_v47 }
 0x1ec   :  { %1881 = vperm.xlu1 %3773, %v1879_v58   ;;  %v449_v58 = vsub.s32 3, %v4892_v20 }
 0x1f2   :  { %1182 = vmatmul.mubr.bf16.vlgmr.msra.gmra.mxu1 %v947_v59 }
 0x1f3   :  { %1280 = vmatpush1.bf16.msra.mxu1 %v4756_v40  ;;  %1311 = vmatprep.mubr.bf16.mxu1 %v6000_v47 }
 0x1f4   :  { %1281 = vmatprep.subr.bf16.mxu1 %v4765_v23 }
 0x1f7   :  { %1282 = vmatpush1.bf16.msra.mxu1 %v4773_v30 }
 0x1f8   :  { %1283 = vmatprep.subr.bf16.mxu1 %v4780_v0 }
 0x1fb   :  { %1284 = vmatpush1.bf16.msra.mxu1 %v4793_v55 }
 0x1fc   :  { %1285 = vmatprep.subr.bf16.mxu1 %v4795_v56 }
 0x1ff   :  { %1286 = vmatpush1.bf16.msra.mxu1 %v4809_v54 }
 0x200   :  { %1287 = vmatprep.subr.bf16.mxu1 %v4815_v53 }
 0x203   :  { %1288 = vmatpush1.bf16.msra.mxu1 %v4819_v61 }
 0x204   :  { %1289 = vmatprep.subr.bf16.mxu1 %v4821_v1 }
 0x207   :  { %1290 = vmatpush1.bf16.msra.mxu1 %v4828_v8 }
 0x208   :  { %1291 = vmatprep.subr.bf16.mxu1 %v4832_v9 }
 0x20b   :  { %1292 = vmatpush1.bf16.msra.mxu1 %v4836_v2 }
 0x20c   :  { %1293 = vmatprep.subr.bf16.mxu1 %v4840_v3 }
 0x20f   :  { %1294 = vmatpush1.bf16.msra.mxu1 %v4845_v5 }
 0x210   :  { %1411 = vmatprep.subr.bf16.mxu1 %v4745_v34 }
 0x252   :  { %v689_v14 = vpop.f32.mrf.mxu1 }
 0x253   :  { %v4909_v24 = vadd.f32 %v689_v14, %v4901_v11 }
 0x254   :  { %v691_v17 = vpop.f32.mrf.mxu1 }
 0x255   :  { %6005 = vst [vmem:[#allocation25_spill] sm:$0xff] %v4909_v24  ;;  %v4912_v18 = vadd.f32 %v691_v17, %v4906_v12 }
 0x256   :  { %v693_v26 = vpop.f32.mrf.mxu1 }
 0x257   :  { %6006 = vst [vmem:[#allocation26_spill] sm:$0xff] %v4912_v18  ;;  %v4915_v27 = vadd.f32 %v693_v26, %v4901_v11 }
 0x258   :  { %v695_v28 = vpop.f32.mrf.mxu1 }
 0x259   :  { %6007 = vst [vmem:[#allocation27_spill] sm:$0xff] %v4915_v27  ;;  %v4918_v13 = vadd.f32 %v695_v28, %v4906_v12 }
 0x25a   :  { %v699_v32 = vpop.f32.mrf.mxu1 }
 0x25b   :  { %6008 = vst [vmem:[#allocation28_spill] sm:$0xff] %v4918_v13  ;;  %v4921_v35 = vadd.f32 %v699_v32, %v4901_v11 }
 0x25c   :  { %v701_v36 = vpop.f32.mrf.mxu1 }
 0x25d   :  { %6009 = vst [vmem:[#allocation29_spill] sm:$0xff] %v4921_v35  ;;  %v4924_v45 = vadd.f32 %v701_v36, %v4906_v12 }
 0x25e   :  { %v703_v39 = vpop.f32.mrf.mxu1 }
 0x25f   :  { %6010 = vst [vmem:[#allocation30_spill] sm:$0xff] %v4924_v45  ;;  %v4930_v19 = vadd.f32 %v703_v39, %v4901_v11 }
 0x260   :  { %v705_v16 = vpop.f32.mrf.mxu1 }
 0x261   :  { %6011 = vst [vmem:[#allocation31_spill] sm:$0xff] %v4930_v19  ;;  %v4934_v29 = vadd.f32 %v705_v16, %v4906_v12 }
 0x262   :  { %v4937_v51 = vpop.f32.mrf.mxu0  ;;  %v709_v59 = vpop.f32.mrf.mxu1 }
 0x263   :  { %6012 = vst [vmem:[#allocation32_spill] sm:$0xff] %v4934_v29  ;;  %v4940_v6 = vadd.f32 %v709_v59, %v4901_v11 }
 0x264   :  { %v4942_v31 = vpop.f32.mrf.mxu0  ;;  %v711_v62 = vpop.f32.mrf.mxu1 }
 0x265   :  { %6013 = vst [vmem:[#allocation33_spill] sm:$0xff] %v4940_v6  ;;  %v4946_v14 = vadd.f32 %v711_v62, %v4906_v12 }
 0x266   :  { %v653_v17 = vpop.f32.mrf.mxu0  ;;  %v713_v26 = vpop.f32.mrf.mxu1 }
 0x267   :  { %6014 = vst [vmem:[#allocation34_spill] sm:$0xff] %v4946_v14  ;;  %v4950_v28 = vadd.f32 %v653_v17, %v4901_v11  ;;  %v4953_v32 = vadd.f32 %v713_v26, %v4901_v11  ;;  %v2011_v14 = vsel %vm2010_vm10, 1, %v6000_v47 }
 0x268   :  { %v655_v36 = vpop.f32.mrf.mxu0  ;;  %v715_v39 = vpop.f32.mrf.mxu1  ;;  %2013 = vperm.xlu1 %3773, %v2011_v14  }
 0x269   :  { %6015 = vst [vmem:[#allocation35_spill] sm:$0xff] %v4953_v32  ;;  %v4957_v16 = vadd.f32 %v655_v36, %v4906_v12  ;;  %v4960_v43 = vadd.f32 %v715_v39, %v4906_v12 }
 0x26a   :  { %v659_v59 = vpop.f32.mrf.mxu0  ;;  %v719_v62 = vpop.f32.mrf.mxu1 }
 0x26b   :  { %6016 = vst [vmem:[#allocation36_spill] sm:$0xff] %v4960_v43  ;;  %v4964_v17 = vadd.f32 %v659_v59, %v4901_v11  ;;  %v4967_v26 = vadd.f32 %v719_v62, %v4901_v11 }
 0x26c   :  { %v661_v48 = vpop.f32.mrf.mxu0  ;;  %v721_v10 = vpop.f32.mrf.mxu1 }
 0x26d   :  { %6017 = vst [vmem:[#allocation37_spill] sm:$0xff] %v4967_v26  ;;  %v4971_v36 = vadd.f32 %v661_v48, %v4906_v12  ;;  %v4974_v39 = vadd.f32 %v721_v10, %v4906_v12 }
 0x26e   :  { %v663_v43 = vpop.f32.mrf.mxu0  ;;  %v723_v32 = vpop.f32.mrf.mxu1 }
 0x26f   :  { %6018 = vst [vmem:[#allocation38_spill] sm:$0xff] %v4974_v39  ;;  %v4978_v59 = vadd.f32 %v663_v43, %v4901_v11  ;;  %v4981_v62 = vadd.f32 %v723_v32, %v4901_v11  ;;  %v445_v39 = vsub.s32 2, %v4892_v20 }
 0x270   :  { %v665_v63 = vpop.f32.mrf.mxu0  ;;  %v725_v26 = vpop.f32.mrf.mxu1 }
 0x271   :  { %6019 = vst [vmem:[#allocation39_spill] sm:$0xff] %v4978_v59  ;;  %6020 = vst [vmem:[#allocation40_spill] sm:$0xff] %v4981_v62  ;;  %v4985_v48 = vadd.f32 %v665_v63, %v4906_v12  ;;  %v4988_v10 = vadd.f32 %v725_v26, %v4906_v12  ;;  %v6024_v63 = vmov 0   ;;  %v5002_v26 = vrot.slane %v4895_v38, %v445_v39 }
 0x272   :  { %v669_v43 = vpop.f32.mrf.mxu0  ;;  %v4992_v6 = vpop.f32.mrf.mxu1  ;;  %v2143_v29 = vsel %vm2142_vm11, 1, %v6024_v63  ;;  %v2275_v13 = vsel %vm2274_vm12, 1, %v6024_v63  ;;  %v2539_v24 = vsel %vm2538_vm13, 1, %v6024_v63 }
 0x273   :  { %6021 = vst [vmem:[#allocation41_spill] sm:$0xff] %v4985_v48  ;;  %6022 = vst [vmem:[#allocation42_spill] sm:$0xff] %v4988_v10  ;;  %v4995_v32 = vadd.f32 %v669_v43, %v4901_v11  ;;  %v5009_v43 = vrot.slane %v4895_v38, %v449_v58  ;;  %2145 = vperm.xlu1 %3773, %v2143_v29  }
 0x274   :  { %v671_v47 = vpop.f32.mrf.mxu0  ;;  %v4998_v62 = vpop.f32.mrf.mxu1 }
 0x275   :  { %6023 = vst [vmem:[#allocation43_spill] sm:$0xff] %v4995_v32  ;;  %v5005_v10 = vadd.f32 %v671_v47, %v4906_v12 }
 0x276   :  { %v673_v19 = vpop.f32.mrf.mxu0  ;;  %v766_v45 = vpop.f32.mrf.mxu1 }
 0x277   :  { %6025 = vst [vmem:[#allocation44_spill] sm:$0xff] %v5005_v10  ;;  %v5012_v14 = vadd.f32 %v673_v19, %v4901_v11  ;;  %v5015_v20 = vadd.f32 %v766_v45, %v5002_v26  ;;  %2277 = vperm.xlu1 %3773, %v2275_v13   ;;  %v2803_v10 = vsel %vm2802_vm14, 1, %v6024_v63 }
 0x278   :  { %v675_v35 = vpop.f32.mrf.mxu0  ;;  %v768_v39 = vpop.f32.mrf.mxu1 }
 0x279   :  { %6026 = vst [vmem:[#allocation45_spill] sm:$0xff] %v5012_v14  ;;  %v5019_v47 = vadd.f32 %v675_v35, %v4906_v12  ;;  %v5022_v27 = vadd.f32 %v768_v39, %v5009_v43 }
 0x27a   :  { %v679_v38 = vpop.f32.mrf.mxu0  ;;  %v772_v58 = vpop.f32.mrf.mxu1 }
 0x27b   :  { %6027 = vst [vmem:[#allocation46_spill] sm:$0xff] %v5019_v47  ;;  %v5026_v19 = vadd.f32 %v679_v38, %v4901_v11  ;;  %v5029_v45 = vadd.f32 %v772_v58, %v5002_v26  ;;  %2541 = vperm.xlu1 %3773, %v2539_v24  }
 0x27c   :  { %v681_v29 = vpop.f32.mrf.mxu0  ;;  %v774_v18 = vpop.f32.mrf.mxu1 }
 0x27d   :  { %6028 = vst [vmem:[#allocation47_spill] sm:$0xff] %v5026_v19  ;;  %v5033_v35 = vadd.f32 %v681_v29, %v4906_v12  ;;  %v5036_v39 = vadd.f32 %v774_v18, %v5009_v43 }
 0x27e   :  { %v683_v47 = vpop.f32.mrf.mxu0  ;;  %v776_v14 = vpop.f32.mrf.mxu1 }
 0x27f   :  { %6029 = vst [vmem:[#allocation48_spill] sm:$0xff] %v5033_v35  ;;  %v5040_v38 = vadd.f32 %v683_v47, %v4901_v11  ;;  %v5043_v58 = vadd.f32 %v776_v14, %v5002_v26  ;;  %2805 = vperm.xlu1 %3773, %v2803_v10  }
 0x280   :  { %v685_v13 = vpop.f32.mrf.mxu0  ;;  %v778_v19 = vpop.f32.mrf.mxu1 }
 0x281   :  { %6030 = vst [vmem:[#allocation49_spill] sm:$0xff] %v5040_v38  ;;  %6031 = vst [vmem:[#allocation50_spill] sm:$0xff] %v5043_v58  ;;  %v5047_v29 = vadd.f32 %v685_v13, %v4906_v12  ;;  %v5050_v18 = vadd.f32 %v778_v19, %v5009_v43  ;;  %v3067_v38 = vsel %vm3066_vm15, 1, %v6024_v63 }
 0x282   :  { %v782_v35 = vpop.f32.mrf.mxu1  ;;  %v1142_v32 = vpop.f32.mrf.mxu0 }
 0x283   :  { %6032 = vst [vmem:[#allocation51_spill] sm:$0xff] %v5047_v29  ;;  %6033 = vst [vmem:[#allocation52_spill] sm:$0xff] %v5050_v18  ;;  %v5054_v47 = vadd.f32 %v782_v35, %v5002_v26  ;;  %3069 = vperm.xlu1 %3773, %v3067_v38  }
 0x284   :  { %v784_v14 = vpop.f32.mrf.mxu1  ;;  %v1144_v24 = vpop.f32.mrf.mxu0 }
 0x285   :  { %6034 = vst [vmem:[#allocation53_spill] sm:$0xff] %v5054_v47  ;;  %v5058_v58 = vadd.f32 %v784_v14, %v5009_v43 }
 0x286   :  { %v786_v13 = vpop.f32.mrf.mxu1  ;;  %v1146_v29 = vpop.f32.mrf.mxu0 }
 0x287   :  { %v5061_v19 = vadd.f32 %v786_v13, %v5002_v26 }
 0x288   :  { %v788_v49 = vpop.f32.mrf.mxu1  ;;  %v1147_v18 = vpop.f32.mrf.mxu0 }
 0x289   :  { %6035 = vst [vmem:[#allocation54_spill] sm:$0xff] %v5061_v19  ;;  %v5064_v48 = vadd.f32 %v788_v49, %v5009_v43 }
 0x28a   :  { %v792_v35 = vpop.f32.mrf.mxu1 }
 0x28b   :  { %6036 = vst [vmem:[#allocation55_spill] sm:$0xff] %v5064_v48  ;;  %v5067_v10 = vadd.f32 %v792_v35, %v5002_v26 }
 0x28c   :  { %v794_v47 = vpop.f32.mrf.mxu1 }
 0x28d   :  { %6037 = vst [vmem:[#allocation56_spill] sm:$0xff] %v5067_v10  ;;  %v5070_v59 = vadd.f32 %v794_v47, %v5009_v43  ;;  %v650_v47 = vadd.f32 %v4937_v51, %v4901_v11 }
 0x28e   :  { %v796_v14 = vpop.f32.mrf.mxu1 }
 0x28f   :  { %6038 = vst [vmem:[#allocation57_spill] sm:$0xff] %v5070_v59  ;;  %v5073_v29 = vadd.f32 %v796_v14, %v5002_v26  ;;  %v652_v14 = vadd.f32 %v4942_v31, %v4906_v12 }
 0x290   :  { %v798_v13 = vpop.f32.mrf.mxu1 }
 0x291   :  { %6039 = vst [vmem:[#allocation58_spill] sm:$0xff] %v5073_v29  ;;  %v5076_v38 = vadd.f32 %v798_v13, %v5009_v43 }
 0x292   :  { %v802_v18 = vpop.f32.mrf.mxu1 }
 0x293   :  { %6040 = vst [vmem:[#allocation59_spill] sm:$0xff] %v5076_v38  ;;  %v5079_v49 = vadd.f32 %v802_v18, %v5002_v26  ;;  %v1190_v38 = vadd.f32 %v1142_v32, %v650_v47  ;;  %v1191_v18 = vadd.f32 %v1144_v24, %v652_v14 }
 0x294   :  { %v804_v48 = vpop.f32.mrf.mxu1 }
 0x295   :  { %6041 = vst [vmem:[#allocation60_spill] sm:$0xff] %v5079_v49  ;;  %v5082_v35 = vadd.f32 %v804_v48, %v5009_v43  ;;  %v3630_v19 = vmul.f32 -1.442695, %v1190_v38  ;;  %v3631_v51 = vmul.f32 -1.442695, %v1191_v18 }
 0x296   :  { %v806_v10 = vpop.f32.mrf.mxu1 }
 0x297   :  { %6042 = vst [vmem:[#allocation61_spill] sm:$0xff] %v5082_v35  ;;  %v5087_v59 = vadd.f32 %v806_v10, %v5002_v26  ;;  %3934 = vpow2.f32 %v3630_v19 }
 0x298   :  { %v808_v13 = vpop.f32.mrf.mxu1  ;;  %3936 = vpow2.f32 %v3631_v51 }
 0x299   :  { %6043 = vst [vmem:[#allocation62_spill] sm:$0xff] %v5087_v59  ;;  %v5092_v29 = vadd.f32 %v808_v13, %v5009_v43 }
 0x29a   :  { %v812_v49 = vpop.f32.mrf.mxu1 }
 0x29b   :  { %v5095_v48 = vadd.f32 %v812_v49, %v5002_v26 }
 0x29c   :  { %v814_v35 = vpop.f32.mrf.mxu1 }
 0x29d   :  { %v5098_v11 = vadd.f32 %v814_v35, %v5009_v43 }
 0x29e   :  { %v816_v10 = vpop.f32.mrf.mxu1 }
 0x29f   :  { %v5101_v59 = vadd.f32 %v816_v10, %v5002_v26 }
 0x2a0   :  { %v818_v12 = vpop.f32.mrf.mxu1 }
 0x2a1   :  { %6044 = vst [vmem:[#allocation63_spill] sm:$0xff] %v5101_v59  ;;  %v5104_v31 = vadd.f32 %v818_v12, %v5009_v43 }
 0x2a2   :  { %v822_v32 = vpop.f32.mrf.mxu1 }
 0x2a3   :  { %6045 = vst [vmem:[#allocation64_spill] sm:$0xff] %v5104_v31  ;;  %v5107_v24 = vadd.f32 %v822_v32, %v5002_v26 }
 0x2a4   :  { %v824_v49 = vpop.f32.mrf.mxu1  ;;  %v3935_v12 = vpop.eup %3934 }
 0x2a5   :  { %6046 = vst [vmem:[#allocation65_spill] sm:$0xff] %v5107_v24  ;;  %v5110_v38 = vadd.f32 %v824_v49, %v5009_v43  ;;  %v3937_v49 = vpop.eup %3936 }
 0x2a6   :  { %v826_v35 = vpop.f32.mrf.mxu1 }
 0x2a7   :  { %6047 = vst [vmem:[#allocation66_spill] sm:$0xff] %v5110_v38  ;;  %v5113_v47 = vadd.f32 %v826_v35, %v5002_v26 }
 0x2a8   :  { %v828_v14 = vpop.f32.mrf.mxu1 }
 0x2a9   :  { %6048 = vst [vmem:[#allocation67_spill] sm:$0xff] %v5113_v47  ;;  %v5116_v13 = vadd.f32 %v828_v14, %v5009_v43  ;;  %v763_v47 = vadd.f32 %v4992_v6, %v5002_v26  ;;  %v1203_v14 = vadd.f32 1.0, %v3935_v12  ;;  %v136_v12 = vld [vmem:[%s5994_s8] sm:$0xff] }
 0x2aa   :  { %v832_v19 = vpop.f32.mrf.mxu1 }
 0x2ab   :  { %6049 = vst [vmem:[#allocation68_spill] sm:$0xff] %v5116_v13  ;;  %v5119_v18 = vadd.f32 %v832_v19, %v5002_v26  ;;  %v1204_v19 = vadd.f32 1.0, %v3937_v49  ;;  %3938 = vrcp.f32 %v1203_v14 }
 0x2ac   :  { %v834_v51 = vpop.f32.mrf.mxu1 }
 0x2ad   :  { %6050 = vst [vmem:[#allocation69_spill] sm:$0xff] %v5119_v18  ;;  %v5122_v10 = vadd.f32 %v834_v51, %v5009_v43  ;;  %v765_v51 = vadd.f32 %v4998_v62, %v5009_v43  ;;  %3940 = vrcp.f32 %v1204_v19 }
 0x2ae   :  { %v836_v32 = vpop.f32.mrf.mxu1 }
 0x2af   :  { %6051 = vst [vmem:[#allocation70_spill] sm:$0xff] %v5122_v10  ;;  %v5125_v38 = vadd.f32 %v836_v32, %v5002_v26 }
 0x2b0   :  { %v838_v35 = vpop.f32.mrf.mxu1 }
 0x2b1   :  { %6052 = vst [vmem:[#allocation71_spill] sm:$0xff] %v5125_v38  ;;  %v5130_v13 = vadd.f32 %v838_v35, %v5009_v43  ;;  %v1223_v35 = vpop.permute.xlu0 %1222 }
 0x2b2   :  { %v1183_v18 = vpop.f32.mrf.mxu1  ;;  %vm1224_vm0 = vcmp.eq.s32.totalorder %v1223_v35, 1 }
 0x2b3   :  { %6053 = vst [vmem:[#allocation72_spill] sm:$0xff] %v5130_v13  ;;  %v1192_v10 = vadd.f32 %v1183_v18, %v763_v47 }
 0x2b4   :  { %v1185_v24 = vpop.f32.mrf.mxu1 }
 0x2b5   :  { %v3632_v31 = vmul.f32 -1.442695, %v1192_v10  ;;  %v1193_v59 = vadd.f32 %v1185_v24, %v765_v51 }
 0x2b6   :  { %v1187_v32 = vpop.f32.mrf.mxu1 }
 0x2b7   :  { %3942 = vpow2.f32 %v3632_v31 }
 0x2b8   :  { %3944 = vtanh.f32 %v1193_v59  ;;  %v1188_v38 = vpop.f32.mrf.mxu1  ;;  %v3939_v6 = vpop.eup %3938 }
 0x2ba   :  { %v3941_v26 = vpop.eup %3940 }
 0x2bb   :  { %v1213_v43 = vmul.f32 %v3941_v26, %v136_v12 }
 0x2c4   :  { %v3943_v49 = vpop.eup %3942 }
 0x2c5   :  { %v3945_v13 = vpop.eup %3944  ;;  %v1205_v62 = vadd.f32 1.0, %v3943_v49 }
 0x2c6   :  { %v1214_v47 = vmul.f32 %v3945_v13, %v3939_v6 }
 0x2c7   :  { %3946 = vrcp.f32 %v1205_v62 }
 0x2c8   :  { %v1215_v18 = vadd.f32 %v1214_v47, %v1213_v43 }
 0x2ca   :  { %3948 = vtanh.f32 %v1215_v18  ;;  %v5137_v24 = vsel %vm1224_vm0, %v1215_v18, %v136_v12 }
 0x2d4   :  { %v3947_v59 = vpop.eup %3946 }
 0x2d7   :  { %v3949_v31 = vpop.eup %3948 }
 0x2d8   :  { %v1217_v38 = vmul.f32 %v3949_v31, %v3947_v59 }
 0x2da   :  { %v1225_v10 = vsel %vm1224_vm0, %v1217_v38, 0.0  ;;  %v5140_v14 = vsel %vm1224_vm0, %v1217_v38, %v4804_v57  ;;  %v5176_v57 = vld [vmem:[#allocation14 + $0xe4] ss:$16 sps:$4 sm:$0xff]  }
 0x2db   :  { %v1226_v19 = vpack.c.bf16 %v1225_v10, %v1225_v10  ;;  %v1237_v51 = vpack.c.bf16 %v5140_v14, %v5140_v14 }
 0x2dd   :  { %1227 = vst [vmem:[#allocation3] sm:$0xf] %v1226_v19  ;;  %1271 = vmatmul.mubr.bf16.vlgmr.msra.gmra.mxu0 %v1237_v51  ;;  %1312 = vmatmul.mubr.bf16.vlgmr.msra.gmra.mxu1 %v1237_v51 }
 0x2de   :  { %1371 = vmatpush1.bf16.msra.mxu0 %v4702_v37  ;;  %1412 = vmatpush1.bf16.msra.mxu1 %v4756_v40 }
 0x2df   :  { %1372 = vmatprep.subr.bf16.mxu0 %v4708_v60  ;;  %1413 = vmatprep.subr.bf16.mxu1 %v4765_v23 }
 0x2e0   :  { %1402 = vmatprep.mubr.bf16.mxu0 %v6024_v63  ;;  %1443 = vmatprep.mubr.bf16.mxu1 %v6024_v63 }
 0x2e2   :  { %1373 = vmatpush1.bf16.msra.mxu0 %v4717_v4  ;;  %1414 = vmatpush1.bf16.msra.mxu1 %v4773_v30 }
 0x2e3   :  { %1374 = vmatprep.subr.bf16.mxu0 %v4722_v7  ;;  %1415 = vmatprep.subr.bf16.mxu1 %v4780_v0 }
 0x2e6   :  { %1375 = vmatpush1.bf16.msra.mxu0 %v4731_v15  ;;  %1416 = vmatpush1.bf16.msra.mxu1 %v4793_v55 }
 0x2e7   :  { %1376 = vmatprep.subr.bf16.mxu0 %v4736_v25  ;;  %1417 = vmatprep.subr.bf16.mxu1 %v4795_v56 }
 0x2ea   :  { %1377 = vmatpush1.bf16.msra.mxu0 %v4742_v33  ;;  %1418 = vmatpush1.bf16.msra.mxu1 %v4809_v54 }
 0x2eb   :  { %1378 = vmatprep.subr.bf16.mxu0 %v4748_v46  ;;  %1419 = vmatprep.subr.bf16.mxu1 %v4815_v53 }
 0x2ee   :  { %1379 = vmatpush1.bf16.msra.mxu0 %v4758_v22  ;;  %1420 = vmatpush1.bf16.msra.mxu1 %v4819_v61 }
 0x2ef   :  { %1380 = vmatprep.subr.bf16.mxu0 %v4762_v21  ;;  %1421 = vmatprep.subr.bf16.mxu1 %v4821_v1 }
 0x2f2   :  { %1381 = vmatpush1.bf16.msra.mxu0 %v4771_v41  ;;  %1422 = vmatpush1.bf16.msra.mxu1 %v4828_v8 }
 0x2f3   :  { %1382 = vmatprep.subr.bf16.mxu0 %v4778_v44  ;;  %1423 = vmatprep.subr.bf16.mxu1 %v4832_v9 }
 0x2f6   :  { %1383 = vmatpush1.bf16.msra.mxu0 %v4787_v50  ;;  %1424 = vmatpush1.bf16.msra.mxu1 %v4836_v2 }
 0x2f7   :  { %1384 = vmatprep.subr.bf16.mxu0 %v4790_v52  ;;  %1425 = vmatprep.subr.bf16.mxu1 %v4840_v3 }
 0x2fa   :  { %1385 = vmatpush1.bf16.msra.mxu0 %v4798_v42  ;;  %1426 = vmatpush1.bf16.msra.mxu1 %v4845_v5 }
 0x2fb   :  { %1502 = vmatprep.subr.bf16.mxu0 %v5176_v57  ;;  %1543 = vmatprep.subr.bf16.mxu1 %v4745_v34 }
 0x39d   :  { %v1272_v13 = vpop.f32.mrf.mxu0  ;;  %v1313_v32 = vpop.f32.mrf.mxu1 }
 0x39e   :  { %v1320_v6 = vadd.f32 %v1272_v13, %v4950_v28  ;;  %v1322_v31 = vadd.f32 %v1313_v32, %v5015_v20 }
 0x39f   :  { %v1274_v26 = vpop.f32.mrf.mxu0  ;;  %v1315_v12 = vpop.f32.mrf.mxu1 }
 0x3a0   :  { %v3633_v49 = vmul.f32 -1.442695, %v1320_v6  ;;  %v1321_v35 = vadd.f32 %v1274_v26, %v4957_v16  ;;  %v3635_v38 = vmul.f32 -1.442695, %v1322_v31  ;;  %v1323_v10 = vadd.f32 %v1315_v12, %v5022_v27 }
 0x3a1   :  { %v1276_v62 = vpop.f32.mrf.mxu0  ;;  %v1317_v43 = vpop.f32.mrf.mxu1 }
 0x3a2   :  { %3950 = vpow2.f32 %v3633_v49  ;;  %v3634_v47 = vmul.f32 -1.442695, %v1321_v35  ;;  %v1354_v43 = vpop.permute.xlu1 %1353 }
 0x3a3   :  { %v1277_v18 = vpop.f32.mrf.mxu0  ;;  %v1318_v59 = vpop.f32.mrf.mxu1  ;;  %vm1355_vm1 = vcmp.eq.s32.totalorder %v1354_v43, 1 }
 0x3a4   :  { %3952 = vpow2.f32 %v3634_v47 }
 0x3a5   :  { %3954 = vpow2.f32 %v3635_v38 }
 0x3a6   :  { %3956 = vtanh.f32 %v1323_v10 }
 0x3af   :  { %v3951_v19 = vpop.eup %3950 }
 0x3b0   :  { %v1333_v51 = vadd.f32 1.0, %v3951_v19 }
 0x3b1   :  { %v3953_v28 = vpop.eup %3952 }
 0x3b2   :  { %3958 = vrcp.f32 %v1333_v51  ;;  %v1334_v13 = vadd.f32 1.0, %v3953_v28  ;;  %v3955_v16 = vpop.eup %3954 }
 0x3b3   :  { %v3957_v6 = vpop.eup %3956  ;;  %v1335_v62 = vadd.f32 1.0, %v3955_v16 }
 0x3b4   :  { %3960 = vrcp.f32 %v1334_v13 }
 0x3b5   :  { %3962 = vrcp.f32 %v1335_v62 }
 0x3bf   :  { %v3959_v26 = vpop.eup %3958 }
 0x3c0   :  { %v1344_v49 = vmul.f32 %v3959_v26, %v3957_v6 }
 0x3c1   :  { %v3961_v35 = vpop.eup %3960 }
 0x3c2   :  { %v1343_v20 = vmul.f32 %v3961_v35, %v5137_v24  ;;  %v3963_v12 = vpop.eup %3962 }
 0x3c4   :  { %v1345_v32 = vadd.f32 %v1344_v49, %v1343_v20 }
 0x3c6   :  { %3964 = vtanh.f32 %v1345_v32  ;;  %v5186_v27 = vsel %vm1355_vm1, %v1345_v32, %v5137_v24 }
 0x3d3   :  { %v3965_v47 = vpop.eup %3964 }
 0x3d4   :  { %v1347_v18 = vmul.f32 %v3965_v47, %v3963_v12 }
 0x3d6   :  { %v1356_v59 = vsel %vm1355_vm1, %v1347_v18, 0.0  ;;  %v5189_v31 = vsel %vm1355_vm1, %v1347_v18, %v5140_v14 }
 0x3d7   :  { %v1357_v38 = vpack.c.bf16 %v1356_v59, %v1356_v59  ;;  %v1369_v10 = vpack.c.bf16 %v5189_v31, %v5189_v31 }
 0x3d9   :  { %1359 = vst [vmem:[#allocation3 + $0x4] sm:$0xf] %v1357_v38  ;;  %1403 = vmatmul.mubr.bf16.vlgmr.msra.gmra.mxu0 %v1369_v10  ;;  %1444 = vmatmul.mubr.bf16.vlgmr.msra.gmra.mxu1 %v1369_v10  ;;  %v5240_v38 = vld [vmem:[#allocation14 + $0xe0] ss:$16 sps:$4 sm:$0xff]   ;;  %v5254_v10 = vld [vmem:[#allocation14 + $0xa4] ss:$16 sps:$4 sm:$0xff]  }
 0x3da   :  { %1503 = vmatpush1.bf16.msra.mxu0 %v4702_v37  ;;  %1544 = vmatpush1.bf16.msra.mxu1 %v4756_v40 }
 0x3db   :  { %1504 = vmatprep.subr.bf16.mxu0 %v4708_v60  ;;  %1545 = vmatprep.subr.bf16.mxu1 %v4765_v23 }
 0x3dc   :  { %1534 = vmatprep.mubr.bf16.mxu0 %v6024_v63  ;;  %1575 = vmatprep.mubr.bf16.mxu1 %v6024_v63 }
 0x3de   :  { %1505 = vmatpush1.bf16.msra.mxu0 %v4717_v4  ;;  %1546 = vmatpush1.bf16.msra.mxu1 %v4773_v30 }
 0x3df   :  { %1506 = vmatprep.subr.bf16.mxu0 %v4722_v7  ;;  %1547 = vmatprep.subr.bf16.mxu1 %v4780_v0 }
 0x3e2   :  { %1507 = vmatpush1.bf16.msra.mxu0 %v4731_v15  ;;  %1548 = vmatpush1.bf16.msra.mxu1 %v4793_v55 }
 0x3e3   :  { %1508 = vmatprep.subr.bf16.mxu0 %v4736_v25  ;;  %1549 = vmatprep.subr.bf16.mxu1 %v4795_v56 }
 0x3e6   :  { %1509 = vmatpush1.bf16.msra.mxu0 %v4742_v33  ;;  %1550 = vmatpush1.bf16.msra.mxu1 %v4809_v54 }
 0x3e7   :  { %1510 = vmatprep.subr.bf16.mxu0 %v4748_v46  ;;  %1551 = vmatprep.subr.bf16.mxu1 %v4815_v53 }
 0x3ea   :  { %1511 = vmatpush1.bf16.msra.mxu0 %v4758_v22  ;;  %1552 = vmatpush1.bf16.msra.mxu1 %v4819_v61 }
 0x3eb   :  { %1512 = vmatprep.subr.bf16.mxu0 %v4762_v21  ;;  %1553 = vmatprep.subr.bf16.mxu1 %v4821_v1 }
 0x3ee   :  { %1513 = vmatpush1.bf16.msra.mxu0 %v4771_v41  ;;  %1554 = vmatpush1.bf16.msra.mxu1 %v4828_v8 }
 0x3ef   :  { %1514 = vmatprep.subr.bf16.mxu0 %v4778_v44  ;;  %1555 = vmatprep.subr.bf16.mxu1 %v4832_v9 }
 0x3f2   :  { %1515 = vmatpush1.bf16.msra.mxu0 %v4787_v50  ;;  %1556 = vmatpush1.bf16.msra.mxu1 %v4836_v2 }
 0x3f3   :  { %1516 = vmatprep.subr.bf16.mxu0 %v4790_v52  ;;  %1557 = vmatprep.subr.bf16.mxu1 %v4840_v3 }
 0x3f6   :  { %1517 = vmatpush1.bf16.msra.mxu0 %v4798_v42  ;;  %1558 = vmatpush1.bf16.msra.mxu1 %v4845_v5 }
 0x3f7   :  { %1634 = vmatprep.subr.bf16.mxu0 %v5176_v57  ;;  %1675 = vmatprep.subr.bf16.mxu1 %v4745_v34 }
 0x499   :  { %v1404_v37 = vpop.f32.mrf.mxu0  ;;  %v1445_v60 = vpop.f32.mrf.mxu1 }
 0x49a   :  { %v1452_v4 = vadd.f32 %v1404_v37, %v4964_v17  ;;  %v1454_v24 = vadd.f32 %v1445_v60, %v5029_v45  ;;  %v1486_v45 = vpop.permute.xlu1 %1485  ;;  %v5266_v37 = vld [vmem:[#allocation14 + $0x80] ss:$16 sps:$4 sm:$0xff]  }
 0x49b   :  { %v1406_v7 = vpop.f32.mrf.mxu0  ;;  %v1447_v15 = vpop.f32.mrf.mxu1  ;;  %vm1487_vm2 = vcmp.eq.s32.totalorder %v1486_v45, 1 }
 0x49c   :  { %v3636_v25 = vmul.f32 -1.442695, %v1452_v4  ;;  %v1453_v33 = vadd.f32 %v1406_v7, %v4971_v36  ;;  %v3638_v14 = vmul.f32 -1.442695, %v1454_v24  ;;  %v1455_v34 = vadd.f32 %v1447_v15, %v5036_v39 }
 0x49d   :  { %v1408_v46 = vpop.f32.mrf.mxu0  ;;  %v1449_v22 = vpop.f32.mrf.mxu1 }
 0x49e   :  { %3966 = vpow2.f32 %v3636_v25  ;;  %v3637_v21 = vmul.f32 -1.442695, %v1453_v33  ;;  %v6056_v25 = vld [vmem:[#allocation50_spill] sm:$0xff]  ;;  %v6057_v22 = vld [vmem:[#allocation52_spill] sm:$0xff] }
 0x49f   :  { %v1409_v41 = vpop.f32.mrf.mxu0  ;;  %v1450_v44 = vpop.f32.mrf.mxu1 }
 0x4a0   :  { %3968 = vpow2.f32 %v3637_v21 }
 0x4a1   :  { %3970 = vpow2.f32 %v3638_v14 }
 0x4a2   :  { %3972 = vtanh.f32 %v1455_v34 }
 0x4ab   :  { %v3967_v19 = vpop.eup %3966 }
 0x4ac   :  { %v1465_v51 = vadd.f32 1.0, %v3967_v19 }
 0x4ad   :  { %v3969_v17 = vpop.eup %3968 }
 0x4ae   :  { %3974 = vrcp.f32 %v1465_v51  ;;  %v1466_v28 = vadd.f32 1.0, %v3969_v17  ;;  %v3971_v36 = vpop.eup %3970 }
 0x4af   :  { %v3973_v13 = vpop.eup %3972  ;;  %v1467_v49 = vadd.f32 1.0, %v3971_v36 }
 0x4b0   :  { %3976 = vrcp.f32 %v1466_v28 }
 0x4b1   :  { %3978 = vrcp.f32 %v1467_v49 }
 0x4bb   :  { %v3975_v16 = vpop.eup %3974 }
 0x4bc   :  { %v1476_v6 = vmul.f32 %v3975_v16, %v3973_v13  ;;  %v1618_v16 = vpop.permute.xlu1 %1617 }
 0x4bd   :  { %v3977_v26 = vpop.eup %3976  ;;  %vm1619_vm3 = vcmp.eq.s32.totalorder %v1618_v16, 1 }
 0x4be   :  { %v1475_v35 = vmul.f32 %v3977_v26, %v5186_v27  ;;  %v3979_v43 = vpop.eup %3978 }
 0x4c0   :  { %v1477_v62 = vadd.f32 %v1476_v6, %v1475_v35 }
 0x4c2   :  { %3980 = vtanh.f32 %v1477_v62  ;;  %v5233_v39 = vsel %vm1487_vm2, %v1477_v62, %v5186_v27  ;;  %v5244_v27 = vld [vmem:[#allocation14 + $0xc4] ss:$16 sps:$4 sm:$0xff]  }
 0x4cf   :  { %v3981_v20 = vpop.eup %3980 }
 0x4d0   :  { %v1479_v32 = vmul.f32 %v3981_v20, %v3979_v43 }
 0x4d2   :  { %v1488_v12 = vsel %vm1487_vm2, %v1479_v32, 0.0  ;;  %v5236_v47 = vsel %vm1487_vm2, %v1479_v32, %v5189_v31  ;;  %v5250_v31 = vld [vmem:[#allocation14 + $0xc0] ss:$16 sps:$4 sm:$0xff]  }
 0x4d3   :  { %v1489_v18 = vpack.c.bf16 %v1488_v12, %v1488_v12  ;;  %v1501_v59 = vpack.c.bf16 %v5236_v47, %v5236_v47  ;;  %v5314_v12 = vld [vmem:[#allocation14 + $0xe8] ss:$16 sps:$4 sm:$0xff]  }
 0x4d5   :  { %1491 = vst [vmem:[#allocation3 + $0x8] sm:$0xf] %v1489_v18  ;;  %1535 = vmatmul.mubr.bf16.vlgmr.msra.gmra.mxu0 %v1501_v59  ;;  %1576 = vmatmul.mubr.bf16.vlgmr.msra.gmra.mxu1 %v1501_v59  ;;  %v5328_v18 = vld [vmem:[#allocation14 + $0xac] ss:$16 sps:$4 sm:$0xff]   ;;  %v5332_v59 = vld [vmem:[#allocation14 + $0xa8] ss:$16 sps:$4 sm:$0xff]  }
 0x4d6   :  { %1635 = vmatpush1.bf16.msra.mxu0 %v5240_v38  ;;  %1676 = vmatpush1.bf16.msra.mxu1 %v4756_v40  ;;  %v5258_v40 = vld [vmem:[#allocation14 + $0xa0] ss:$16 sps:$4 sm:$0xff]  }
 0x4d7   :  { %1636 = vmatprep.subr.bf16.mxu0 %v5244_v27  ;;  %1677 = vmatprep.subr.bf16.mxu1 %v4765_v23  ;;  %v5262_v23 = vld [vmem:[#allocation14 + $0x84] ss:$16 sps:$4 sm:$0xff]  }
 0x4d8   :  { %1666 = vmatprep.mubr.bf16.mxu0 %v6024_v63  ;;  %1707 = vmatprep.mubr.bf16.mxu1 %v6024_v63 }
 0x4da   :  { %1637 = vmatpush1.bf16.msra.mxu0 %v5250_v31  ;;  %1678 = vmatpush1.bf16.msra.mxu1 %v4773_v30  ;;  %v5270_v30 = vld [vmem:[#allocation14 + $0x64] ss:$16 sps:$4 sm:$0xff]  }
 0x4db   :  { %1638 = vmatprep.subr.bf16.mxu0 %v5254_v10  ;;  %1679 = vmatprep.subr.bf16.mxu1 %v4780_v0  ;;  %v5274_v0 = vld [vmem:[#allocation14 + $0x60] ss:$16 sps:$4 sm:$0xff]  }
 0x4de   :  { %1639 = vmatpush1.bf16.msra.mxu0 %v5258_v40  ;;  %1680 = vmatpush1.bf16.msra.mxu1 %v4793_v55  ;;  %v5278_v55 = vld [vmem:[#allocation14 + $0x44] ss:$16 sps:$4 sm:$0xff]  }
 0x4df   :  { %1640 = vmatprep.subr.bf16.mxu0 %v5262_v23  ;;  %1681 = vmatprep.subr.bf16.mxu1 %v4795_v56  ;;  %v5282_v56 = vld [vmem:[#allocation14 + $0x40] ss:$16 sps:$4 sm:$0xff]  }
 0x4e2   :  { %1641 = vmatpush1.bf16.msra.mxu0 %v5266_v37  ;;  %1682 = vmatpush1.bf16.msra.mxu1 %v4809_v54  ;;  %v5286_v54 = vld [vmem:[#allocation14 + $0x24] ss:$16 sps:$4 sm:$0xff]  }
 0x4e3   :  { %1642 = vmatprep.subr.bf16.mxu0 %v5270_v30  ;;  %1683 = vmatprep.subr.bf16.mxu1 %v4815_v53  ;;  %v5297_v53 = vld [vmem:[#allocation14 + $0xec] ss:$16 sps:$4 sm:$0xff]  }
 0x4e6   :  { %1643 = vmatpush1.bf16.msra.mxu0 %v5274_v0  ;;  %1684 = vmatpush1.bf16.msra.mxu1 %v4819_v61 }
 0x4e7   :  { %1644 = vmatprep.subr.bf16.mxu0 %v5278_v55  ;;  %1685 = vmatprep.subr.bf16.mxu1 %v4821_v1 }
 0x4ea   :  { %1645 = vmatpush1.bf16.msra.mxu0 %v5282_v56  ;;  %1686 = vmatpush1.bf16.msra.mxu1 %v4828_v8  ;;  %v6054_v8 = vld [vmem:[#allocation39_spill] sm:$0xff] }
 0x4eb   :  { %1646 = vmatprep.subr.bf16.mxu0 %v5286_v54  ;;  %1687 = vmatprep.subr.bf16.mxu1 %v4832_v9 }
 0x4ee   :  { %1647 = vmatpush1.bf16.msra.mxu0 %v4787_v50  ;;  %1688 = vmatpush1.bf16.msra.mxu1 %v4836_v2 }
 0x4ef   :  { %1648 = vmatprep.subr.bf16.mxu0 %v4790_v52  ;;  %1689 = vmatprep.subr.bf16.mxu1 %v4840_v3  ;;  %v6055_v52 = vld [vmem:[#allocation41_spill] sm:$0xff] }
 0x4f2   :  { %1649 = vmatpush1.bf16.msra.mxu0 %v4798_v42  ;;  %1690 = vmatpush1.bf16.msra.mxu1 %v4845_v5 }
 0x4f3   :  { %1766 = vmatprep.subr.bf16.mxu0 %v5176_v57  ;;  %1807 = vmatprep.subr.bf16.mxu1 %v5297_v53 }
 0x595   :  { %v1536_v61 = vpop.f32.mrf.mxu0  ;;  %v1577_v1 = vpop.f32.mrf.mxu1 }
 0x596   :  { %v1584_v50 = vadd.f32 %v1536_v61, %v6054_v8  ;;  %v1586_v33 = vadd.f32 %v1577_v1, %v6056_v25  ;;  %v5336_v61 = vld [vmem:[#allocation14 + $0x8c] ss:$16 sps:$4 sm:$0xff]   ;;  %v5340_v1 = vld [vmem:[#allocation14 + $0x88] ss:$16 sps:$4 sm:$0xff]  }
 0x597   :  { %v1538_v9 = vpop.f32.mrf.mxu0  ;;  %v1579_v2 = vpop.f32.mrf.mxu1  ;;  %v5344_v8 = vld [vmem:[#allocation14 + $0x6c] ss:$16 sps:$4 sm:$0xff]  }
 0x598   :  { %v3639_v60 = vmul.f32 -1.442695, %v1584_v50  ;;  %v1585_v4 = vadd.f32 %v1538_v9, %v6055_v52  ;;  %v3641_v46 = vmul.f32 -1.442695, %v1586_v33  ;;  %v1587_v21 = vadd.f32 %v1579_v2, %v6057_v22  ;;  %v5348_v50 = vld [vmem:[#allocation14 + $0x68] ss:$16 sps:$4 sm:$0xff]  }
 0x599   :  { %v1540_v3 = vpop.f32.mrf.mxu0  ;;  %v1581_v7 = vpop.f32.mrf.mxu1  ;;  %v5352_v9 = vld [vmem:[#allocation14 + $0x4c] ss:$16 sps:$4 sm:$0xff]   ;;  %v5356_v2 = vld [vmem:[#allocation14 + $0x48] ss:$16 sps:$4 sm:$0xff]   ;;  %v5363_v52 = vld [vmem:[#allocation14 + $0x20] ss:$16 sps:$4 sm:$0xff]  }
 0x59a   :  { %3982 = vpow2.f32 %v3639_v60  ;;  %v3640_v42 = vmul.f32 -1.442695, %v1585_v4  ;;  %v5360_v60 = vld [vmem:[#allocation14 + $0x2c] ss:$16 sps:$4 sm:$0xff]   ;;  %v5366_v4 = vld [vmem:[#allocation14 + $0x28] ss:$16 sps:$4 sm:$0xff]  }
 0x59b   :  { %v1541_v5 = vpop.f32.mrf.mxu0  ;;  %v1582_v15 = vpop.f32.mrf.mxu1  ;;  %v5369_v3 = vld [vmem:[#allocation14 + $0x4] ss:$16 sps:$4 sm:$0xff]   ;;  %v5372_v7 = vld [vmem:[#allocation14 + $0xc] ss:$16 sps:$4 sm:$0xff]  }
 0x59c   :  { %3984 = vpow2.f32 %v3640_v42  ;;  %v5375_v42 = vld [vmem:[#allocation14] ss:$16 sps:$4 sm:$0xff]   ;;  %v5378_v5 = vld [vmem:[#allocation14 + $0x8] ss:$16 sps:$4 sm:$0xff]  }
 0x59d   :  { %3986 = vpow2.f32 %v3641_v46  ;;  %v6058_v33 = vld [vmem:[#allocation43_spill] sm:$0xff] }
 0x59e   :  { %3988 = vtanh.f32 %v1587_v21 }
 0x5a7   :  { %v3983_v41 = vpop.eup %3982 }
 0x5a8   :  { %v1597_v44 = vadd.f32 1.0, %v3983_v41 }
 0x5a9   :  { %v3985_v24 = vpop.eup %3984 }
 0x5aa   :  { %3990 = vrcp.f32 %v1597_v44  ;;  %v1598_v14 = vadd.f32 1.0, %v3985_v24  ;;  %v3987_v34 = vpop.eup %3986  ;;  %v6059_v44 = vld [vmem:[#allocation44_spill] sm:$0xff] }
 0x5ab   :  { %v3989_v19 = vpop.eup %3988  ;;  %v1599_v36 = vadd.f32 1.0, %v3987_v34 }
 0x5ac   :  { %3992 = vrcp.f32 %v1598_v14 }
 0x5ad   :  { %3994 = vrcp.f32 %v1599_v36 }
 0x5b7   :  { %v3991_v51 = vpop.eup %3990 }
 0x5b8   :  { %v1608_v17 = vmul.f32 %v3991_v51, %v3989_v19 }
 0x5b9   :  { %v3993_v28 = vpop.eup %3992 }
 0x5ba   :  { %v1607_v13 = vmul.f32 %v3993_v28, %v5233_v39  ;;  %v3995_v49 = vpop.eup %3994  ;;  %v6060_v28 = vld [vmem:[#allocation53_spill] sm:$0xff] }
 0x5bc   :  { %v1609_v6 = vadd.f32 %v1608_v17, %v1607_v13 }
 0x5be   :  { %3996 = vtanh.f32 %v1609_v6  ;;  %v5306_v26 = vsel %vm1619_vm3, %v1609_v6, %v5233_v39  ;;  %v5318_v39 = vld [vmem:[#allocation14 + $0xcc] ss:$16 sps:$4 sm:$0xff]  }
 0x5cb   :  { %v3997_v35 = vpop.eup %3996 }
 0x5cc   :  { %v1611_v45 = vmul.f32 %v3997_v35, %v3995_v49 }
 0x5ce   :  { %v1620_v62 = vsel %vm1619_vm3, %v1611_v45, 0.0  ;;  %v5309_v43 = vsel %vm1619_vm3, %v1611_v45, %v5236_v47  ;;  %v5324_v47 = vld [vmem:[#allocation14 + $0xc8] ss:$16 sps:$4 sm:$0xff]  }
 0x5cf   :  { %v1621_v20 = vpack.c.bf16 %v1620_v62, %v1620_v62  ;;  %v1633_v32 = vpack.c.bf16 %v5309_v43, %v5309_v43 }
 0x5d1   :  { %1623 = vst [vmem:[#allocation3 + $0xc] sm:$0xf] %v1621_v20  ;;  %1667 = vmatmul.mubr.bf16.vlgmr.msra.gmra.mxu0 %v1633_v32  ;;  %1708 = vmatmul.mubr.bf16.vlgmr.msra.gmra.mxu1 %v1633_v32 }
 0x5d2   :  { %1767 = vmatpush1.bf16.msra.mxu0 %v5240_v38  ;;  %1808 = vmatpush1.bf16.msra.mxu1 %v5314_v12 }
 0x5d3   :  { %1768 = vmatprep.subr.bf16.mxu0 %v5244_v27  ;;  %1809 = vmatprep.subr.bf16.mxu1 %v5318_v39 }
 0x5d4   :  { %1798 = vmatprep.mubr.bf16.mxu0 %v6024_v63  ;;  %1839 = vmatprep.mubr.bf16.mxu1 %v6024_v63 }
 0x5d6   :  { %1769 = vmatpush1.bf16.msra.mxu0 %v5250_v31  ;;  %1810 = vmatpush1.bf16.msra.mxu1 %v5324_v47 }
 0x5d7   :  { %1770 = vmatprep.subr.bf16.mxu0 %v5254_v10  ;;  %1811 = vmatprep.subr.bf16.mxu1 %v5328_v18 }
 0x5da   :  { %1771 = vmatpush1.bf16.msra.mxu0 %v5258_v40  ;;  %1812 = vmatpush1.bf16.msra.mxu1 %v5332_v59 }
 0x5db   :  { %1772 = vmatprep.subr.bf16.mxu0 %v5262_v23  ;;  %1813 = vmatprep.subr.bf16.mxu1 %v5336_v61 }
 0x5de   :  { %1773 = vmatpush1.bf16.msra.mxu0 %v5266_v37  ;;  %1814 = vmatpush1.bf16.msra.mxu1 %v5340_v1 }
 0x5df   :  { %1774 = vmatprep.subr.bf16.mxu0 %v5270_v30  ;;  %1815 = vmatprep.subr.bf16.mxu1 %v5344_v8 }
 0x5e2   :  { %1775 = vmatpush1.bf16.msra.mxu0 %v5274_v0  ;;  %1816 = vmatpush1.bf16.msra.mxu1 %v5348_v50 }
 0x5e3   :  { %1776 = vmatprep.subr.bf16.mxu0 %v5278_v55  ;;  %1817 = vmatprep.subr.bf16.mxu1 %v5352_v9 }
 0x5e6   :  { %1777 = vmatpush1.bf16.msra.mxu0 %v5282_v56  ;;  %1818 = vmatpush1.bf16.msra.mxu1 %v5356_v2 }
 0x5e7   :  { %1778 = vmatprep.subr.bf16.mxu0 %v5286_v54  ;;  %1819 = vmatprep.subr.bf16.mxu1 %v5360_v60 }
 0x5ea   :  { %1779 = vmatpush1.bf16.msra.mxu0 %v5363_v52  ;;  %1820 = vmatpush1.bf16.msra.mxu1 %v5366_v4 }
 0x5eb   :  { %1780 = vmatprep.subr.bf16.mxu0 %v5369_v3  ;;  %1821 = vmatprep.subr.bf16.mxu1 %v5372_v7 }
 0x5ee   :  { %1781 = vmatpush1.bf16.msra.mxu0 %v5375_v42  ;;  %1822 = vmatpush1.bf16.msra.mxu1 %v5378_v5 }
 0x5ef   :  { %1898 = vmatprep.subr.bf16.mxu0 %v5176_v57  ;;  %1939 = vmatprep.subr.bf16.mxu1 %v5297_v53 }
 0x691   :  { %v1668_v15 = vpop.f32.mrf.mxu0  ;;  %v1709_v25 = vpop.f32.mrf.mxu1 }
 0x692   :  { %v1716_v46 = vadd.f32 %v1668_v15, %v6058_v33  ;;  %v1718_v36 = vadd.f32 %v1709_v25, %v6060_v28  ;;  %v1750_v25 = vpop.permute.xlu1 %1749 }
 0x693   :  { %v1670_v22 = vpop.f32.mrf.mxu0  ;;  %v1711_v21 = vpop.f32.mrf.mxu1  ;;  %vm1751_vm4 = vcmp.eq.s32.totalorder %v1750_v25, 1 }
 0x694   :  { %v3642_v41 = vmul.f32 -1.442695, %v1716_v46  ;;  %v1717_v24 = vadd.f32 %v1670_v22, %v6059_v44  ;;  %v3644_v13 = vmul.f32 -1.442695, %v1718_v36  ;;  %v1719_v16 = vadd.f32 %v1711_v21, %v5058_v58 }
 0x695   :  { %v1672_v14 = vpop.f32.mrf.mxu0  ;;  %v1713_v34 = vpop.f32.mrf.mxu1 }
 0x696   :  { %3998 = vpow2.f32 %v3642_v41  ;;  %v3643_v19 = vmul.f32 -1.442695, %v1717_v24 }
 0x697   :  { %v1673_v51 = vpop.f32.mrf.mxu0  ;;  %v1714_v17 = vpop.f32.mrf.mxu1 }
 0x698   :  { %4000 = vpow2.f32 %v3643_v19  ;;  %v6061_v17 = vld [vmem:[#allocation45_spill] sm:$0xff] }
 0x699   :  { %4002 = vpow2.f32 %v3644_v13 }
 0x69a   :  { %4004 = vtanh.f32 %v1719_v16 }
 0x6a3   :  { %v3999_v6 = vpop.eup %3998 }
 0x6a4   :  { %v1729_v49 = vadd.f32 1.0, %v3999_v6  ;;  %v6062_v6 = vld [vmem:[#allocation46_spill] sm:$0xff] }
 0x6a5   :  { %v4001_v35 = vpop.eup %4000 }
 0x6a6   :  { %4006 = vrcp.f32 %v1729_v49  ;;  %v1730_v45 = vadd.f32 1.0, %v4001_v35  ;;  %v4003_v62 = vpop.eup %4002 }
 0x6a7   :  { %v4005_v20 = vpop.eup %4004  ;;  %v1731_v46 = vadd.f32 1.0, %v4003_v62 }
 0x6a8   :  { %4008 = vrcp.f32 %v1730_v45 }
 0x6a9   :  { %4010 = vrcp.f32 %v1731_v46 }
 0x6b3   :  { %v4007_v32 = vpop.eup %4006 }
 0x6b4   :  { %v1740_v15 = vmul.f32 %v4007_v32, %v4005_v20 }
 0x6b5   :  { %v4009_v33 = vpop.eup %4008 }
 0x6b6   :  { %v1739_v22 = vmul.f32 %v4009_v33, %v5306_v26  ;;  %v4011_v21 = vpop.eup %4010 }
 0x6b8   :  { %v1741_v41 = vadd.f32 %v1740_v15, %v1739_v22  ;;  %v6063_v15 = vld [vmem:[#allocation54_spill] sm:$0xff]  ;;  %v6064_v22 = vld [vmem:[#allocation55_spill] sm:$0xff] }
 0x6ba   :  { %4012 = vtanh.f32 %v1741_v41  ;;  %v5389_v58 = vsel %vm1751_vm4, %v1741_v41, %v5306_v26 }
 0x6c7   :  { %v4013_v44 = vpop.eup %4012 }
 0x6c8   :  { %v1743_v24 = vmul.f32 %v4013_v44, %v4011_v21 }
 0x6ca   :  { %v1752_v14 = vsel %vm1751_vm4, %v1743_v24, 0.0  ;;  %v5392_v34 = vsel %vm1751_vm4, %v1743_v24, %v5309_v43 }
 0x6cb   :  { %v1753_v19 = vpack.c.bf16 %v1752_v14, %v1752_v14  ;;  %v1765_v51 = vpack.c.bf16 %v5392_v34, %v5392_v34 }
 0x6cd   :  { %1755 = vst [vmem:[#allocation3 + $0x10] sm:$0xf] %v1753_v19  ;;  %1799 = vmatmul.mubr.bf16.vlgmr.msra.gmra.mxu0 %v1765_v51  ;;  %1840 = vmatmul.mubr.bf16.vlgmr.msra.gmra.mxu1 %v1765_v51 }
 0x6ce   :  { %1899 = vmatpush1.bf16.msra.mxu0 %v5240_v38  ;;  %1940 = vmatpush1.bf16.msra.mxu1 %v5314_v12 }
 0x6cf   :  { %1900 = vmatprep.subr.bf16.mxu0 %v5244_v27  ;;  %1941 = vmatprep.subr.bf16.mxu1 %v5318_v39 }
 0x6d0   :  { %1930 = vmatprep.mubr.bf16.mxu0 %v6024_v63  ;;  %1971 = vmatprep.mubr.bf16.mxu1 %v6024_v63 }
 0x6d2   :  { %1901 = vmatpush1.bf16.msra.mxu0 %v5250_v31  ;;  %1942 = vmatpush1.bf16.msra.mxu1 %v5324_v47 }
 0x6d3   :  { %1902 = vmatprep.subr.bf16.mxu0 %v5254_v10  ;;  %1943 = vmatprep.subr.bf16.mxu1 %v5328_v18 }
 0x6d6   :  { %1903 = vmatpush1.bf16.msra.mxu0 %v5258_v40  ;;  %1944 = vmatpush1.bf16.msra.mxu1 %v5332_v59 }
 0x6d7   :  { %1904 = vmatprep.subr.bf16.mxu0 %v5262_v23  ;;  %1945 = vmatprep.subr.bf16.mxu1 %v5336_v61 }
 0x6da   :  { %1905 = vmatpush1.bf16.msra.mxu0 %v5266_v37  ;;  %1946 = vmatpush1.bf16.msra.mxu1 %v5340_v1 }
 0x6db   :  { %1906 = vmatprep.subr.bf16.mxu0 %v5270_v30  ;;  %1947 = vmatprep.subr.bf16.mxu1 %v5344_v8 }
 0x6de   :  { %1907 = vmatpush1.bf16.msra.mxu0 %v5274_v0  ;;  %1948 = vmatpush1.bf16.msra.mxu1 %v5348_v50 }
 0x6df   :  { %1908 = vmatprep.subr.bf16.mxu0 %v5278_v55  ;;  %1949 = vmatprep.subr.bf16.mxu1 %v5352_v9 }
 0x6e2   :  { %1909 = vmatpush1.bf16.msra.mxu0 %v5282_v56  ;;  %1950 = vmatpush1.bf16.msra.mxu1 %v5356_v2 }
 0x6e3   :  { %1910 = vmatprep.subr.bf16.mxu0 %v5286_v54  ;;  %1951 = vmatprep.subr.bf16.mxu1 %v5360_v60 }
 0x6e6   :  { %1911 = vmatpush1.bf16.msra.mxu0 %v5363_v52  ;;  %1952 = vmatpush1.bf16.msra.mxu1 %v5366_v4 }
 0x6e7   :  { %1912 = vmatprep.subr.bf16.mxu0 %v5369_v3  ;;  %1953 = vmatprep.subr.bf16.mxu1 %v5372_v7 }
 0x6ea   :  { %1913 = vmatpush1.bf16.msra.mxu0 %v5375_v42  ;;  %1954 = vmatpush1.bf16.msra.mxu1 %v5378_v5 }
 0x6eb   :  { %2030 = vmatprep.subr.bf16.mxu0 %v5176_v57  ;;  %2071 = vmatprep.subr.bf16.mxu1 %v5297_v53 }
 0x78d   :  { %v1800_v26 = vpop.f32.mrf.mxu0  ;;  %v1841_v43 = vpop.f32.mrf.mxu1 }
 0x78e   :  { %v1848_v28 = vadd.f32 %v1800_v26, %v6061_v17  ;;  %v1850_v33 = vadd.f32 %v1841_v43, %v6063_v15  ;;  %v1882_v43 = vpop.permute.xlu1 %1881  ;;  %v6065_v15 = vld [vmem:[#allocation47_spill] sm:$0xff] }
 0x78f   :  { %v1802_v36 = vpop.f32.mrf.mxu0  ;;  %v1843_v13 = vpop.f32.mrf.mxu1  ;;  %vm1883_vm5 = vcmp.eq.s32.totalorder %v1882_v43, 1 }
 0x790   :  { %v3645_v16 = vmul.f32 -1.442695, %v1848_v28  ;;  %v1849_v49 = vadd.f32 %v1802_v36, %v6062_v6  ;;  %v3647_v46 = vmul.f32 -1.442695, %v1850_v33  ;;  %v1851_v25 = vadd.f32 %v1843_v13, %v6064_v22 }
 0x791   :  { %v1804_v35 = vpop.f32.mrf.mxu0  ;;  %v1845_v45 = vpop.f32.mrf.mxu1 }
 0x792   :  { %4014 = vpow2.f32 %v3645_v16  ;;  %v3646_v62 = vmul.f32 -1.442695, %v1849_v49 }
 0x793   :  { %v1805_v20 = vpop.f32.mrf.mxu0  ;;  %v1846_v32 = vpop.f32.mrf.mxu1 }
 0x794   :  { %4016 = vpow2.f32 %v3646_v62 }
 0x795   :  { %4018 = vpow2.f32 %v3647_v46 }
 0x796   :  { %4020 = vtanh.f32 %v1851_v25 }
 0x79f   :  { %v4015_v41 = vpop.eup %4014 }
 0x7a0   :  { %v1861_v21 = vadd.f32 1.0, %v4015_v41  ;;  %v6066_v41 = vld [vmem:[#allocation48_spill] sm:$0xff] }
 0x7a1   :  { %v4017_v44 = vpop.eup %4016 }
 0x7a2   :  { %4022 = vrcp.f32 %v1861_v21  ;;  %v1862_v24 = vadd.f32 1.0, %v4017_v44  ;;  %v4019_v14 = vpop.eup %4018 }
 0x7a3   :  { %v4021_v19 = vpop.eup %4020  ;;  %v1863_v28 = vadd.f32 1.0, %v4019_v14 }
 0x7a4   :  { %4024 = vrcp.f32 %v1862_v24 }
 0x7a5   :  { %4026 = vrcp.f32 %v1863_v28 }
 0x7af   :  { %v4023_v51 = vpop.eup %4022 }
 0x7b0   :  { %v1872_v26 = vmul.f32 %v4023_v51, %v4021_v19 }
 0x7b1   :  { %v4025_v17 = vpop.eup %4024 }
 0x7b2   :  { %v1871_v36 = vmul.f32 %v4025_v17, %v5389_v58  ;;  %v4027_v6 = vpop.eup %4026 }
 0x7b4   :  { %v1873_v16 = vadd.f32 %v1872_v26, %v1871_v36  ;;  %v6067_v26 = vld [vmem:[#allocation56_spill] sm:$0xff]  ;;  %v6068_v36 = vld [vmem:[#allocation57_spill] sm:$0xff] }
 0x7b6   :  { %4028 = vtanh.f32 %v1873_v16  ;;  %v5436_v13 = vsel %vm1883_vm5, %v1873_v16, %v5389_v58 }
 0x7c3   :  { %v4029_v49 = vpop.eup %4028 }
 0x7c4   :  { %v1875_v35 = vmul.f32 %v4029_v49, %v4027_v6 }
 0x7c6   :  { %v1884_v45 = vsel %vm1883_vm5, %v1875_v35, 0.0  ;;  %v5439_v62 = vsel %vm1883_vm5, %v1875_v35, %v5392_v34 }
 0x7c7   :  { %v1885_v20 = vpack.c.bf16 %v1884_v45, %v1884_v45  ;;  %v1897_v32 = vpack.c.bf16 %v5439_v62, %v5439_v62 }
 0x7c9   :  { %1887 = vst [vmem:[#allocation3 + $0x14] sm:$0xf] %v1885_v20  ;;  %1931 = vmatmul.mubr.bf16.vlgmr.msra.gmra.mxu0 %v1897_v32  ;;  %1972 = vmatmul.mubr.bf16.vlgmr.msra.gmra.mxu1 %v1897_v32 }
 0x7ca   :  { %2031 = vmatpush1.bf16.msra.mxu0 %v5240_v38  ;;  %2072 = vmatpush1.bf16.msra.mxu1 %v5314_v12 }
 0x7cb   :  { %2032 = vmatprep.subr.bf16.mxu0 %v5244_v27  ;;  %2073 = vmatprep.subr.bf16.mxu1 %v5318_v39 }
 0x7cc   :  { %2062 = vmatprep.mubr.bf16.mxu0 %v6024_v63  ;;  %2103 = vmatprep.mubr.bf16.mxu1 %v6024_v63 }
 0x7ce   :  { %2033 = vmatpush1.bf16.msra.mxu0 %v5250_v31  ;;  %2074 = vmatpush1.bf16.msra.mxu1 %v5324_v47 }
 0x7cf   :  { %2034 = vmatprep.subr.bf16.mxu0 %v5254_v10  ;;  %2075 = vmatprep.subr.bf16.mxu1 %v5328_v18 }
 0x7d2   :  { %2035 = vmatpush1.bf16.msra.mxu0 %v5258_v40  ;;  %2076 = vmatpush1.bf16.msra.mxu1 %v5332_v59 }
 0x7d3   :  { %2036 = vmatprep.subr.bf16.mxu0 %v5262_v23  ;;  %2077 = vmatprep.subr.bf16.mxu1 %v5336_v61 }
 0x7d6   :  { %2037 = vmatpush1.bf16.msra.mxu0 %v5266_v37  ;;  %2078 = vmatpush1.bf16.msra.mxu1 %v5340_v1 }
 0x7d7   :  { %2038 = vmatprep.subr.bf16.mxu0 %v5270_v30  ;;  %2079 = vmatprep.subr.bf16.mxu1 %v5344_v8 }
 0x7da   :  { %2039 = vmatpush1.bf16.msra.mxu0 %v5274_v0  ;;  %2080 = vmatpush1.bf16.msra.mxu1 %v5348_v50 }
 0x7db   :  { %2040 = vmatprep.subr.bf16.mxu0 %v5278_v55  ;;  %2081 = vmatprep.subr.bf16.mxu1 %v5352_v9 }
 0x7de   :  { %2041 = vmatpush1.bf16.msra.mxu0 %v5282_v56  ;;  %2082 = vmatpush1.bf16.msra.mxu1 %v5356_v2 }
 0x7df   :  { %2042 = vmatprep.subr.bf16.mxu0 %v5286_v54  ;;  %2083 = vmatprep.subr.bf16.mxu1 %v5360_v60 }
 0x7e2   :  { %2043 = vmatpush1.bf16.msra.mxu0 %v5363_v52  ;;  %2084 = vmatpush1.bf16.msra.mxu1 %v5366_v4 }
 0x7e3   :  { %2044 = vmatprep.subr.bf16.mxu0 %v5369_v3  ;;  %2085 = vmatprep.subr.bf16.mxu1 %v5372_v7 }
 0x7e6   :  { %2045 = vmatpush1.bf16.msra.mxu0 %v5375_v42  ;;  %2086 = vmatpush1.bf16.msra.mxu1 %v5378_v5 }
 0x7e7   :  { %2162 = vmatprep.subr.bf16.mxu0 %v5176_v57  ;;  %2203 = vmatprep.subr.bf16.mxu1 %v5297_v53 }
 0x889   :  { %v1932_v58 = vpop.f32.mrf.mxu0  ;;  %v1973_v34 = vpop.f32.mrf.mxu1 }
 0x88a   :  { %v1980_v33 = vadd.f32 %v1932_v58, %v6065_v15  ;;  %v1982_v17 = vadd.f32 %v1973_v34, %v6067_v26  ;;  %v2014_v34 = vpop.permute.xlu1 %2013  ;;  %v6069_v26 = vld [vmem:[#allocation49_spill] sm:$0xff] }
 0x88b   :  { %v1934_v46 = vpop.f32.mrf.mxu0  ;;  %v1975_v22 = vpop.f32.mrf.mxu1  ;;  %vm2015_vm6 = vcmp.eq.s32.totalorder %v2014_v34, 1 }
 0x88c   :  { %v3648_v25 = vmul.f32 -1.442695, %v1980_v33  ;;  %v1981_v21 = vadd.f32 %v1934_v46, %v6066_v41  ;;  %v3650_v28 = vmul.f32 -1.442695, %v1982_v17  ;;  %v1983_v43 = vadd.f32 %v1975_v22, %v6068_v36 }
 0x88d   :  { %v1936_v44 = vpop.f32.mrf.mxu0  ;;  %v1977_v24 = vpop.f32.mrf.mxu1 }
 0x88e   :  { %4030 = vpow2.f32 %v3648_v25  ;;  %v3649_v14 = vmul.f32 -1.442695, %v1981_v21 }
 0x88f   :  { %v1937_v19 = vpop.f32.mrf.mxu0  ;;  %v1978_v51 = vpop.f32.mrf.mxu1 }
 0x890   :  { %4032 = vpow2.f32 %v3649_v14 }
 0x891   :  { %4034 = vpow2.f32 %v3650_v28 }
 0x892   :  { %4036 = vtanh.f32 %v1983_v43 }
 0x89b   :  { %v4031_v16 = vpop.eup %4030 }
 0x89c   :  { %v1993_v6 = vadd.f32 1.0, %v4031_v16  ;;  %v6070_v16 = vld [vmem:[#allocation51_spill] sm:$0xff] }
 0x89d   :  { %v4033_v49 = vpop.eup %4032 }
 0x89e   :  { %4038 = vrcp.f32 %v1993_v6  ;;  %v1994_v35 = vadd.f32 1.0, %v4033_v49  ;;  %v4035_v45 = vpop.eup %4034 }
 0x89f   :  { %v4037_v20 = vpop.eup %4036  ;;  %v1995_v33 = vadd.f32 1.0, %v4035_v45 }
 0x8a0   :  { %4040 = vrcp.f32 %v1994_v35 }
 0x8a1   :  { %4042 = vrcp.f32 %v1995_v33  ;;  %v6072_v33 = vld [vmem:[#allocation59_spill] sm:$0xff] }
 0x8ab   :  { %v4039_v32 = vpop.eup %4038 }
 0x8ac   :  { %v2004_v58 = vmul.f32 %v4039_v32, %v4037_v20 }
 0x8ad   :  { %v4041_v15 = vpop.eup %4040 }
 0x8ae   :  { %v2003_v46 = vmul.f32 %v4041_v15, %v5436_v13  ;;  %v4043_v41 = vpop.eup %4042 }
 0x8b0   :  { %v2005_v25 = vadd.f32 %v2004_v58, %v2003_v46  ;;  %v6071_v58 = vld [vmem:[#allocation58_spill] sm:$0xff] }
 0x8b2   :  { %4044 = vtanh.f32 %v2005_v25  ;;  %v5483_v22 = vsel %vm2015_vm6, %v2005_v25, %v5436_v13 }
 0x8bf   :  { %v4045_v21 = vpop.eup %4044 }
 0x8c0   :  { %v2007_v44 = vmul.f32 %v4045_v21, %v4043_v41 }
 0x8c2   :  { %v2016_v24 = vsel %vm2015_vm6, %v2007_v44, 0.0  ;;  %v5486_v14 = vsel %vm2015_vm6, %v2007_v44, %v5439_v62 }
 0x8c3   :  { %v2017_v19 = vpack.c.bf16 %v2016_v24, %v2016_v24  ;;  %v2029_v51 = vpack.c.bf16 %v5486_v14, %v5486_v14 }
 0x8c5   :  { %2019 = vst [vmem:[#allocation3 + $0x18] sm:$0xf] %v2017_v19  ;;  %2063 = vmatmul.mubr.bf16.vlgmr.msra.gmra.mxu0 %v2029_v51  ;;  %2104 = vmatmul.mubr.bf16.vlgmr.msra.gmra.mxu1 %v2029_v51 }
 0x8c6   :  { %2163 = vmatpush1.bf16.msra.mxu0 %v5240_v38  ;;  %2204 = vmatpush1.bf16.msra.mxu1 %v5314_v12 }
 0x8c7   :  { %2164 = vmatprep.subr.bf16.mxu0 %v5244_v27  ;;  %2205 = vmatprep.subr.bf16.mxu1 %v5318_v39 }
 0x8c8   :  { %2194 = vmatprep.mubr.bf16.mxu0 %v6024_v63  ;;  %2235 = vmatprep.mubr.bf16.mxu1 %v6024_v63 }
 0x8ca   :  { %2165 = vmatpush1.bf16.msra.mxu0 %v5250_v31  ;;  %2206 = vmatpush1.bf16.msra.mxu1 %v5324_v47 }
 0x8cb   :  { %2166 = vmatprep.subr.bf16.mxu0 %v5254_v10  ;;  %2207 = vmatprep.subr.bf16.mxu1 %v5328_v18 }
 0x8ce   :  { %2167 = vmatpush1.bf16.msra.mxu0 %v5258_v40  ;;  %2208 = vmatpush1.bf16.msra.mxu1 %v5332_v59 }
 0x8cf   :  { %2168 = vmatprep.subr.bf16.mxu0 %v5262_v23  ;;  %2209 = vmatprep.subr.bf16.mxu1 %v5336_v61 }
 0x8d2   :  { %2169 = vmatpush1.bf16.msra.mxu0 %v5266_v37  ;;  %2210 = vmatpush1.bf16.msra.mxu1 %v5340_v1 }
 0x8d3   :  { %2170 = vmatprep.subr.bf16.mxu0 %v5270_v30  ;;  %2211 = vmatprep.subr.bf16.mxu1 %v5344_v8 }
 0x8d6   :  { %2171 = vmatpush1.bf16.msra.mxu0 %v5274_v0  ;;  %2212 = vmatpush1.bf16.msra.mxu1 %v5348_v50 }
 0x8d7   :  { %2172 = vmatprep.subr.bf16.mxu0 %v5278_v55  ;;  %2213 = vmatprep.subr.bf16.mxu1 %v5352_v9 }
 0x8da   :  { %2173 = vmatpush1.bf16.msra.mxu0 %v5282_v56  ;;  %2214 = vmatpush1.bf16.msra.mxu1 %v5356_v2 }
 0x8db   :  { %2174 = vmatprep.subr.bf16.mxu0 %v5286_v54  ;;  %2215 = vmatprep.subr.bf16.mxu1 %v5360_v60 }
 0x8de   :  { %2175 = vmatpush1.bf16.msra.mxu0 %v5363_v52  ;;  %2216 = vmatpush1.bf16.msra.mxu1 %v5366_v4 }
 0x8df   :  { %2176 = vmatprep.subr.bf16.mxu0 %v5369_v3  ;;  %2217 = vmatprep.subr.bf16.mxu1 %v5372_v7 }
 0x8e2   :  { %2177 = vmatpush1.bf16.msra.mxu0 %v5375_v42  ;;  %2218 = vmatpush1.bf16.msra.mxu1 %v5378_v5 }
 0x8e3   :  { %2294 = vmatprep.subr.bf16.mxu0 %v5176_v57  ;;  %2335 = vmatprep.subr.bf16.mxu1 %v5297_v53 }
 0x985   :  { %v2064_v13 = vpop.f32.mrf.mxu0  ;;  %v2105_v62 = vpop.f32.mrf.mxu1 }
 0x986   :  { %v2112_v17 = vadd.f32 %v2064_v13, %v6069_v26  ;;  %v2114_v57 = vadd.f32 %v2105_v62, %v6071_v58  ;;  %v2146_v62 = vpop.permute.xlu1 %2145  ;;  %v6073_v58 = vld [vmem:[#allocation25_spill] sm:$0xff] }
 0x987   :  { %v2066_v28 = vpop.f32.mrf.mxu0  ;;  %v2107_v36 = vpop.f32.mrf.mxu1  ;;  %vm2147_vm7 = vcmp.eq.s32.totalorder %v2146_v62, 1 }
 0x988   :  { %v3651_v43 = vmul.f32 -1.442695, %v2112_v17  ;;  %v2113_v6 = vadd.f32 %v2066_v28, %v6070_v16  ;;  %v3653_v15 = vmul.f32 -1.442695, %v2114_v57  ;;  %v2115_v46 = vadd.f32 %v2107_v36, %v6072_v33 }
 0x989   :  { %v2068_v49 = vpop.f32.mrf.mxu0  ;;  %v2109_v35 = vpop.f32.mrf.mxu1 }
 0x98a   :  { %4046 = vpow2.f32 %v3651_v43  ;;  %v3652_v45 = vmul.f32 -1.442695, %v2113_v6 }
 0x98b   :  { %v2069_v20 = vpop.f32.mrf.mxu0  ;;  %v2110_v32 = vpop.f32.mrf.mxu1 }
 0x98c   :  { %4048 = vpow2.f32 %v3652_v45 }
 0x98d   :  { %4050 = vpow2.f32 %v3653_v15 }
 0x98e   :  { %4052 = vtanh.f32 %v2115_v46 }
 0x997   :  { %v4047_v34 = vpop.eup %4046 }
 0x998   :  { %v2125_v25 = vadd.f32 1.0, %v4047_v34  ;;  %v6074_v34 = vld [vmem:[#allocation26_spill] sm:$0xff] }
 0x999   :  { %v4049_v41 = vpop.eup %4048 }
 0x99a   :  { %4054 = vrcp.f32 %v2125_v25  ;;  %v2126_v21 = vadd.f32 1.0, %v4049_v41  ;;  %v4051_v44 = vpop.eup %4050 }
 0x99b   :  { %v4053_v24 = vpop.eup %4052  ;;  %v2127_v26 = vadd.f32 1.0, %v4051_v44 }
 0x99c   :  { %4056 = vrcp.f32 %v2126_v21 }
 0x99d   :  { %4058 = vrcp.f32 %v2127_v26 }
 0x9a7   :  { %v4055_v19 = vpop.eup %4054 }
 0x9a8   :  { %v2136_v51 = vmul.f32 %v4055_v19, %v4053_v24 }
 0x9a9   :  { %v4057_v13 = vpop.eup %4056 }
 0x9aa   :  { %v2135_v17 = vmul.f32 %v4057_v13, %v5483_v22  ;;  %v4059_v43 = vpop.eup %4058 }
 0x9ac   :  { %v2137_v28 = vadd.f32 %v2136_v51, %v2135_v17  ;;  %v6075_v51 = vld [vmem:[#allocation60_spill] sm:$0xff]  ;;  %v6076_v17 = vld [vmem:[#allocation61_spill] sm:$0xff] }
 0x9ae   :  { %4060 = vtanh.f32 %v2137_v28  ;;  %v5530_v36 = vsel %vm2147_vm7, %v2137_v28, %v5483_v22  ;;  %v5569_v22 = vld [vmem:[#allocation14 + $0xe4] ss:$16 sps:$4 sm:$0xff]  }
 0x9bb   :  { %v4061_v16 = vpop.eup %4060 }
 0x9bc   :  { %v2139_v6 = vmul.f32 %v4061_v16, %v4059_v43 }
 0x9be   :  { %v2148_v49 = vsel %vm2147_vm7, %v2139_v6, 0.0  ;;  %v5533_v35 = vsel %vm2147_vm7, %v2139_v6, %v5486_v14 }
 0x9bf   :  { %v2149_v45 = vpack.c.bf16 %v2148_v49, %v2148_v49  ;;  %v2161_v20 = vpack.c.bf16 %v5533_v35, %v5533_v35 }
 0x9c1   :  { %2151 = vst [vmem:[#allocation3 + $0x1c] sm:$0xf] %v2149_v45  ;;  %2195 = vmatmul.mubr.bf16.vlgmr.msra.gmra.mxu0 %v2161_v20  ;;  %2236 = vmatmul.mubr.bf16.vlgmr.msra.gmra.mxu1 %v2161_v20 }
 0x9c2   :  { %2295 = vmatpush1.bf16.msra.mxu0 %v5240_v38  ;;  %2336 = vmatpush1.bf16.msra.mxu1 %v5314_v12 }
 0x9c3   :  { %2296 = vmatprep.subr.bf16.mxu0 %v5244_v27  ;;  %2337 = vmatprep.subr.bf16.mxu1 %v5318_v39 }
 0x9c4   :  { %2326 = vmatprep.mubr.bf16.mxu0 %v6024_v63  ;;  %2367 = vmatprep.mubr.bf16.mxu1 %v6024_v63 }
 0x9c6   :  { %2297 = vmatpush1.bf16.msra.mxu0 %v5250_v31  ;;  %2338 = vmatpush1.bf16.msra.mxu1 %v5324_v47 }
 0x9c7   :  { %2298 = vmatprep.subr.bf16.mxu0 %v5254_v10  ;;  %2339 = vmatprep.subr.bf16.mxu1 %v5328_v18 }
 0x9ca   :  { %2299 = vmatpush1.bf16.msra.mxu0 %v5258_v40  ;;  %2340 = vmatpush1.bf16.msra.mxu1 %v5332_v59 }
 0x9cb   :  { %2300 = vmatprep.subr.bf16.mxu0 %v5262_v23  ;;  %2341 = vmatprep.subr.bf16.mxu1 %v5336_v61 }
 0x9ce   :  { %2301 = vmatpush1.bf16.msra.mxu0 %v5266_v37  ;;  %2342 = vmatpush1.bf16.msra.mxu1 %v5340_v1 }
 0x9cf   :  { %2302 = vmatprep.subr.bf16.mxu0 %v5270_v30  ;;  %2343 = vmatprep.subr.bf16.mxu1 %v5344_v8 }
 0x9d2   :  { %2303 = vmatpush1.bf16.msra.mxu0 %v5274_v0  ;;  %2344 = vmatpush1.bf16.msra.mxu1 %v5348_v50 }
 0x9d3   :  { %2304 = vmatprep.subr.bf16.mxu0 %v5278_v55  ;;  %2345 = vmatprep.subr.bf16.mxu1 %v5352_v9 }
 0x9d6   :  { %2305 = vmatpush1.bf16.msra.mxu0 %v5282_v56  ;;  %2346 = vmatpush1.bf16.msra.mxu1 %v5356_v2 }
 0x9d7   :  { %2306 = vmatprep.subr.bf16.mxu0 %v5286_v54  ;;  %2347 = vmatprep.subr.bf16.mxu1 %v5360_v60 }
 0x9da   :  { %2307 = vmatpush1.bf16.msra.mxu0 %v5363_v52  ;;  %2348 = vmatpush1.bf16.msra.mxu1 %v5366_v4 }
 0x9db   :  { %2308 = vmatprep.subr.bf16.mxu0 %v5369_v3  ;;  %2349 = vmatprep.subr.bf16.mxu1 %v5372_v7 }
 0x9de   :  { %2309 = vmatpush1.bf16.msra.mxu0 %v5375_v42  ;;  %2350 = vmatpush1.bf16.msra.mxu1 %v5378_v5 }
 0x9df   :  { %2426 = vmatprep.subr.bf16.mxu0 %v5569_v22  ;;  %2467 = vmatprep.subr.bf16.mxu1 %v5297_v53 }
 0xa81   :  { %v2196_v14 = vpop.f32.mrf.mxu0  ;;  %v2237_v32 = vpop.f32.mrf.mxu1 }
 0xa82   :  { %v2244_v57 = vadd.f32 %v2196_v14, %v6073_v58  ;;  %v2246_v13 = vadd.f32 %v2237_v32, %v6075_v51  ;;  %v2278_v32 = vpop.permute.xlu1 %2277  ;;  %v6079_v51 = vld [vmem:[#allocation62_spill] sm:$0xff] }
 0xa83   :  { %v2198_v15 = vpop.f32.mrf.mxu0  ;;  %v2239_v33 = vpop.f32.mrf.mxu1  ;;  %vm2279_vm8 = vcmp.eq.s32.totalorder %v2278_v32, 1 }
 0xa84   :  { %v3654_v46 = vmul.f32 -1.442695, %v2244_v57  ;;  %v2245_v25 = vadd.f32 %v2198_v15, %v6074_v34  ;;  %v3656_v26 = vmul.f32 -1.442695, %v2246_v13  ;;  %v2247_v62 = vadd.f32 %v2239_v33, %v6076_v17 }
 0xa85   :  { %v2200_v41 = vpop.f32.mrf.mxu0  ;;  %v2241_v21 = vpop.f32.mrf.mxu1 }
 0xa86   :  { %4062 = vpow2.f32 %v3654_v46  ;;  %v3655_v44 = vmul.f32 -1.442695, %v2245_v25 }
 0xa87   :  { %v2201_v24 = vpop.f32.mrf.mxu0  ;;  %v2242_v19 = vpop.f32.mrf.mxu1 }
 0xa88   :  { %4064 = vpow2.f32 %v3655_v44 }
 0xa89   :  { %4066 = vpow2.f32 %v3656_v26 }
 0xa8a   :  { %4068 = vtanh.f32 %v2247_v62 }
 0xa93   :  { %v4063_v28 = vpop.eup %4062 }
 0xa94   :  { %v2257_v43 = vadd.f32 1.0, %v4063_v28 }
 0xa95   :  { %v4065_v16 = vpop.eup %4064 }
 0xa96   :  { %4070 = vrcp.f32 %v2257_v43  ;;  %v2258_v6 = vadd.f32 1.0, %v4065_v16  ;;  %v4067_v49 = vpop.eup %4066 }
 0xa97   :  { %v4069_v45 = vpop.eup %4068  ;;  %v2259_v57 = vadd.f32 1.0, %v4067_v49 }
 0xa98   :  { %4072 = vrcp.f32 %v2258_v6 }
 0xa99   :  { %4074 = vrcp.f32 %v2259_v57  ;;  %v2410_v57 = vpop.permute.xlu0 %2409 }
 0xa9a   :  { %vm2411_vm9 = vcmp.eq.s32.totalorder %v2410_v57, 1  ;;  %v5711_v57 = vld [vmem:[#allocation14 + $0xcc] ss:$16 sps:$4 sm:$0xff]  }
 0xaa3   :  { %v4071_v20 = vpop.eup %4070 }
 0xaa4   :  { %v2268_v14 = vmul.f32 %v4071_v20, %v4069_v45 }
 0xaa5   :  { %v4073_v58 = vpop.eup %4072 }
 0xaa6   :  { %v2267_v15 = vmul.f32 %v4073_v58, %v5530_v36  ;;  %v4075_v34 = vpop.eup %4074 }
 0xaa8   :  { %v2269_v46 = vadd.f32 %v2268_v14, %v2267_v15 }
 0xaaa   :  { %4076 = vtanh.f32 %v2269_v46  ;;  %v5579_v33 = vsel %vm2279_vm8, %v2269_v46, %v5530_v36 }
 0xab7   :  { %v4077_v25 = vpop.eup %4076 }
 0xab8   :  { %v2271_v41 = vmul.f32 %v4077_v25, %v4075_v34 }
 0xaba   :  { %v2280_v21 = vsel %vm2279_vm8, %v2271_v41, 0.0  ;;  %v5582_v44 = vsel %vm2279_vm8, %v2271_v41, %v5533_v35 }
 0xabb   :  { %v2281_v24 = vpack.c.bf16 %v2280_v21, %v2280_v21  ;;  %v2293_v19 = vpack.c.bf16 %v5582_v44, %v5582_v44 }
 0xabd   :  { %2283 = vst [vmem:[#allocation3 + $0x20] sm:$0xf] %v2281_v24  ;;  %2327 = vmatmul.mubr.bf16.vlgmr.msra.gmra.mxu0 %v2293_v19  ;;  %2368 = vmatmul.mubr.bf16.vlgmr.msra.gmra.mxu1 %v2293_v19  ;;  %v5633_v19 = vld [vmem:[#allocation14 + $0xe0] ss:$16 sps:$4 sm:$0xff]  }
 0xabe   :  { %2427 = vmatpush1.bf16.msra.mxu0 %v5240_v38  ;;  %2468 = vmatpush1.bf16.msra.mxu1 %v5314_v12 }
 0xabf   :  { %2428 = vmatprep.subr.bf16.mxu0 %v5244_v27  ;;  %2469 = vmatprep.subr.bf16.mxu1 %v5318_v39 }
 0xac0   :  { %2458 = vmatprep.mubr.bf16.mxu0 %v6024_v63  ;;  %2499 = vmatprep.mubr.bf16.mxu1 %v6024_v63 }
 0xac2   :  { %2429 = vmatpush1.bf16.msra.mxu0 %v5250_v31  ;;  %2470 = vmatpush1.bf16.msra.mxu1 %v5324_v47  ;;  %v6077_v31 = vld [vmem:[#allocation27_spill] sm:$0xff] }
 0xac3   :  { %2430 = vmatprep.subr.bf16.mxu0 %v5254_v10  ;;  %2471 = vmatprep.subr.bf16.mxu1 %v5328_v18 }
 0xac6   :  { %2431 = vmatpush1.bf16.msra.mxu0 %v5258_v40  ;;  %2472 = vmatpush1.bf16.msra.mxu1 %v5332_v59 }
 0xac7   :  { %2432 = vmatprep.subr.bf16.mxu0 %v5262_v23  ;;  %2473 = vmatprep.subr.bf16.mxu1 %v5336_v61 }
 0xaca   :  { %2433 = vmatpush1.bf16.msra.mxu0 %v5266_v37  ;;  %2474 = vmatpush1.bf16.msra.mxu1 %v5340_v1 }
 0xacb   :  { %2434 = vmatprep.subr.bf16.mxu0 %v5270_v30  ;;  %2475 = vmatprep.subr.bf16.mxu1 %v5344_v8  ;;  %v6078_v30 = vld [vmem:[#allocation28_spill] sm:$0xff] }
 0xace   :  { %2435 = vmatpush1.bf16.msra.mxu0 %v5274_v0  ;;  %2476 = vmatpush1.bf16.msra.mxu1 %v5348_v50 }
 0xacf   :  { %2436 = vmatprep.subr.bf16.mxu0 %v5278_v55  ;;  %2477 = vmatprep.subr.bf16.mxu1 %v5352_v9 }
 0xad2   :  { %2437 = vmatpush1.bf16.msra.mxu0 %v5282_v56  ;;  %2478 = vmatpush1.bf16.msra.mxu1 %v5356_v2 }
 0xad3   :  { %2438 = vmatprep.subr.bf16.mxu0 %v5286_v54  ;;  %2479 = vmatprep.subr.bf16.mxu1 %v5360_v60 }
 0xad6   :  { %2439 = vmatpush1.bf16.msra.mxu0 %v5363_v52  ;;  %2480 = vmatpush1.bf16.msra.mxu1 %v5366_v4 }
 0xad7   :  { %2440 = vmatprep.subr.bf16.mxu0 %v5369_v3  ;;  %2481 = vmatprep.subr.bf16.mxu1 %v5372_v7 }
 0xada   :  { %2441 = vmatpush1.bf16.msra.mxu0 %v5375_v42  ;;  %2482 = vmatpush1.bf16.msra.mxu1 %v5378_v5 }
 0xadb   :  { %2558 = vmatprep.subr.bf16.mxu0 %v5569_v22  ;;  %2599 = vmatprep.subr.bf16.mxu1 %v5297_v53 }
 0xb7d   :  { %v2328_v38 = vpop.f32.mrf.mxu0  ;;  %v2369_v27 = vpop.f32.mrf.mxu1 }
 0xb7e   :  { %v2376_v10 = vadd.f32 %v2328_v38, %v6077_v31  ;;  %v2378_v13 = vadd.f32 %v2369_v27, %v6079_v51  ;;  %v5647_v38 = vld [vmem:[#allocation14 + $0xa4] ss:$16 sps:$4 sm:$0xff]   ;;  %v5659_v27 = vld [vmem:[#allocation14 + $0x80] ss:$16 sps:$4 sm:$0xff]  }
 0xb7f   :  { %v2330_v40 = vpop.f32.mrf.mxu0  ;;  %v2371_v23 = vpop.f32.mrf.mxu1 }
 0xb80   :  { %v3657_v37 = vmul.f32 -1.442695, %v2376_v10  ;;  %v2377_v0 = vadd.f32 %v2330_v40, %v6078_v30  ;;  %v3659_v26 = vmul.f32 -1.442695, %v2378_v13  ;;  %v2379_v53 = vadd.f32 %v2371_v23, %v5092_v29 }
 0xb81   :  { %v2332_v55 = vpop.f32.mrf.mxu0  ;;  %v2373_v56 = vpop.f32.mrf.mxu1 }
 0xb82   :  { %4078 = vpow2.f32 %v3657_v37  ;;  %v3658_v54 = vmul.f32 -1.442695, %v2377_v0 }
 0xb83   :  { %v2333_v36 = vpop.f32.mrf.mxu0  ;;  %v2374_v35 = vpop.f32.mrf.mxu1 }
 0xb84   :  { %4080 = vpow2.f32 %v3658_v54 }
 0xb85   :  { %4082 = vpow2.f32 %v3659_v26 }
 0xb86   :  { %4084 = vtanh.f32 %v2379_v53 }
 0xb8f   :  { %v4079_v17 = vpop.eup %4078 }
 0xb90   :  { %v2389_v62 = vadd.f32 1.0, %v4079_v17 }
 0xb91   :  { %v4081_v28 = vpop.eup %4080 }
 0xb92   :  { %4086 = vrcp.f32 %v2389_v62  ;;  %v2390_v43 = vadd.f32 1.0, %v4081_v28  ;;  %v4083_v16 = vpop.eup %4082 }
 0xb93   :  { %v4085_v6 = vpop.eup %4084  ;;  %v2391_v14 = vadd.f32 1.0, %v4083_v16 }
 0xb94   :  { %4088 = vrcp.f32 %v2390_v43 }
 0xb95   :  { %4090 = vrcp.f32 %v2391_v14 }
 0xb9f   :  { %v4087_v49 = vpop.eup %4086 }
 0xba0   :  { %v2400_v45 = vmul.f32 %v4087_v49, %v4085_v6 }
 0xba1   :  { %v4089_v20 = vpop.eup %4088 }
 0xba2   :  { %v2399_v58 = vmul.f32 %v4089_v20, %v5579_v33  ;;  %v4091_v32 = vpop.eup %4090 }
 0xba4   :  { %v2401_v15 = vadd.f32 %v2400_v45, %v2399_v58  ;;  %v5707_v58 = vld [vmem:[#allocation14 + $0xe8] ss:$16 sps:$4 sm:$0xff]  }
 0xba6   :  { %4092 = vtanh.f32 %v2401_v15  ;;  %v5626_v29 = vsel %vm2411_vm9, %v2401_v15, %v5579_v33  ;;  %v5637_v33 = vld [vmem:[#allocation14 + $0xc4] ss:$16 sps:$4 sm:$0xff]   ;;  %v5717_v15 = vld [vmem:[#allocation14 + $0xc8] ss:$16 sps:$4 sm:$0xff]  }
 0xbb3   :  { %v4093_v46 = vpop.eup %4092 }
 0xbb4   :  { %v2403_v34 = vmul.f32 %v4093_v46, %v4091_v32  ;;  %v5725_v32 = vld [vmem:[#allocation14 + $0xa8] ss:$16 sps:$4 sm:$0xff]   ;;  %v5729_v46 = vld [vmem:[#allocation14 + $0x8c] ss:$16 sps:$4 sm:$0xff]  }
 0xbb6   :  { %v2412_v25 = vsel %vm2411_vm9, %v2403_v34, 0.0  ;;  %v5629_v41 = vsel %vm2411_vm9, %v2403_v34, %v5582_v44  ;;  %v5643_v44 = vld [vmem:[#allocation14 + $0xc0] ss:$16 sps:$4 sm:$0xff]   ;;  %v5733_v34 = vld [vmem:[#allocation14 + $0x88] ss:$16 sps:$4 sm:$0xff]  }
 0xbb7   :  { %v2413_v21 = vpack.c.bf16 %v2412_v25, %v2412_v25  ;;  %v2425_v24 = vpack.c.bf16 %v5629_v41, %v5629_v41  ;;  %v5737_v25 = vld [vmem:[#allocation14 + $0x6c] ss:$16 sps:$4 sm:$0xff]  }
 0xbb9   :  { %2415 = vst [vmem:[#allocation3 + $0x24] sm:$0xf] %v2413_v21  ;;  %2459 = vmatmul.mubr.bf16.vlgmr.msra.gmra.mxu0 %v2425_v24  ;;  %2500 = vmatmul.mubr.bf16.vlgmr.msra.gmra.mxu1 %v2425_v24  ;;  %v5745_v21 = vld [vmem:[#allocation14 + $0x4c] ss:$16 sps:$4 sm:$0xff]   ;;  %v5749_v24 = vld [vmem:[#allocation14 + $0x48] ss:$16 sps:$4 sm:$0xff]  }
 0xbba   :  { %2559 = vmatpush1.bf16.msra.mxu0 %v5633_v19  ;;  %2600 = vmatpush1.bf16.msra.mxu1 %v5314_v12  ;;  %v5651_v12 = vld [vmem:[#allocation14 + $0xa0] ss:$16 sps:$4 sm:$0xff]  }
 0xbbb   :  { %2560 = vmatprep.subr.bf16.mxu0 %v5637_v33  ;;  %2601 = vmatprep.subr.bf16.mxu1 %v5318_v39  ;;  %v5655_v39 = vld [vmem:[#allocation14 + $0x84] ss:$16 sps:$4 sm:$0xff]  }
 0xbbc   :  { %2590 = vmatprep.mubr.bf16.mxu0 %v6024_v63  ;;  %2631 = vmatprep.mubr.bf16.mxu1 %v6024_v63 }
 0xbbe   :  { %2561 = vmatpush1.bf16.msra.mxu0 %v5643_v44  ;;  %2602 = vmatpush1.bf16.msra.mxu1 %v5324_v47  ;;  %v5663_v47 = vld [vmem:[#allocation14 + $0x64] ss:$16 sps:$4 sm:$0xff]  }
 0xbbf   :  { %2562 = vmatprep.subr.bf16.mxu0 %v5647_v38  ;;  %2603 = vmatprep.subr.bf16.mxu1 %v5328_v18  ;;  %v5667_v18 = vld [vmem:[#allocation14 + $0x60] ss:$16 sps:$4 sm:$0xff]  }
 0xbc2   :  { %2563 = vmatpush1.bf16.msra.mxu0 %v5651_v12  ;;  %2604 = vmatpush1.bf16.msra.mxu1 %v5332_v59  ;;  %v5671_v59 = vld [vmem:[#allocation14 + $0x44] ss:$16 sps:$4 sm:$0xff]  }
 0xbc3   :  { %2564 = vmatprep.subr.bf16.mxu0 %v5655_v39  ;;  %2605 = vmatprep.subr.bf16.mxu1 %v5336_v61  ;;  %v5675_v61 = vld [vmem:[#allocation14 + $0x40] ss:$16 sps:$4 sm:$0xff]  }
 0xbc6   :  { %2565 = vmatpush1.bf16.msra.mxu0 %v5659_v27  ;;  %2606 = vmatpush1.bf16.msra.mxu1 %v5340_v1  ;;  %v5679_v1 = vld [vmem:[#allocation14 + $0x24] ss:$16 sps:$4 sm:$0xff]  }
 0xbc7   :  { %2566 = vmatprep.subr.bf16.mxu0 %v5663_v47  ;;  %2607 = vmatprep.subr.bf16.mxu1 %v5344_v8  ;;  %v5690_v8 = vld [vmem:[#allocation14 + $0xec] ss:$16 sps:$4 sm:$0xff]  }
 0xbca   :  { %2567 = vmatpush1.bf16.msra.mxu0 %v5667_v18  ;;  %2608 = vmatpush1.bf16.msra.mxu1 %v5348_v50 }
 0xbcb   :  { %2568 = vmatprep.subr.bf16.mxu0 %v5671_v59  ;;  %2609 = vmatprep.subr.bf16.mxu1 %v5352_v9 }
 0xbce   :  { %2569 = vmatpush1.bf16.msra.mxu0 %v5675_v61  ;;  %2610 = vmatpush1.bf16.msra.mxu1 %v5356_v2  ;;  %v6080_v2 = vld [vmem:[#allocation29_spill] sm:$0xff] }
 0xbcf   :  { %2570 = vmatprep.subr.bf16.mxu0 %v5679_v1  ;;  %2611 = vmatprep.subr.bf16.mxu1 %v5360_v60 }
 0xbd2   :  { %2571 = vmatpush1.bf16.msra.mxu0 %v5363_v52  ;;  %2612 = vmatpush1.bf16.msra.mxu1 %v5366_v4 }
 0xbd3   :  { %2572 = vmatprep.subr.bf16.mxu0 %v5369_v3  ;;  %2613 = vmatprep.subr.bf16.mxu1 %v5372_v7  ;;  %v6081_v3 = vld [vmem:[#allocation30_spill] sm:$0xff] }
 0xbd6   :  { %2573 = vmatpush1.bf16.msra.mxu0 %v5375_v42  ;;  %2614 = vmatpush1.bf16.msra.mxu1 %v5378_v5 }
 0xbd7   :  { %2690 = vmatprep.subr.bf16.mxu0 %v5569_v22  ;;  %2731 = vmatprep.subr.bf16.mxu1 %v5690_v8 }
 0xc79   :  { %v2460_v50 = vpop.f32.mrf.mxu0  ;;  %v2501_v9 = vpop.f32.mrf.mxu1 }
 0xc7a   :  { %v2508_v60 = vadd.f32 %v2460_v50, %v6080_v2  ;;  %v2510_v37 = vadd.f32 %v2501_v9, %v5095_v48  ;;  %v2542_v48 = vpop.permute.xlu1 %2541  ;;  %v5753_v50 = vld [vmem:[#allocation14 + $0x2c] ss:$16 sps:$4 sm:$0xff]   ;;  %v5756_v9 = vld [vmem:[#allocation14 + $0x20] ss:$16 sps:$4 sm:$0xff]   ;;  %v5759_v2 = vld [vmem:[#allocation14 + $0x28] ss:$16 sps:$4 sm:$0xff]  }
 0xc7b   :  { %v2462_v52 = vpop.f32.mrf.mxu0  ;;  %v2503_v4 = vpop.f32.mrf.mxu1  ;;  %vm2543_vm10 = vcmp.eq.s32.totalorder %v2542_v48, 1 }
 0xc7c   :  { %v3660_v31 = vmul.f32 -1.442695, %v2508_v60  ;;  %v2509_v10 = vadd.f32 %v2462_v52, %v6081_v3  ;;  %v3662_v30 = vmul.f32 -1.442695, %v2510_v37  ;;  %v2511_v0 = vadd.f32 %v2503_v4, %v5098_v11  ;;  %v5762_v60 = vld [vmem:[#allocation14 + $0x4] ss:$16 sps:$4 sm:$0xff]  }
 0xc7d   :  { %v2464_v7 = vpop.f32.mrf.mxu0  ;;  %v2505_v40 = vpop.f32.mrf.mxu1  ;;  %v5765_v52 = vld [vmem:[#allocation14 + $0xc] ss:$16 sps:$4 sm:$0xff]   ;;  %v5768_v4 = vld [vmem:[#allocation14] ss:$16 sps:$4 sm:$0xff]   ;;  %v6083_v37 = vld [vmem:[#allocation32_spill] sm:$0xff] }
 0xc7e   :  { %4094 = vpow2.f32 %v3660_v31  ;;  %v3661_v42 = vmul.f32 -1.442695, %v2509_v10  ;;  %v5771_v31 = vld [vmem:[#allocation14 + $0x8] ss:$16 sps:$4 sm:$0xff]   ;;  %v6082_v7 = vld [vmem:[#allocation31_spill] sm:$0xff] }
 0xc7f   :  { %v2465_v5 = vpop.f32.mrf.mxu0  ;;  %v2506_v23 = vpop.f32.mrf.mxu1 }
 0xc80   :  { %4096 = vpow2.f32 %v3661_v42 }
 0xc81   :  { %4098 = vpow2.f32 %v3662_v30 }
 0xc82   :  { %4100 = vtanh.f32 %v2511_v0 }
 0xc8b   :  { %v4095_v55 = vpop.eup %4094 }
 0xc8c   :  { %v2521_v56 = vadd.f32 1.0, %v4095_v55 }
 0xc8d   :  { %v4097_v54 = vpop.eup %4096 }
 0xc8e   :  { %4102 = vrcp.f32 %v2521_v56  ;;  %v2522_v36 = vadd.f32 1.0, %v4097_v54  ;;  %v4099_v35 = vpop.eup %4098 }
 0xc8f   :  { %v4101_v51 = vpop.eup %4100  ;;  %v2523_v17 = vadd.f32 1.0, %v4099_v35  ;;  %v6084_v35 = vld [vmem:[#allocation63_spill] sm:$0xff] }
 0xc90   :  { %4104 = vrcp.f32 %v2522_v36 }
 0xc91   :  { %4106 = vrcp.f32 %v2523_v17 }
 0xc9b   :  { %v4103_v13 = vpop.eup %4102 }
 0xc9c   :  { %v2532_v26 = vmul.f32 %v4103_v13, %v4101_v51 }
 0xc9d   :  { %v4105_v53 = vpop.eup %4104 }
 0xc9e   :  { %v2531_v62 = vmul.f32 %v4105_v53, %v5626_v29  ;;  %v4107_v43 = vpop.eup %4106 }
 0xca0   :  { %v2533_v28 = vadd.f32 %v2532_v26, %v2531_v62  ;;  %v6085_v26 = vld [vmem:[#allocation64_spill] sm:$0xff] }
 0xca2   :  { %4108 = vtanh.f32 %v2533_v28  ;;  %v5699_v11 = vsel %vm2543_vm10, %v2533_v28, %v5626_v29  ;;  %v5721_v29 = vld [vmem:[#allocation14 + $0xac] ss:$16 sps:$4 sm:$0xff]  }
 0xcaf   :  { %v4109_v16 = vpop.eup %4108 }
 0xcb0   :  { %v2535_v6 = vmul.f32 %v4109_v16, %v4107_v43 }
 0xcb2   :  { %v2544_v49 = vsel %vm2543_vm10, %v2535_v6, 0.0  ;;  %v5702_v45 = vsel %vm2543_vm10, %v2535_v6, %v5629_v41  ;;  %v5741_v41 = vld [vmem:[#allocation14 + $0x68] ss:$16 sps:$4 sm:$0xff]  }
 0xcb3   :  { %v2545_v20 = vpack.c.bf16 %v2544_v49, %v2544_v49  ;;  %v2557_v14 = vpack.c.bf16 %v5702_v45, %v5702_v45 }
 0xcb5   :  { %2547 = vst [vmem:[#allocation3 + $0x28] sm:$0xf] %v2545_v20  ;;  %2591 = vmatmul.mubr.bf16.vlgmr.msra.gmra.mxu0 %v2557_v14  ;;  %2632 = vmatmul.mubr.bf16.vlgmr.msra.gmra.mxu1 %v2557_v14 }
 0xcb6   :  { %2691 = vmatpush1.bf16.msra.mxu0 %v5633_v19  ;;  %2732 = vmatpush1.bf16.msra.mxu1 %v5707_v58 }
 0xcb7   :  { %2692 = vmatprep.subr.bf16.mxu0 %v5637_v33  ;;  %2733 = vmatprep.subr.bf16.mxu1 %v5711_v57 }
 0xcb8   :  { %2722 = vmatprep.mubr.bf16.mxu0 %v6024_v63  ;;  %2763 = vmatprep.mubr.bf16.mxu1 %v6024_v63 }
 0xcba   :  { %2693 = vmatpush1.bf16.msra.mxu0 %v5643_v44  ;;  %2734 = vmatpush1.bf16.msra.mxu1 %v5717_v15 }
 0xcbb   :  { %2694 = vmatprep.subr.bf16.mxu0 %v5647_v38  ;;  %2735 = vmatprep.subr.bf16.mxu1 %v5721_v29 }
 0xcbe   :  { %2695 = vmatpush1.bf16.msra.mxu0 %v5651_v12  ;;  %2736 = vmatpush1.bf16.msra.mxu1 %v5725_v32 }
 0xcbf   :  { %2696 = vmatprep.subr.bf16.mxu0 %v5655_v39  ;;  %2737 = vmatprep.subr.bf16.mxu1 %v5729_v46 }
 0xcc2   :  { %2697 = vmatpush1.bf16.msra.mxu0 %v5659_v27  ;;  %2738 = vmatpush1.bf16.msra.mxu1 %v5733_v34 }
 0xcc3   :  { %2698 = vmatprep.subr.bf16.mxu0 %v5663_v47  ;;  %2739 = vmatprep.subr.bf16.mxu1 %v5737_v25 }
 0xcc6   :  { %2699 = vmatpush1.bf16.msra.mxu0 %v5667_v18  ;;  %2740 = vmatpush1.bf16.msra.mxu1 %v5741_v41 }
 0xcc7   :  { %2700 = vmatprep.subr.bf16.mxu0 %v5671_v59  ;;  %2741 = vmatprep.subr.bf16.mxu1 %v5745_v21 }
 0xcca   :  { %2701 = vmatpush1.bf16.msra.mxu0 %v5675_v61  ;;  %2742 = vmatpush1.bf16.msra.mxu1 %v5749_v24 }
 0xccb   :  { %2702 = vmatprep.subr.bf16.mxu0 %v5679_v1  ;;  %2743 = vmatprep.subr.bf16.mxu1 %v5753_v50 }
 0xcce   :  { %2703 = vmatpush1.bf16.msra.mxu0 %v5756_v9  ;;  %2744 = vmatpush1.bf16.msra.mxu1 %v5759_v2 }
 0xccf   :  { %2704 = vmatprep.subr.bf16.mxu0 %v5762_v60  ;;  %2745 = vmatprep.subr.bf16.mxu1 %v5765_v52 }
 0xcd2   :  { %2705 = vmatpush1.bf16.msra.mxu0 %v5768_v4  ;;  %2746 = vmatpush1.bf16.msra.mxu1 %v5771_v31 }
 0xcd3   :  { %2822 = vmatprep.subr.bf16.mxu0 %v5569_v22  ;;  %2863 = vmatprep.subr.bf16.mxu1 %v5690_v8 }
 0xd75   :  { %v2592_v3 = vpop.f32.mrf.mxu0  ;;  %v2633_v10 = vpop.f32.mrf.mxu1 }
 0xd76   :  { %v2640_v40 = vadd.f32 %v2592_v3, %v6082_v7  ;;  %v2642_v51 = vadd.f32 %v2633_v10, %v6084_v35  ;;  %v2674_v10 = vpop.permute.xlu0 %2673 }
 0xd77   :  { %v2594_v42 = vpop.f32.mrf.mxu0  ;;  %v2635_v5 = vpop.f32.mrf.mxu1  ;;  %vm2675_vm11 = vcmp.eq.s32.totalorder %v2674_v10, 1 }
 0xd78   :  { %v3663_v23 = vmul.f32 -1.442695, %v2640_v40  ;;  %v2641_v30 = vadd.f32 %v2594_v42, %v6083_v37  ;;  %v3665_v13 = vmul.f32 -1.442695, %v2642_v51  ;;  %v2643_v53 = vadd.f32 %v2635_v5, %v6085_v26 }
 0xd79   :  { %v2596_v0 = vpop.f32.mrf.mxu0  ;;  %v2637_v55 = vpop.f32.mrf.mxu1 }
 0xd7a   :  { %4110 = vpow2.f32 %v3663_v23  ;;  %v3664_v56 = vmul.f32 -1.442695, %v2641_v30 }
 0xd7b   :  { %v2597_v54 = vpop.f32.mrf.mxu0  ;;  %v2638_v36 = vpop.f32.mrf.mxu1 }
 0xd7c   :  { %4112 = vpow2.f32 %v3664_v56  ;;  %v6086_v56 = vld [vmem:[#allocation33_spill] sm:$0xff] }
 0xd7d   :  { %4114 = vpow2.f32 %v3665_v13  ;;  %v6087_v13 = vld [vmem:[#allocation34_spill] sm:$0xff] }
 0xd7e   :  { %4116 = vtanh.f32 %v2643_v53 }
 0xd87   :  { %v4111_v17 = vpop.eup %4110 }
 0xd88   :  { %v2653_v62 = vadd.f32 1.0, %v4111_v17 }
 0xd89   :  { %v4113_v48 = vpop.eup %4112 }
 0xd8a   :  { %4118 = vrcp.f32 %v2653_v62  ;;  %v2654_v28 = vadd.f32 1.0, %v4113_v48  ;;  %v4115_v43 = vpop.eup %4114 }
 0xd8b   :  { %v4117_v16 = vpop.eup %4116  ;;  %v2655_v14 = vadd.f32 1.0, %v4115_v43  ;;  %v6088_v43 = vld [vmem:[#allocation65_spill] sm:$0xff] }
 0xd8c   :  { %4120 = vrcp.f32 %v2654_v28 }
 0xd8d   :  { %4122 = vrcp.f32 %v2655_v14 }
 0xd97   :  { %v4119_v6 = vpop.eup %4118 }
 0xd98   :  { %v2664_v49 = vmul.f32 %v4119_v6, %v4117_v16 }
 0xd99   :  { %v4121_v20 = vpop.eup %4120 }
 0xd9a   :  { %v2663_v3 = vmul.f32 %v4121_v20, %v5699_v11  ;;  %v4123_v42 = vpop.eup %4122 }
 0xd9c   :  { %v2665_v7 = vadd.f32 %v2664_v49, %v2663_v3  ;;  %v6089_v49 = vld [vmem:[#allocation66_spill] sm:$0xff] }
 0xd9e   :  { %4124 = vtanh.f32 %v2665_v7  ;;  %v5782_v40 = vsel %vm2675_vm11, %v2665_v7, %v5699_v11 }
 0xdab   :  { %v4125_v5 = vpop.eup %4124 }
 0xdac   :  { %v2667_v23 = vmul.f32 %v4125_v5, %v4123_v42 }
 0xdae   :  { %v2676_v37 = vsel %vm2675_vm11, %v2667_v23, 0.0  ;;  %v5785_v30 = vsel %vm2675_vm11, %v2667_v23, %v5702_v45 }
 0xdaf   :  { %v2677_v0 = vpack.c.bf16 %v2676_v37, %v2676_v37  ;;  %v2689_v55 = vpack.c.bf16 %v5785_v30, %v5785_v30 }
 0xdb1   :  { %2679 = vst [vmem:[#allocation3 + $0x2c] sm:$0xf] %v2677_v0  ;;  %2723 = vmatmul.mubr.bf16.vlgmr.msra.gmra.mxu0 %v2689_v55  ;;  %2764 = vmatmul.mubr.bf16.vlgmr.msra.gmra.mxu1 %v2689_v55 }
 0xdb2   :  { %2823 = vmatpush1.bf16.msra.mxu0 %v5633_v19  ;;  %2864 = vmatpush1.bf16.msra.mxu1 %v5707_v58 }
 0xdb3   :  { %2824 = vmatprep.subr.bf16.mxu0 %v5637_v33  ;;  %2865 = vmatprep.subr.bf16.mxu1 %v5711_v57 }
 0xdb4   :  { %2854 = vmatprep.mubr.bf16.mxu0 %v6024_v63  ;;  %2895 = vmatprep.mubr.bf16.mxu1 %v6024_v63 }
 0xdb6   :  { %2825 = vmatpush1.bf16.msra.mxu0 %v5643_v44  ;;  %2866 = vmatpush1.bf16.msra.mxu1 %v5717_v15 }
 0xdb7   :  { %2826 = vmatprep.subr.bf16.mxu0 %v5647_v38  ;;  %2867 = vmatprep.subr.bf16.mxu1 %v5721_v29 }
 0xdba   :  { %2827 = vmatpush1.bf16.msra.mxu0 %v5651_v12  ;;  %2868 = vmatpush1.bf16.msra.mxu1 %v5725_v32 }
 0xdbb   :  { %2828 = vmatprep.subr.bf16.mxu0 %v5655_v39  ;;  %2869 = vmatprep.subr.bf16.mxu1 %v5729_v46 }
 0xdbe   :  { %2829 = vmatpush1.bf16.msra.mxu0 %v5659_v27  ;;  %2870 = vmatpush1.bf16.msra.mxu1 %v5733_v34 }
 0xdbf   :  { %2830 = vmatprep.subr.bf16.mxu0 %v5663_v47  ;;  %2871 = vmatprep.subr.bf16.mxu1 %v5737_v25 }
 0xdc2   :  { %2831 = vmatpush1.bf16.msra.mxu0 %v5667_v18  ;;  %2872 = vmatpush1.bf16.msra.mxu1 %v5741_v41 }
 0xdc3   :  { %2832 = vmatprep.subr.bf16.mxu0 %v5671_v59  ;;  %2873 = vmatprep.subr.bf16.mxu1 %v5745_v21 }
 0xdc6   :  { %2833 = vmatpush1.bf16.msra.mxu0 %v5675_v61  ;;  %2874 = vmatpush1.bf16.msra.mxu1 %v5749_v24 }
 0xdc7   :  { %2834 = vmatprep.subr.bf16.mxu0 %v5679_v1  ;;  %2875 = vmatprep.subr.bf16.mxu1 %v5753_v50 }
 0xdca   :  { %2835 = vmatpush1.bf16.msra.mxu0 %v5756_v9  ;;  %2876 = vmatpush1.bf16.msra.mxu1 %v5759_v2 }
 0xdcb   :  { %2836 = vmatprep.subr.bf16.mxu0 %v5762_v60  ;;  %2877 = vmatprep.subr.bf16.mxu1 %v5765_v52 }
 0xdce   :  { %2837 = vmatpush1.bf16.msra.mxu0 %v5768_v4  ;;  %2878 = vmatpush1.bf16.msra.mxu1 %v5771_v31 }
 0xdcf   :  { %2954 = vmatprep.subr.bf16.mxu0 %v5569_v22  ;;  %2995 = vmatprep.subr.bf16.mxu1 %v5690_v8 }
 0xe71   :  { %v2724_v11 = vpop.f32.mrf.mxu0  ;;  %v2765_v45 = vpop.f32.mrf.mxu1 }
 0xe72   :  { %v2772_v54 = vadd.f32 %v2724_v11, %v6086_v56  ;;  %v2774_v16 = vadd.f32 %v2765_v45, %v6088_v43  ;;  %v2806_v45 = vpop.permute.xlu1 %2805 }
 0xe73   :  { %v2726_v36 = vpop.f32.mrf.mxu0  ;;  %v2767_v35 = vpop.f32.mrf.mxu1  ;;  %vm2807_vm12 = vcmp.eq.s32.totalorder %v2806_v45, 1 }
 0xe74   :  { %v3666_v51 = vmul.f32 -1.442695, %v2772_v54  ;;  %v2773_v26 = vadd.f32 %v2726_v36, %v6087_v13  ;;  %v3668_v6 = vmul.f32 -1.442695, %v2774_v16  ;;  %v2775_v20 = vadd.f32 %v2767_v35, %v6089_v49 }
 0xe75   :  { %v2728_v53 = vpop.f32.mrf.mxu0  ;;  %v2769_v17 = vpop.f32.mrf.mxu1 }
 0xe76   :  { %4126 = vpow2.f32 %v3666_v51  ;;  %v3667_v62 = vmul.f32 -1.442695, %v2773_v26 }
 0xe77   :  { %v2729_v48 = vpop.f32.mrf.mxu0  ;;  %v2770_v28 = vpop.f32.mrf.mxu1 }
 0xe78   :  { %4128 = vpow2.f32 %v3667_v62  ;;  %v6090_v62 = vld [vmem:[#allocation35_spill] sm:$0xff] }
 0xe79   :  { %4130 = vpow2.f32 %v3668_v6  ;;  %v6091_v6 = vld [vmem:[#allocation36_spill] sm:$0xff] }
 0xe7a   :  { %4132 = vtanh.f32 %v2775_v20 }
 0xe83   :  { %v4127_v14 = vpop.eup %4126 }
 0xe84   :  { %v2785_v3 = vadd.f32 1.0, %v4127_v14 }
 0xe85   :  { %v4129_v10 = vpop.eup %4128 }
 0xe86   :  { %4134 = vrcp.f32 %v2785_v3  ;;  %v2786_v7 = vadd.f32 1.0, %v4129_v10  ;;  %v4131_v42 = vpop.eup %4130 }
 0xe87   :  { %v4133_v5 = vpop.eup %4132  ;;  %v2787_v55 = vadd.f32 1.0, %v4131_v42  ;;  %v6092_v42 = vld [vmem:[#allocation67_spill] sm:$0xff] }
 0xe88   :  { %4136 = vrcp.f32 %v2786_v7 }
 0xe89   :  { %4138 = vrcp.f32 %v2787_v55 }
 0xe93   :  { %v4135_v23 = vpop.eup %4134 }
 0xe94   :  { %v2796_v37 = vmul.f32 %v4135_v23, %v4133_v5 }
 0xe95   :  { %v4137_v0 = vpop.eup %4136 }
 0xe96   :  { %v2795_v11 = vmul.f32 %v4137_v0, %v5782_v40  ;;  %v4139_v36 = vpop.eup %4138 }
 0xe98   :  { %v2797_v56 = vadd.f32 %v2796_v37, %v2795_v11 }
 0xe9a   :  { %4140 = vtanh.f32 %v2797_v56  ;;  %v5829_v54 = vsel %vm2807_vm12, %v2797_v56, %v5782_v40 }
 0xea7   :  { %v4141_v35 = vpop.eup %4140 }
 0xea8   :  { %v2799_v51 = vmul.f32 %v4141_v35, %v4139_v36 }
 0xeaa   :  { %v2808_v13 = vsel %vm2807_vm12, %v2799_v51, 0.0  ;;  %v5832_v26 = vsel %vm2807_vm12, %v2799_v51, %v5785_v30 }
 0xeab   :  { %v2809_v53 = vpack.c.bf16 %v2808_v13, %v2808_v13  ;;  %v2821_v17 = vpack.c.bf16 %v5832_v26, %v5832_v26 }
 0xead   :  { %2811 = vst [vmem:[#allocation3 + $0x30] sm:$0xf] %v2809_v53  ;;  %2855 = vmatmul.mubr.bf16.vlgmr.msra.gmra.mxu0 %v2821_v17  ;;  %2896 = vmatmul.mubr.bf16.vlgmr.msra.gmra.mxu1 %v2821_v17  ;;  %v2938_v17 = vpop.permute.xlu0 %2937 }
 0xeae   :  { %2955 = vmatpush1.bf16.msra.mxu0 %v5633_v19  ;;  %2996 = vmatpush1.bf16.msra.mxu1 %v5707_v58  ;;  %vm2939_vm13 = vcmp.eq.s32.totalorder %v2938_v17, 1  ;;  %v3888_v17 = vld [vmem:[#allocation17 + $0x10] ss:$8 sps:$4 sm:$0xff]  }
 0xeaf   :  { %2956 = vmatprep.subr.bf16.mxu0 %v5637_v33  ;;  %2997 = vmatprep.subr.bf16.mxu1 %v5711_v57 }
 0xeb0   :  { %2986 = vmatprep.mubr.bf16.mxu0 %v6024_v63  ;;  %3027 = vmatprep.mubr.bf16.mxu1 %v6024_v63 }
 0xeb2   :  { %2957 = vmatpush1.bf16.msra.mxu0 %v5643_v44  ;;  %2998 = vmatpush1.bf16.msra.mxu1 %v5717_v15 }
 0xeb3   :  { %2958 = vmatprep.subr.bf16.mxu0 %v5647_v38  ;;  %2999 = vmatprep.subr.bf16.mxu1 %v5721_v29 }
 0xeb6   :  { %2959 = vmatpush1.bf16.msra.mxu0 %v5651_v12  ;;  %3000 = vmatpush1.bf16.msra.mxu1 %v5725_v32 }
 0xeb7   :  { %2960 = vmatprep.subr.bf16.mxu0 %v5655_v39  ;;  %3001 = vmatprep.subr.bf16.mxu1 %v5729_v46 }
 0xeba   :  { %2961 = vmatpush1.bf16.msra.mxu0 %v5659_v27  ;;  %3002 = vmatpush1.bf16.msra.mxu1 %v5733_v34 }
 0xebb   :  { %2962 = vmatprep.subr.bf16.mxu0 %v5663_v47  ;;  %3003 = vmatprep.subr.bf16.mxu1 %v5737_v25 }
 0xebe   :  { %2963 = vmatpush1.bf16.msra.mxu0 %v5667_v18  ;;  %3004 = vmatpush1.bf16.msra.mxu1 %v5741_v41 }
 0xebf   :  { %2964 = vmatprep.subr.bf16.mxu0 %v5671_v59  ;;  %3005 = vmatprep.subr.bf16.mxu1 %v5745_v21 }
 0xec2   :  { %2965 = vmatpush1.bf16.msra.mxu0 %v5675_v61  ;;  %3006 = vmatpush1.bf16.msra.mxu1 %v5749_v24 }
 0xec3   :  { %2966 = vmatprep.subr.bf16.mxu0 %v5679_v1  ;;  %3007 = vmatprep.subr.bf16.mxu1 %v5753_v50 }
 0xec6   :  { %2967 = vmatpush1.bf16.msra.mxu0 %v5756_v9  ;;  %3008 = vmatpush1.bf16.msra.mxu1 %v5759_v2 }
 0xec7   :  { %2968 = vmatprep.subr.bf16.mxu0 %v5762_v60  ;;  %3009 = vmatprep.subr.bf16.mxu1 %v5765_v52 }
 0xeca   :  { %2969 = vmatpush1.bf16.msra.mxu0 %v5768_v4  ;;  %3010 = vmatpush1.bf16.msra.mxu1 %v5771_v31 }
 0xecb   :  { %3086 = vmatprep.subr.bf16.mxu0 %v5569_v22  ;;  %3127 = vmatprep.subr.bf16.mxu1 %v5690_v8  ;;  %v6093_v8 = vld [vmem:[#allocation68_spill] sm:$0xff] }
 0xf6d   :  { %v2856_v40 = vpop.f32.mrf.mxu0  ;;  %v2897_v30 = vpop.f32.mrf.mxu1 }
 0xf6e   :  { %v2904_v48 = vadd.f32 %v2856_v40, %v6090_v62  ;;  %v2906_v22 = vadd.f32 %v2897_v30, %v6092_v42  ;;  %v3870_v42 = vld [vmem:[#allocation17 + $0x70] ss:$8 sps:$4 sm:$0xff]  }
 0xf6f   :  { %v2858_v28 = vpop.f32.mrf.mxu0  ;;  %v2899_v43 = vpop.f32.mrf.mxu1 }
 0xf70   :  { %v3669_v16 = vmul.f32 -1.442695, %v2904_v48  ;;  %v2905_v49 = vadd.f32 %v2858_v28, %v6091_v6  ;;  %v3671_v5 = vmul.f32 -1.442695, %v2906_v22  ;;  %v2907_v23 = vadd.f32 %v2899_v43, %v6093_v8 }
 0xf71   :  { %v2860_v20 = vpop.f32.mrf.mxu0  ;;  %v2901_v14 = vpop.f32.mrf.mxu1 }
 0xf72   :  { %4142 = vpow2.f32 %v3669_v16  ;;  %v3670_v3 = vmul.f32 -1.442695, %v2905_v49 }
 0xf73   :  { %v2861_v10 = vpop.f32.mrf.mxu0  ;;  %v2902_v7 = vpop.f32.mrf.mxu1 }
 0xf74   :  { %4144 = vpow2.f32 %v3670_v3 }
 0xf75   :  { %4146 = vpow2.f32 %v3671_v5 }
 0xf76   :  { %4148 = vtanh.f32 %v2907_v23 }
 0xf7f   :  { %v4143_v37 = vpop.eup %4142 }
 0xf80   :  { %v2917_v0 = vadd.f32 1.0, %v4143_v37  ;;  %v3875_v37 = vld [vmem:[#allocation17 + $0x64] ss:$8 sps:$4 sm:$0xff]  }
 0xf81   :  { %v4145_v55 = vpop.eup %4144 }
 0xf82   :  { %4150 = vrcp.f32 %v2917_v0  ;;  %v2918_v11 = vadd.f32 1.0, %v4145_v55  ;;  %v4147_v45 = vpop.eup %4146  ;;  %v3873_v0 = vld [vmem:[#allocation17 + $0x60] ss:$8 sps:$4 sm:$0xff]   ;;  %v3878_v55 = vld [vmem:[#allocation17 + $0x54] ss:$8 sps:$4 sm:$0xff]  }
 0xf83   :  { %v4149_v56 = vpop.eup %4148  ;;  %v2919_v13 = vadd.f32 1.0, %v4147_v45  ;;  %v3881_v45 = vld [vmem:[#allocation17 + $0x44] ss:$8 sps:$4 sm:$0xff]  }
 0xf84   :  { %4152 = vrcp.f32 %v2918_v11  ;;  %v3876_v11 = vld [vmem:[#allocation17 + $0x50] ss:$8 sps:$4 sm:$0xff]  }
 0xf85   :  { %4154 = vrcp.f32 %v2919_v13  ;;  %v3885_v13 = vld [vmem:[#allocation17 + $0x20] ss:$8 sps:$4 sm:$0xff]  }
 0xf8f   :  { %v4151_v36 = vpop.eup %4150 }
 0xf90   :  { %v2928_v35 = vmul.f32 %v4151_v36, %v4149_v56  ;;  %v3879_v56 = vld [vmem:[#allocation17 + $0x40] ss:$8 sps:$4 sm:$0xff]   ;;  %v3884_v36 = vld [vmem:[#allocation17 + $0x34] ss:$8 sps:$4 sm:$0xff]  }
 0xf91   :  { %v4153_v51 = vpop.eup %4152 }
 0xf92   :  { %v2927_v53 = vmul.f32 %v4153_v51, %v5829_v54  ;;  %v4155_v62 = vpop.eup %4154  ;;  %v3887_v51 = vld [vmem:[#allocation17 + $0x24] ss:$8 sps:$4 sm:$0xff]  }
 0xf94   :  { %v2929_v40 = vadd.f32 %v2928_v35, %v2927_v53  ;;  %v3882_v35 = vld [vmem:[#allocation17 + $0x30] ss:$8 sps:$4 sm:$0xff]   ;;  %v3890_v53 = vld [vmem:[#allocation17 + $0x14] ss:$8 sps:$4 sm:$0xff]  }
 0xf96   :  { %4156 = vtanh.f32 %v2929_v40  ;;  %v5876_v30 = vsel %vm2939_vm13, %v2929_v40, %v5829_v54  ;;  %v3070_v54 = vpop.permute.xlu1 %3069  ;;  %v3893_v40 = vld [vmem:[#allocation17 + $0x4] ss:$8 sps:$4 sm:$0xff]  }
 0xf97   :  { %vm3071_vm14 = vcmp.eq.s32.totalorder %v3070_v54, 1 }
 0xfa3   :  { %v4157_v48 = vpop.eup %4156 }
 0xfa4   :  { %v2931_v28 = vmul.f32 %v4157_v48, %v4155_v62  ;;  %v3894_v62 = vld [vmem:[#allocation3] sm:$0xff]   ;;  %v3895_v48 = vld [vmem:[#allocation3 + $0x8] sm:$0xff]  }
 0xfa6   :  { %v2940_v43 = vsel %vm2939_vm13, %v2931_v28, 0.0  ;;  %v5879_v16 = vsel %vm2939_vm13, %v2931_v28, %v5832_v26  ;;  %v3896_v28 = vld [vmem:[#allocation3 + $0x10] sm:$0xff]  }
 0xfa7   :  { %v2941_v6 = vpack.c.bf16 %v2940_v43, %v2940_v43  ;;  %v2953_v49 = vpack.c.bf16 %v5879_v16, %v5879_v16  ;;  %v3897_v43 = vld [vmem:[#allocation3 + $0x18] sm:$0xff]  }
 0xfa9   :  { %2943 = vst [vmem:[#allocation3 + $0x34] sm:$0xf] %v2941_v6  ;;  %2987 = vmatmul.mubr.bf16.vlgmr.msra.gmra.mxu0 %v2953_v49  ;;  %3028 = vmatmul.mubr.bf16.vlgmr.msra.gmra.mxu1 %v2953_v49  ;;  %v3899_v6 = vld [vmem:[#allocation3 + $0x28] sm:$0xff]  }
 0xfaa   :  { %3087 = vmatpush1.bf16.msra.mxu0 %v5633_v19  ;;  %3128 = vmatpush1.bf16.msra.mxu1 %v5707_v58  ;;  %v3872_v19 = vld [vmem:[#allocation17 + $0x74] ss:$8 sps:$4 sm:$0xff]  }
 0xfab   :  { %3088 = vmatprep.subr.bf16.mxu0 %v5637_v33  ;;  %3129 = vmatprep.subr.bf16.mxu1 %v5711_v57 }
 0xfac   :  { %3118 = vmatprep.mubr.bf16.mxu0 %v6024_v63  ;;  %3159 = vmatprep.mubr.bf16.mxu1 %v6024_v63 }
 0xfae   :  { %3089 = vmatpush1.bf16.msra.mxu0 %v5643_v44  ;;  %3130 = vmatpush1.bf16.msra.mxu1 %v5717_v15 }
 0xfaf   :  { %3090 = vmatprep.subr.bf16.mxu0 %v5647_v38  ;;  %3131 = vmatprep.subr.bf16.mxu1 %v5721_v29  ;;  %v6094_v38 = vld [vmem:[#allocation37_spill] sm:$0xff] }
 0xfb0   :  { %v6096_v29 = vld [vmem:[#allocation69_spill] sm:$0xff] }
 0xfb1   :  { %v3900_v49 = vld [vmem:[#allocation3 + $0x30] sm:$0xff]  }
 0xfb2   :  { %3091 = vmatpush1.bf16.msra.mxu0 %v5651_v12  ;;  %3132 = vmatpush1.bf16.msra.mxu1 %v5725_v32 }
 0xfb3   :  { %3092 = vmatprep.subr.bf16.mxu0 %v5655_v39  ;;  %3133 = vmatprep.subr.bf16.mxu1 %v5729_v46 }
 0xfb6   :  { %3093 = vmatpush1.bf16.msra.mxu0 %v5659_v27  ;;  %3134 = vmatpush1.bf16.msra.mxu1 %v5733_v34  ;;  %v6097_v34 = vld [vmem:[#allocation70_spill] sm:$0xff] }
 0xfb7   :  { %3094 = vmatprep.subr.bf16.mxu0 %v5663_v47  ;;  %3135 = vmatprep.subr.bf16.mxu1 %v5737_v25 }
 0xfba   :  { %3095 = vmatpush1.bf16.msra.mxu0 %v5667_v18  ;;  %3136 = vmatpush1.bf16.msra.mxu1 %v5741_v41  ;;  %v6095_v18 = vld [vmem:[#allocation38_spill] sm:$0xff] }
 0xfbb   :  { %3096 = vmatprep.subr.bf16.mxu0 %v5671_v59  ;;  %3137 = vmatprep.subr.bf16.mxu1 %v5745_v21 }
 0xfbe   :  { %3097 = vmatpush1.bf16.msra.mxu0 %v5675_v61  ;;  %3138 = vmatpush1.bf16.msra.mxu1 %v5749_v24 }
 0xfbf   :  { %3098 = vmatprep.subr.bf16.mxu0 %v5679_v1  ;;  %3139 = vmatprep.subr.bf16.mxu1 %v5753_v50 }
 0xfc2   :  { %3099 = vmatpush1.bf16.msra.mxu0 %v5756_v9  ;;  %3140 = vmatpush1.bf16.msra.mxu1 %v5759_v2 }
 0xfc3   :  { %3100 = vmatprep.subr.bf16.mxu0 %v5762_v60  ;;  %3141 = vmatprep.subr.bf16.mxu1 %v5765_v52 }
 0xfc6   :  { %3101 = vmatpush1.bf16.msra.mxu0 %v5768_v4  ;;  %3142 = vmatpush1.bf16.msra.mxu1 %v5771_v31 }
 0xfc7   :  { %3384 = vmatprep.subr.bf16.mxu0 %v3872_v19 }
0x1069   :  { %v2988_v33 = vpop.f32.mrf.mxu0  ;;  %v3029_v44 = vpop.f32.mrf.mxu1 }
0x106a   :  { %v3036_v12 = vadd.f32 %v2988_v33, %v6094_v38  ;;  %v3038_v32 = vadd.f32 %v3029_v44, %v6096_v29  ;;  %v6098_v44 = vld [vmem:[#allocation40_spill] sm:$0xff] }
0x106b   :  { %v2990_v39 = vpop.f32.mrf.mxu0  ;;  %v3031_v27 = vpop.f32.mrf.mxu1 }
0x106c   :  { %v3672_v47 = vmul.f32 -1.442695, %v3036_v12  ;;  %v3037_v59 = vadd.f32 %v2990_v39, %v6095_v18  ;;  %v3674_v46 = vmul.f32 -1.442695, %v3038_v32  ;;  %v3039_v25 = vadd.f32 %v3031_v27, %v6097_v34 }
0x106d   :  { %v2992_v61 = vpop.f32.mrf.mxu0  ;;  %v3033_v1 = vpop.f32.mrf.mxu1 }
0x106e   :  { %4158 = vpow2.f32 %v3672_v47  ;;  %v3673_v58 = vmul.f32 -1.442695, %v3037_v59  ;;  %v6099_v47 = vld [vmem:[#allocation42_spill] sm:$0xff] }
0x106f   :  { %v2993_v57 = vpop.f32.mrf.mxu0  ;;  %v3034_v15 = vpop.f32.mrf.mxu1 }
0x1070   :  { %4160 = vpow2.f32 %v3673_v58  ;;  %v6100_v15 = vld [vmem:[#allocation71_spill] sm:$0xff] }
0x1071   :  { %4162 = vpow2.f32 %v3674_v46 }
0x1072   :  { %4164 = vtanh.f32 %v3039_v25 }
0x107b   :  { %v4159_v41 = vpop.eup %4158 }
0x107c   :  { %v3049_v21 = vadd.f32 1.0, %v4159_v41 }
0x107d   :  { %v4161_v24 = vpop.eup %4160 }
0x107e   :  { %4166 = vrcp.f32 %v3049_v21  ;;  %v3050_v50 = vadd.f32 1.0, %v4161_v24  ;;  %v4163_v9 = vpop.eup %4162  ;;  %v3244_v24 = vld [vmem:[%s5996_s10] sm:$0x3]  ;;  %s4438_s10 = smov [#allocation18]  }
0x107f   :  { %v4165_v2 = vpop.eup %4164  ;;  %v3051_v31 = vadd.f32 1.0, %v4163_v9  ;;  %s3534_s20 = sshll.u32 %s4438_s10, 4  ;;  %s3535_s20 = int_to_ptr.vmem [resolvable:$true] %s3534_s20 }
0x1080   :  { %4168 = vrcp.f32 %v3050_v50  ;;  %v6102_v50 = vld [vmem:[#allocation24_spill] sm:$0xff]  ;;  %s4394_s21 = scalar_lea.vmem %s3535_s20, 4096  ;;  %p4399_p8 = scmp.lt.s32.totalorder %s3535_s20, %s3535_s20 }
0x1081   :  { %4170 = vrcp.f32 %v3051_v31  ;;  %v6103_v9 = vsub.s32 0, %v6102_v50  ;;  %p4395_p7 = scmp.ne.s32.totalorder %s3535_s20, %s4394_s21  ;;  %p4400_p9 = scmp.lt.s32.totalorder %s4394_s21, %s4394_s21 }
0x1083   :  { %p4401_p10 = por %p4400_p9, %p4399_p8 }
0x1085   :  { %p4402_p11 = pnand %p4401_p10, %p4395_p7 }
0x108b   :  { %v4167_v60 = vpop.eup %4166 }
0x108c   :  { %v3060_v52 = vmul.f32 %v4167_v60, %v4165_v2  ;;  %v5941_v2 = vrot.slane %v3244_v24, %v6103_v9  ;;  %v6104_v60 = vsub.s32 1, %v6102_v50 }
0x108d   :  { %v4169_v4 = vpop.eup %4168 }
0x108e   :  { %v3059_v26 = vmul.f32 %v4169_v4, %v5876_v30  ;;  %v4171_v3 = vpop.eup %4170 }
0x1090   :  { %v3061_v20 = vadd.f32 %v3060_v52, %v3059_v26  ;;  %v5945_v52 = vrot.slane %v3244_v24, %v6104_v60 }
0x1092   :  { %4172 = vtanh.f32 %v3061_v20  ;;  %v5921_v14 = vsel %vm3071_vm14, %v3061_v20, %v5876_v30  ;;  %v3891_v30 = vld [vmem:[#allocation17] ss:$8 sps:$4 sm:$0xff]  }
0x109f   :  { %v4173_v10 = vpop.eup %4172 }
0x10a0   :  { %v3063_v7 = vmul.f32 %v4173_v10, %v4171_v3 }
0x10a2   :  { %v3072_v22 = vsel %vm3071_vm14, %v3063_v7, 0.0  ;;  %v3076_v5 = vsel %vm3071_vm14, %v3063_v7, %v5879_v16  ;;  %v3898_v16 = vld [vmem:[#allocation3 + $0x20] sm:$0xff]  }
0x10a3   :  { %v3073_v8 = vpack.c.bf16 %v3072_v22, %v3072_v22  ;;  %v3085_v23 = vpack.c.bf16 %v3076_v5, %v3076_v5 }
0x10a5   :  { %3075 = vst [vmem:[#allocation3 + $0x38] sm:$0xf] %v3073_v8  ;;  %3119 = vmatmul.mubr.bf16.vlgmr.msra.gmra.mxu0 %v3085_v23  ;;  %3160 = vmatmul.mubr.bf16.vlgmr.msra.gmra.mxu1 %v3085_v23 }
0x10a6   :  { %3385 = vmatpush1.bf16.msra.mxu0 %v3870_v42  ;;  %3416 = vmatprep.mubr.bf16.mxu0 %v6024_v63 }
0x10a7   :  { %3386 = vmatprep.subr.bf16.mxu0 %v3875_v37 }
0x10aa   :  { %3387 = vmatpush1.bf16.msra.mxu0 %v3873_v0 }
0x10ab   :  { %3388 = vmatprep.subr.bf16.mxu0 %v3878_v55 }
0x10ae   :  { %3389 = vmatpush1.bf16.msra.mxu0 %v3876_v11 }
0x10af   :  { %3390 = vmatprep.subr.bf16.mxu0 %v3881_v45 }
0x10b2   :  { %3391 = vmatpush1.bf16.msra.mxu0 %v3879_v56 }
0x10b3   :  { %3392 = vmatprep.subr.bf16.mxu0 %v3884_v36 }
0x10b6   :  { %3393 = vmatpush1.bf16.msra.mxu0 %v3882_v35 }
0x10b7   :  { %3394 = vmatprep.subr.bf16.mxu0 %v3887_v51 }
0x10ba   :  { %3395 = vmatpush1.bf16.msra.mxu0 %v3885_v13 }
0x10bb   :  { %3396 = vmatprep.subr.bf16.mxu0 %v3890_v53 }
0x10be   :  { %3397 = vmatpush1.bf16.msra.mxu0 %v3888_v17 }
0x10bf   :  { %3398 = vmatprep.subr.bf16.mxu0 %v3893_v40 }
0x10c2   :  { %3399 = vmatpush1.bf16.msra.mxu0 %v3891_v30 }
0x10c5   :  { %3417 = vmatmul.mubr.bf16.vlgmr.msra.gmra.mxu0 %v3894_v62 }
0x10c6   :  { %3426 = vmatprep.mubr.bf16.mxu0 %v6024_v63 }
0x10cd   :  { %3427 = vmatmul.mubr.bf16.gmra.mxu0 %v3895_v48 }
0x10ce   :  { %3436 = vmatprep.mubr.bf16.mxu0 %v6024_v63 }
0x10d5   :  { %3437 = vmatmul.mubr.bf16.gmra.mxu0 %v3896_v28  ;;  %v3202_v28 = vpop.permute.xlu0 %3201 }
0x10d6   :  { %3446 = vmatprep.mubr.bf16.mxu0 %v6024_v63  ;;  %vm3203_vm15 = vcmp.eq.s32.totalorder %v3202_v28, 1 }
0x10dd   :  { %3447 = vmatmul.mubr.bf16.gmra.mxu0 %v3897_v43 }
0x10de   :  { %3456 = vmatprep.mubr.bf16.mxu0 %v6024_v63 }
0x10e5   :  { %3457 = vmatmul.mubr.bf16.gmra.mxu0 %v3898_v16 }
0x10e6   :  { %3466 = vmatprep.mubr.bf16.mxu0 %v6024_v63 }
0x10ed   :  { %3467 = vmatmul.mubr.bf16.gmra.mxu0 %v3899_v6 }
0x10ee   :  { %3476 = vmatprep.mubr.bf16.mxu0 %v6024_v63 }
0x10f5   :  { %3477 = vmatmul.mubr.bf16.gmra.mxu0 %v3900_v49 }
0x10f6   :  { %3486 = vmatprep.mubr.bf16.mxu0 %v6024_v63  ;;  %v6101_v63 = vld [vmem:[#allocation72_spill] sm:$0xff] }
0x1165   :  { %v3120_v19 = vpop.f32.mrf.mxu0  ;;  %v3161_v33 = vpop.f32.mrf.mxu1 }
0x1166   :  { %v3168_v38 = vadd.f32 %v3120_v19, %v6098_v44  ;;  %v3170_v29 = vadd.f32 %v3161_v33, %v6100_v15 }
0x1167   :  { %v3122_v12 = vpop.f32.mrf.mxu0  ;;  %v3163_v39 = vpop.f32.mrf.mxu1 }
0x1168   :  { %v3675_v27 = vmul.f32 -1.442695, %v3168_v38  ;;  %v3169_v18 = vadd.f32 %v3122_v12, %v6099_v47  ;;  %v3677_v32 = vmul.f32 -1.442695, %v3170_v29  ;;  %v3171_v46 = vadd.f32 %v3163_v39, %v6101_v63 }
0x1169   :  { %v3124_v59 = vpop.f32.mrf.mxu0  ;;  %v3165_v61 = vpop.f32.mrf.mxu1 }
0x116a   :  { %4174 = vpow2.f32 %v3675_v27  ;;  %v3676_v1 = vmul.f32 -1.442695, %v3169_v18 }
0x116b   :  { %v3125_v58 = vpop.f32.mrf.mxu0  ;;  %v3166_v57 = vpop.f32.mrf.mxu1 }
0x116c   :  { %4176 = vpow2.f32 %v3676_v1 }
0x116d   :  { %4178 = vpow2.f32 %v3677_v32 }
0x116e   :  { %4180 = vtanh.f32 %v3171_v46 }
0x1177   :  { %v4175_v34 = vpop.eup %4174 }
0x1178   :  { %v3181_v25 = vadd.f32 1.0, %v4175_v34 }
0x1179   :  { %v4177_v41 = vpop.eup %4176 }
0x117a   :  { %4182 = vrcp.f32 %v3181_v25  ;;  %v3182_v21 = vadd.f32 1.0, %v4177_v41  ;;  %v4179_v4 = vpop.eup %4178 }
0x117b   :  { %v4181_v54 = vpop.eup %4180  ;;  %v3183_v22 = vadd.f32 1.0, %v4179_v4 }
0x117c   :  { %4184 = vrcp.f32 %v3182_v21 }
0x117d   :  { %4186 = vrcp.f32 %v3183_v22 }
0x1185   :  { %v3418_v31 = vpop.f32.mrf.mxu0 }
0x1186   :  { %v3419_v26 = vadd.f32 %v3418_v31, %v5941_v2 }
0x1187   :  { %v4183_v20 = vpop.eup %4182  ;;  %v3420_v3 = vpop.f32.mrf.mxu0 }
0x1188   :  { %v3192_v10 = vmul.f32 %v4183_v20, %v4181_v54  ;;  %3497 = vst [vmem:[#allocation18] sm:$0xff] %v3419_v26  ;;  %v3421_v7 = vadd.f32 %v3420_v3, %v5945_v52 }
0x1189   :  { %v4185_v42 = vpop.eup %4184  ;;  %v3422_v5 = vpop.f32.mrf.mxu0 }
0x118a   :  { %v3191_v8 = vmul.f32 %v4185_v42, %v5921_v14  ;;  %3498 = vst [vmem:[#allocation18 + $0x8] sm:$0xff] %v3421_v7  ;;  %v3423_v23 = vadd.f32 %v3422_v5, %v5941_v2  ;;  %v4187_v48 = vpop.eup %4186 }
0x118b   :  { %v3424_v37 = vpop.f32.mrf.mxu0 }
0x118c   :  { %v3193_v0 = vadd.f32 %v3192_v10, %v3191_v8  ;;  %3499 = vst [vmem:[#allocation18 + $0x10] sm:$0xff] %v3423_v23  ;;  %v3425_v55 = vadd.f32 %v3424_v37, %v5945_v52 }
0x118d   :  { %v3428_v11 = vpop.f32.mrf.mxu0 }
0x118e   :  { %4188 = vtanh.f32 %v3193_v0  ;;  %3500 = vst [vmem:[#allocation18 + $0x18] sm:$0xff] %v3425_v55  ;;  %v3429_v45 = vadd.f32 %v3428_v11, %v5941_v2 }
0x118f   :  { %v3430_v56 = vpop.f32.mrf.mxu0 }
0x1190   :  { %3501 = vst [vmem:[#allocation18 + $0x20] sm:$0xff] %v3429_v45  ;;  %v3431_v36 = vadd.f32 %v3430_v56, %v5945_v52 }
0x1191   :  { %v3432_v35 = vpop.f32.mrf.mxu0 }
0x1192   :  { %3502 = vst [vmem:[#allocation18 + $0x28] sm:$0xff] %v3431_v36  ;;  %v3433_v14 = vadd.f32 %v3432_v35, %v5941_v2 }
0x1193   :  { %v3434_v51 = vpop.f32.mrf.mxu0 }
0x1194   :  { %3503 = vst [vmem:[#allocation18 + $0x30] sm:$0xff] %v3433_v14  ;;  %v3435_v13 = vadd.f32 %v3434_v51, %v5945_v52 }
0x1195   :  { %v3438_v53 = vpop.f32.mrf.mxu0 }
0x1196   :  { %3504 = vst [vmem:[#allocation18 + $0x38] sm:$0xff] %v3435_v13  ;;  %v3439_v17 = vadd.f32 %v3438_v53, %v5941_v2 }
0x1197   :  { %v3440_v40 = vpop.f32.mrf.mxu0 }
0x1198   :  { %3505 = vst [vmem:[#allocation18 + $0x40] sm:$0xff] %v3439_v17  ;;  %v3441_v30 = vadd.f32 %v3440_v40, %v5945_v52 }
0x1199   :  { %v3442_v62 = vpop.f32.mrf.mxu0 }
0x119a   :  { %3506 = vst [vmem:[#allocation18 + $0x48] sm:$0xff] %v3441_v30  ;;  %v3443_v43 = vadd.f32 %v3442_v62, %v5941_v2 }
0x119b   :  { %v4189_v16 = vpop.eup %4188  ;;  %v3444_v6 = vpop.f32.mrf.mxu0 }
0x119c   :  { %v3195_v49 = vmul.f32 %v4189_v16, %v4187_v48  ;;  %3507 = vst [vmem:[#allocation18 + $0x50] sm:$0xff] %v3443_v43  ;;  %v3445_v19 = vadd.f32 %v3444_v6, %v5945_v52 }
0x119d   :  { %v3448_v33 = vpop.f32.mrf.mxu0 }
0x119e   :  { %v3204_v44 = vsel %vm3203_vm15, %v3195_v49, 0.0  ;;  %3508 = vst [vmem:[#allocation18 + $0x58] sm:$0xff] %v3445_v19  ;;  %v3449_v38 = vadd.f32 %v3448_v33, %v5941_v2 }
0x119f   :  { %v3205_v12 = vpack.c.bf16 %v3204_v44, %v3204_v44  ;;  %v3450_v39 = vpop.f32.mrf.mxu0 }
0x11a0   :  { %3509 = vst [vmem:[#allocation18 + $0x60] sm:$0xff] %v3449_v38  ;;  %v3451_v27 = vadd.f32 %v3450_v39, %v5945_v52 }
0x11a1   :  { %3207 = vst [vmem:[#allocation3 + $0x3c] sm:$0xf] %v3205_v12  ;;  %v3452_v47 = vpop.f32.mrf.mxu0 }
0x11a2   :  { %3510 = vst [vmem:[#allocation18 + $0x68] sm:$0xff] %v3451_v27  ;;  %v3453_v18 = vadd.f32 %v3452_v47, %v5941_v2 }
0x11a3   :  { %v3454_v59 = vpop.f32.mrf.mxu0 }
0x11a4   :  { %3511 = vst [vmem:[#allocation18 + $0x70] sm:$0xff] %v3453_v18  ;;  %v3455_v61 = vadd.f32 %v3454_v59, %v5945_v52 }
0x11a5   :  { %v3458_v1 = vpop.f32.mrf.mxu0 }
0x11a6   :  { %3512 = vst [vmem:[#allocation18 + $0x78] sm:$0xff] %v3455_v61  ;;  %v3459_v58 = vadd.f32 %v3458_v1, %v5941_v2 }
0x11a7   :  { %v3460_v57 = vpop.f32.mrf.mxu0 }
0x11a8   :  { %3513 = vst [vmem:[#allocation18 + $0x80] sm:$0xff] %v3459_v58  ;;  %v3461_v15 = vadd.f32 %v3460_v57, %v5945_v52  ;;  %v3901_v29 = vld [vmem:[#allocation3 + $0x38] sm:$0xff]  }
0x11a9   :  { %v3462_v32 = vpop.f32.mrf.mxu0  ;;  %3487 = vmatmul.mubr.bf16.gmra.mxu0 %v3901_v29 }
0x11aa   :  { %3514 = vst [vmem:[#allocation18 + $0x88] sm:$0xff] %v3461_v15  ;;  %v3463_v63 = vadd.f32 %v3462_v32, %v5941_v2 }
0x11ab   :  { %v3464_v46 = vpop.f32.mrf.mxu0 }
0x11ac   :  { %3515 = vst [vmem:[#allocation18 + $0x90] sm:$0xff] %v3463_v63  ;;  %v3465_v34 = vadd.f32 %v3464_v46, %v5945_v52 }
0x11ad   :  { %v3468_v25 = vpop.f32.mrf.mxu0 }
0x11ae   :  { %3516 = vst [vmem:[#allocation18 + $0x98] sm:$0xff] %v3465_v34  ;;  %v3469_v41 = vadd.f32 %v3468_v25, %v5941_v2 }
0x11af   :  { %v3470_v21 = vpop.f32.mrf.mxu0 }
0x11b0   :  { %3517 = vst [vmem:[#allocation18 + $0xa0] sm:$0xff] %v3469_v41  ;;  %v3471_v24 = vadd.f32 %v3470_v21, %v5945_v52 }
0x11b1   :  { %v3472_v50 = vpop.f32.mrf.mxu0 }
0x11b2   :  { %3518 = vst [vmem:[#allocation18 + $0xa8] sm:$0xff] %v3471_v24  ;;  %v3473_v9 = vadd.f32 %v3472_v50, %v5941_v2 }
0x11b3   :  { %v3474_v60 = vpop.f32.mrf.mxu0 }
0x11b4   :  { %3519 = vst [vmem:[#allocation18 + $0xb0] sm:$0xff] %v3473_v9  ;;  %v3475_v4 = vadd.f32 %v3474_v60, %v5945_v52 }
0x11b5   :  { %v3478_v31 = vpop.f32.mrf.mxu0 }
0x11b6   :  { %3520 = vst [vmem:[#allocation18 + $0xb8] sm:$0xff] %v3475_v4  ;;  %v3479_v54 = vadd.f32 %v3478_v31, %v5941_v2 }
0x11b7   :  { %v3480_v26 = vpop.f32.mrf.mxu0 }
0x11b8   :  { %3521 = vst [vmem:[#allocation18 + $0xc0] sm:$0xff] %v3479_v54  ;;  %v3481_v20 = vadd.f32 %v3480_v26, %v5945_v52 }
0x11b9   :  { %v3482_v3 = vpop.f32.mrf.mxu0 }
0x11ba   :  { %3522 = vst [vmem:[#allocation18 + $0xc8] sm:$0xff] %v3481_v20  ;;  %v3483_v10 = vadd.f32 %v3482_v3, %v5941_v2 }
0x11bb   :  { %v3484_v7 = vpop.f32.mrf.mxu0 }
0x11bc   :  { %3523 = vst [vmem:[#allocation18 + $0xd0] sm:$0xff] %v3483_v10  ;;  %v3485_v42 = vadd.f32 %v3484_v7, %v5945_v52 }
0x11be   :  { %3524 = vst [vmem:[#allocation18 + $0xd8] sm:$0xff] %v3485_v42 }
0x1269   :  { %v3488_v22 = vpop.f32.mrf.mxu0 }
0x126a   :  { %v3489_v5 = vadd.f32 %v3488_v22, %v5941_v2 }
0x126b   :  { %v3490_v8 = vpop.f32.mrf.mxu0 }
0x126c   :  { %3525 = vst [vmem:[#allocation18 + $0xe0] sm:$0xff] %v3489_v5  ;;  %v3491_v23 = vadd.f32 %v3490_v8, %v5945_v52 }
0x126d   :  { %v3492_v37 = vpop.f32.mrf.mxu0 }
0x126e   :  { %3526 = vst [vmem:[#allocation18 + $0xe8] sm:$0xff] %v3491_v23  ;;  %v3493_v0 = vadd.f32 %v3492_v37, %v5941_v2 }
0x126f   :  { %v3494_v55 = vpop.f32.mrf.mxu0 }
0x1270   :  { %3527 = vst [vmem:[#allocation18 + $0xf0] sm:$0xff] %v3493_v0  ;;  %v3495_v11 = vadd.f32 %v3494_v55, %v5945_v52 }
0x1272   :  { %3528 = vst [vmem:[#allocation18 + $0xf8] sm:$0xff] %v3495_v11 }
0x1273   :  { %4405 = shalt.err (!%p4402_p11)
}
0x1274   :  { %3540 = dma.vmem_to_hbm [thread:$0]  %s3535_s20, 4096, %s5997_s11, [#allocation8], %s4426_s26, %s4426_s26, %s4427_s27  }
0x1275   :  { %4422 = dma.done.wait [#allocation8], 4096  }
0x1276   :  { %4423 = vsyncadd [#allocation8], 4294963200 }
0x1277   :  { %3544 = vsyncpa [#allocation7], 1 }
0x1278   :  { %3545 = vsyncpa [#allocation10], 1 }
0x1279   :  { %3546 = vsyncpa [#allocation13], 1 }
0x127a   :  { %3547 = vsyncpa [#allocation16], 1 }
0x127b   :  { %3548 = vsyncpa [#allocation8], 1 }

</bundles_post_ra>
